<compile_context>
chip_gen: v7x
topology: tpu7x:2x2x1
jax: 0.10.0
libtpu: 0.0.40
codegen_flags: <defaults>
</compile_context>

<pallas_src>
import jax
import jax.numpy as jnp
import numpy as np
from jax.experimental import pallas as pl
from jax.experimental.pallas import tpu as pltpu


def _round_up(x, m):
    return ((x + m - 1) // m) * m


def lstm_last_kernel(tok_ref, proj_ref, whh_ref, out_ref):
    """LSTM recurrence over T steps for one batch tile; writes h_T.

    tok_ref:  (tB, T)   int32 token ids for this batch tile (batch on sublanes)
    proj_ref: (Vp, 4H)  fused  emb @ W_ih^T + (b_ih + b_hh)  table, resident
    whh_ref:  (H, 4H)   W_hh^T, resident (f32 or bf16)
    out_ref:  (tB, H)   h at the last timestep (f32)
    """
    tB, T = tok_ref.shape
    Vp = proj_ref.shape[0]
    H = whh_ref.shape[0]
    mm_dtype = whh_ref.dtype   # bf16 option: MXU operands only; gate math stays f32

    # Hoisted once (broadcast_in_dim is not CSE'd by JAX).
    lane_iota = jax.lax.broadcasted_iota(jnp.int32, (tB, Vp), 1)

    def sig(x):
        # sigmoid via tanh identity: one EUP op per element (vs exp + recip).
        return 0.5 * jnp.tanh(0.5 * x) + 0.5

    def gate_pre(g, onehot, h_mm):
        # One H-wide gate slice at a time, fed straight from the refs: no
        # hoisted full-W_hh live value, no full (tB, 4H) gates slab in vregs.
        lo = g * H
        return (jnp.dot(onehot, proj_ref[:, lo:lo + H],
                        preferred_element_type=jnp.float32)
                + jnp.dot(h_mm, whh_ref[:, lo:lo + H],
                          preferred_element_type=jnp.float32))

    h = jnp.zeros((tB, H), jnp.float32)
    c = jnp.zeros((tB, H), jnp.float32)

    # T (SMILES max_len) is small & static here, so the recurrence is fully
    # unrolled for cross-step scheduler visibility.
    # TODO(synk): for long max_len (>~64) switch to lax.fori_loop with partial
    # unroll (and a time-major token layout) to bound trace/compile time.
    for t in range(T):
        # In-kernel embedding gather: one-hot @ resident fused table.  The
        # one-hot matmul does not depend on h, so it runs off the serial chain.
        onehot = (tok_ref[:, pl.ds(t, 1)] == lane_iota).astype(mm_dtype)  # (tB, Vp)
        h_mm = h.astype(mm_dtype)

        # PyTorch gate order: 0=i, 1=f, 2=g(cell), 3=o — computed per gate.
        ig = sig(gate_pre(0, onehot, h_mm)) * jnp.tanh(gate_pre(2, onehot, h_mm))
        c = sig(gate_pre(1, onehot, h_mm)) * c + ig
        h = sig(gate_pre(3, onehot, h_mm)) * jnp.tanh(c)

    out_ref[...] = h.astype(out_ref.dtype)


def smiles_encoder_forward(tokens, emb_table, w_ih, w_hh, b_ih, b_hh, max_len,
                           recurrent_dtype=jnp.float32, batch_tile=128,
                           min_batch_tiles=1):
    """Equivalent of SMILESEncoder.forward (num_layers=1, bidirectional=False).

    Returns feat[:, -1] == h_T of shape (B, H).
    `min_batch_tiles=2` is recommended on v7x (2 TensorCores); `batch_tile=256`
    can help on v6e/v7x for large B (wider MXU M), at the cost of vreg pressure.
    """
    # data.smi.view(-1, max_len)
    x = tokens.reshape(-1, max_len).astype(jnp.int32)    # (B, T)
    B, T = x.shape
    H = w_hh.shape[1]
    V = emb_table.shape[0]

    # Fused embedding + input projection + combined bias table: (V, 4H), f32.
    # padding_idx row of emb_table is zero -> padded tokens contribute bias only,
    # identical to the reference (which also runs padding timesteps; the module
    # does not use pack_padded_sequence).
    proj_table = (jnp.dot(emb_table, w_ih.T, precision=jax.lax.Precision.HIGHEST)
                  + (b_ih + b_hh)).astype(jnp.float32)   # (V, 4H)

    # Pad the vocab axis to a lane multiple so the in-kernel one-hot matmul's
    # K dimension is 128-aligned (padded rows are zero and never indexed).
    Vp = max(128, _round_up(V, 128))
    if Vp != V:
        proj_table = jnp.pad(proj_table, ((0, Vp - V), (0, 0)))
    proj_table = proj_table.astype(recurrent_dtype)

    # Hidden->gates weight, pre-transposed; optionally bf16 for the MXU.
    whh_t = w_hh.T.astype(recurrent_dtype)               # (H, 4H)

    # Batch tile: sublane multiple (8 for f32), capped at batch_tile; optionally
    # force >= min_batch_tiles grid steps (v7x: both TensorCores get work).
    tB = min(batch_tile, _round_up(B, 8))
    if min_batch_tiles > 1:
        tB = min(tB, _round_up(pl.cdiv(B, min_batch_tiles), 8))
    tB = max(tB, 8)
    Bp = _round_up(B, tB)
    if Bp != B:
        x = jnp.pad(x, ((0, Bp - B), (0, 0)))            # pad tokens, not floats

    grid = (Bp // tB,)
    out = pl.pallas_call(
        lstm_last_kernel,
        out_shape=jax.ShapeDtypeStruct((Bp, H), jnp.float32),
        grid_spec=pltpu.PrefetchScalarGridSpec(
            num_scalar_prefetch=0,
            grid=grid,
            in_specs=[
                # Tiny int32 token block per grid step (replaces the old
                # (T, tB, 4H) f32 activation slab -> ~500x fewer input bytes).
                pl.BlockSpec((tB, T), lambda i: (i, 0)),
                # Fused emb/W_ih/bias table, resident across all grid steps.
                pl.BlockSpec((Vp, 4 * H), lambda i: (0, 0)),
                # W_hh^T, resident across all grid steps.
                pl.BlockSpec((H, 4 * H), lambda i: (0, 0)),
            ],
            out_specs=pl.BlockSpec((tB, H), lambda i: (i, 0)),
        ),
        compiler_params=pltpu.CompilerParams(
            dimension_semantics=("parallel",)),
    )(x, proj_table, whh_t)
    return out[:B]                                       # (B, H) == feat[:, -1]


def _reference_forward(tokens, emb_table, w_ih, w_hh, b_ih, b_hh, max_len):
    """Pure-JAX reference of the same forward pass (for correctness check)."""
    hp = jax.lax.Precision.HIGHEST
    x = tokens.reshape(-1, max_len)
    x_emb = emb_table[x]
    B = x.shape[0]
    H = w_hh.shape[1]
    h = jnp.zeros((B, H), jnp.float32)
    c = jnp.zeros((B, H), jnp.float32)
    for t in range(max_len):
        gates = (jnp.dot(x_emb[:, t, :], w_ih.T, precision=hp)
                 + jnp.dot(h, w_hh.T, precision=hp) + b_ih + b_hh)
        i_g = jax.nn.sigmoid(gates[:, 0 * H:1 * H])
        f_g = jax.nn.sigmoid(gates[:, 1 * H:2 * H])
        g_g = jnp.tanh(gates[:, 2 * H:3 * H])
        o_g = jax.nn.sigmoid(gates[:, 3 * H:4 * H])
        c = f_g * c + i_g * g_g
        h = o_g * jnp.tanh(c)
    return h


if __name__ == "__main__":
    # Small shapes consistent with the module's forward.
    vocab_size = 32
    max_len = 8
    padding_idx = 0
    embedding_dim = 64
    dim = 128
    batch = 2

    key = jax.random.PRNGKey(0)
    k_emb, k_wih, k_whh, k_bih, k_bhh, k_tok = jax.random.split(key, 6)

    # nn.Embedding: N(0,1), padding_idx row zeroed.
    emb_table = jax.random.normal(k_emb, (vocab_size, embedding_dim), jnp.float32)
    emb_table = emb_table.at[padding_idx].set(0.0)

    # nn.LSTM: U(-1/sqrt(hidden), 1/sqrt(hidden)).
    bound = 1.0 / (dim ** 0.5)
    w_ih = jax.random.uniform(k_wih, (4 * dim, embedding_dim), jnp.float32, -bound, bound)
    w_hh = jax.random.uniform(k_whh, (4 * dim, dim), jnp.float32, -bound, bound)
    b_ih = jax.random.uniform(k_bih, (4 * dim,), jnp.float32, -bound, bound)
    b_hh = jax.random.uniform(k_bhh, (4 * dim,), jnp.float32, -bound, bound)

    # data.smi flattened token ids (B * max_len,), as .view(-1, max_len) consumes.
    tokens = jax.random.randint(k_tok, (batch * max_len,), 0, vocab_size, jnp.int32)

    ref = _reference_forward(tokens, emb_table, w_ih, w_hh, b_ih, b_hh, max_len)

    # f32 weights: matches the PyTorch module's f32 math.
    out_f32 = smiles_encoder_forward(tokens, emb_table, w_ih, w_hh, b_ih, b_hh,
                                     max_len, recurrent_dtype=jnp.float32)
    out_f32 = jax.block_until_ready(out_f32)
    np.testing.assert_allclose(np.asarray(out_f32), np.asarray(ref),
                               rtol=5e-3, atol=5e-3)

    # bf16 weights (MXU-native on v5e/v6e/v7x), f32 accumulation / gate math / state.
    out_bf16 = smiles_encoder_forward(tokens, emb_table, w_ih, w_hh, b_ih, b_hh,
                                      max_len, recurrent_dtype=jnp.bfloat16)
    out_bf16 = jax.block_until_ready(out_bf16)
    np.testing.assert_allclose(np.asarray(out_bf16), np.asarray(ref),
                               rtol=5e-2, atol=5e-2)

    print("KERNEL_OK")
</pallas_src>

<mosaic_0001>
module attributes {stable_mosaic.version = 11 : i64} {
  func.func @lstm_last_kernel(%arg0: i32, %arg1: memref<8x8xi32, #tpu.memory_space<vmem>>, %arg2: memref<128x512xf32, #tpu.memory_space<vmem>>, %arg3: memref<128x512xf32, #tpu.memory_space<vmem>>, %arg4: memref<8x128xf32, #tpu.memory_space<vmem>>) attributes {dimension_semantics = [#tpu.dimension_semantics<parallel>], iteration_bounds = array<i64: 1>, scalar_prefetch = 0 : i64, scratch_operands = 0 : i64, tpu.core_type = #tpu.core_type<tc>, window_params = [{transform_indices = @transform_0, window_bounds = array<i64: 8, 8>}, {pipeline_mode = #tpu.pipeline_mode<synchronous>, transform_indices = @transform_1, window_bounds = array<i64: 128, 512>}, {pipeline_mode = #tpu.pipeline_mode<synchronous>, transform_indices = @transform_2, window_bounds = array<i64: 128, 512>}, {transform_indices = @transform_3, window_bounds = array<i64: 8, 128>}]} {
    %0 = tpu.iota {dimensions = array<i32: 1>} : vector<8x128xi32>
    %cst = arith.constant 0.000000e+00 : f32
    %1 = vector.broadcast %cst : f32 to vector<8x128xf32>
    %cst_0 = arith.constant 0.000000e+00 : f32
    %2 = vector.broadcast %cst_0 : f32 to vector<8x128xf32>
    %c0 = arith.constant 0 : index
    %c0_1 = arith.constant 0 : index
    %3 = vector.load %arg1[%c0, %c0_1] : memref<8x8xi32, #tpu.memory_space<vmem>>, vector<8x1xi32>
    %4 = vector.broadcast %3 : vector<8x1xi32> to vector<8x128xi32>
    %5 = arith.cmpi eq, %4, %0 : vector<8x128xi32>
    %6 = arith.extui %5 : vector<8x128xi1> to vector<8x128xi32>
    %7 = arith.sitofp %6 : vector<8x128xi32> to vector<8x128xf32>
    %c0_2 = arith.constant 0 : index
    %c0_3 = arith.constant 0 : index
    %8 = vector.load %arg2[%c0_2, %c0_3] : memref<128x512xf32, #tpu.memory_space<vmem>>, vector<128x128xf32>
    %cst_4 = arith.constant dense<0.000000e+00> : vector<8x128xf32>
    %9 = tpu.matmul %7, %8, %cst_4 {dimension_numbers = #tpu.dot_dimension_numbers<[1], [0], [0], [1], [0, 0, 1, 1], [], []>} : vector<8x128xf32>, vector<128x128xf32>, vector<8x128xf32> -> vector<8x128xf32>
    %c0_5 = arith.constant 0 : index
    %c0_6 = arith.constant 0 : index
    %10 = vector.load %arg3[%c0_5, %c0_6] : memref<128x512xf32, #tpu.memory_space<vmem>>, vector<128x128xf32>
    %cst_7 = arith.constant dense<0.000000e+00> : vector<8x128xf32>
    %11 = tpu.matmul %1, %10, %cst_7 {dimension_numbers = #tpu.dot_dimension_numbers<[1], [0], [0], [1], [0, 0, 1, 1], [], []>} : vector<8x128xf32>, vector<128x128xf32>, vector<8x128xf32> -> vector<8x128xf32>
    %12 = arith.addf %9, %11 : vector<8x128xf32>
    %cst_8 = arith.constant 5.000000e-01 : f32
    %13 = vector.broadcast %cst_8 : f32 to vector<8x128xf32>
    %14 = arith.mulf %13, %12 : vector<8x128xf32>
    %15 = math.tanh %14 : vector<8x128xf32>
    %cst_9 = arith.constant 5.000000e-01 : f32
    %16 = vector.broadcast %cst_9 : f32 to vector<8x128xf32>
    %17 = arith.mulf %16, %15 : vector<8x128xf32>
    %cst_10 = arith.constant 5.000000e-01 : f32
    %18 = vector.broadcast %cst_10 : f32 to vector<8x128xf32>
    %19 = arith.addf %17, %18 : vector<8x128xf32>
    %c0_11 = arith.constant 0 : index
    %c256 = arith.constant 256 : index
    %20 = vector.load %arg2[%c0_11, %c256] : memref<128x512xf32, #tpu.memory_space<vmem>>, vector<128x128xf32>
    %cst_12 = arith.constant dense<0.000000e+00> : vector<8x128xf32>
    %21 = tpu.matmul %7, %20, %cst_12 {dimension_numbers = #tpu.dot_dimension_numbers<[1], [0], [0], [1], [0, 0, 1, 1], [], []>} : vector<8x128xf32>, vector<128x128xf32>, vector<8x128xf32> -> vector<8x128xf32>
    %c0_13 = arith.constant 0 : index
    %c256_14 = arith.constant 256 : index
    %22 = vector.load %arg3[%c0_13, %c256_14] : memref<128x512xf32, #tpu.memory_space<vmem>>, vector<128x128xf32>
    %cst_15 = arith.constant dense<0.000000e+00> : vector<8x128xf32>
    %23 = tpu.matmul %1, %22, %cst_15 {dimension_numbers = #tpu.dot_dimension_numbers<[1], [0], [0], [1], [0, 0, 1, 1], [], []>} : vector<8x128xf32>, vector<128x128xf32>, vector<8x128xf32> -> vector<8x128xf32>
    %24 = arith.addf %21, %23 : vector<8x128xf32>
    %25 = math.tanh %24 : vector<8x128xf32>
    %26 = arith.mulf %19, %25 : vector<8x128xf32>
    %c0_16 = arith.constant 0 : index
    %c128 = arith.constant 128 : index
    %27 = vector.load %arg2[%c0_16, %c128] : memref<128x512xf32, #tpu.memory_space<vmem>>, vector<128x128xf32>
    %cst_17 = arith.constant dense<0.000000e+00> : vector<8x128xf32>
    %28 = tpu.matmul %7, %27, %cst_17 {dimension_numbers = #tpu.dot_dimension_numbers<[1], [0], [0], [1], [0, 0, 1, 1], [], []>} : vector<8x128xf32>, vector<128x128xf32>, vector<8x128xf32> -> vector<8x128xf32>
    %c0_18 = arith.constant 0 : index
    %c128_19 = arith.constant 128 : index
    %29 = vector.load %arg3[%c0_18, %c128_19] : memref<128x512xf32, #tpu.memory_space<vmem>>, vector<128x128xf32>
    %cst_20 = arith.constant dense<0.000000e+00> : vector<8x128xf32>
    %30 = tpu.matmul %1, %29, %cst_20 {dimension_numbers = #tpu.dot_dimension_numbers<[1], [0], [0], [1], [0, 0, 1, 1], [], []>} : vector<8x128xf32>, vector<128x128xf32>, vector<8x128xf32> -> vector<8x128xf32>
    %31 = arith.addf %28, %30 : vector<8x128xf32>
    %cst_21 = arith.constant 5.000000e-01 : f32
    %32 = vector.broadcast %cst_21 : f32 to vector<8x128xf32>
    %33 = arith.mulf %32, %31 : vector<8x128xf32>
    %34 = math.tanh %33 : vector<8x128xf32>
    %cst_22 = arith.constant 5.000000e-01 : f32
    %35 = vector.broadcast %cst_22 : f32 to vector<8x128xf32>
    %36 = arith.mulf %35, %34 : vector<8x128xf32>
    %cst_23 = arith.constant 5.000000e-01 : f32
    %37 = vector.broadcast %cst_23 : f32 to vector<8x128xf32>
    %38 = arith.addf %36, %37 : vector<8x128xf32>
    %39 = arith.mulf %38, %2 : vector<8x128xf32>
    %40 = arith.addf %39, %26 : vector<8x128xf32>
    %c0_24 = arith.constant 0 : index
    %c384 = arith.constant 384 : index
    %41 = vector.load %arg2[%c0_24, %c384] : memref<128x512xf32, #tpu.memory_space<vmem>>, vector<128x128xf32>
    %cst_25 = arith.constant dense<0.000000e+00> : vector<8x128xf32>
    %42 = tpu.matmul %7, %41, %cst_25 {dimension_numbers = #tpu.dot_dimension_numbers<[1], [0], [0], [1], [0, 0, 1, 1], [], []>} : vector<8x128xf32>, vector<128x128xf32>, vector<8x128xf32> -> vector<8x128xf32>
    %c0_26 = arith.constant 0 : index
    %c384_27 = arith.constant 384 : index
    %43 = vector.load %arg3[%c0_26, %c384_27] : memref<128x512xf32, #tpu.memory_space<vmem>>, vector<128x128xf32>
    %cst_28 = arith.constant dense<0.000000e+00> : vector<8x128xf32>
    %44 = tpu.matmul %1, %43, %cst_28 {dimension_numbers = #tpu.dot_dimension_numbers<[1], [0], [0], [1], [0, 0, 1, 1], [], []>} : vector<8x128xf32>, vector<128x128xf32>, vector<8x128xf32> -> vector<8x128xf32>
    %45 = arith.addf %42, %44 : vector<8x128xf32>
    %cst_29 = arith.constant 5.000000e-01 : f32
    %46 = vector.broadcast %cst_29 : f32 to vector<8x128xf32>
    %47 = arith.mulf %46, %45 : vector<8x128xf32>
    %48 = math.tanh %47 : vector<8x128xf32>
    %cst_30 = arith.constant 5.000000e-01 : f32
    %49 = vector.broadcast %cst_30 : f32 to vector<8x128xf32>
    %50 = arith.mulf %49, %48 : vector<8x128xf32>
    %cst_31 = arith.constant 5.000000e-01 : f32
    %51 = vector.broadcast %cst_31 : f32 to vector<8x128xf32>
    %52 = arith.addf %50, %51 : vector<8x128xf32>
    %53 = math.tanh %40 : vector<8x128xf32>
    %54 = arith.mulf %52, %53 : vector<8x128xf32>
    %c0_32 = arith.constant 0 : index
    %c1 = arith.constant 1 : index
    %55 = vector.load %arg1[%c0_32, %c1] : memref<8x8xi32, #tpu.memory_space<vmem>>, vector<8x1xi32>
    %56 = vector.broadcast %55 : vector<8x1xi32> to vector<8x128xi32>
    %57 = arith.cmpi eq, %56, %0 : vector<8x128xi32>
    %58 = arith.extui %57 : vector<8x128xi1> to vector<8x128xi32>
    %59 = arith.sitofp %58 : vector<8x128xi32> to vector<8x128xf32>
    %c0_33 = arith.constant 0 : index
    %c0_34 = arith.constant 0 : index
    %60 = vector.load %arg2[%c0_33, %c0_34] : memref<128x512xf32, #tpu.memory_space<vmem>>, vector<128x128xf32>
    %cst_35 = arith.constant dense<0.000000e+00> : vector<8x128xf32>
    %61 = tpu.matmul %59, %60, %cst_35 {dimension_numbers = #tpu.dot_dimension_numbers<[1], [0], [0], [1], [0, 0, 1, 1], [], []>} : vector<8x128xf32>, vector<128x128xf32>, vector<8x128xf32> -> vector<8x128xf32>
    %c0_36 = arith.constant 0 : index
    %c0_37 = arith.constant 0 : index
    %62 = vector.load %arg3[%c0_36, %c0_37] : memref<128x512xf32, #tpu.memory_space<vmem>>, vector<128x128xf32>
    %cst_38 = arith.constant dense<0.000000e+00> : vector<8x128xf32>
    %63 = tpu.matmul %54, %62, %cst_38 {dimension_numbers = #tpu.dot_dimension_numbers<[1], [0], [0], [1], [0, 0, 1, 1], [], []>} : vector<8x128xf32>, vector<128x128xf32>, vector<8x128xf32> -> vector<8x128xf32>
    %64 = arith.addf %61, %63 : vector<8x128xf32>
    %cst_39 = arith.constant 5.000000e-01 : f32
    %65 = vector.broadcast %cst_39 : f32 to vector<8x128xf32>
    %66 = arith.mulf %65, %64 : vector<8x128xf32>
    %67 = math.tanh %66 : vector<8x128xf32>
    %cst_40 = arith.constant 5.000000e-01 : f32
    %68 = vector.broadcast %cst_40 : f32 to vector<8x128xf32>
    %69 = arith.mulf %68, %67 : vector<8x128xf32>
    %cst_41 = arith.constant 5.000000e-01 : f32
    %70 = vector.broadcast %cst_41 : f32 to vector<8x128xf32>
    %71 = arith.addf %69, %70 : vector<8x128xf32>
    %c0_42 = arith.constant 0 : index
    %c256_43 = arith.constant 256 : index
    %72 = vector.load %arg2[%c0_42, %c256_43] : memref<128x512xf32, #tpu.memory_space<vmem>>, vector<128x128xf32>
    %cst_44 = arith.constant dense<0.000000e+00> : vector<8x128xf32>
    %73 = tpu.matmul %59, %72, %cst_44 {dimension_numbers = #tpu.dot_dimension_numbers<[1], [0], [0], [1], [0, 0, 1, 1], [], []>} : vector<8x128xf32>, vector<128x128xf32>, vector<8x128xf32> -> vector<8x128xf32>
    %c0_45 = arith.constant 0 : index
    %c256_46 = arith.constant 256 : index
    %74 = vector.load %arg3[%c0_45, %c256_46] : memref<128x512xf32, #tpu.memory_space<vmem>>, vector<128x128xf32>
    %cst_47 = arith.constant dense<0.000000e+00> : vector<8x128xf32>
    %75 = tpu.matmul %54, %74, %cst_47 {dimension_numbers = #tpu.dot_dimension_numbers<[1], [0], [0], [1], [0, 0, 1, 1], [], []>} : vector<8x128xf32>, vector<128x128xf32>, vector<8x128xf32> -> vector<8x128xf32>
    %76 = arith.addf %73, %75 : vector<8x128xf32>
    %77 = math.tanh %76 : vector<8x128xf32>
    %78 = arith.mulf %71, %77 : vector<8x128xf32>
    %c0_48 = arith.constant 0 : index
    %c128_49 = arith.constant 128 : index
    %79 = vector.load %arg2[%c0_48, %c128_49] : memref<128x512xf32, #tpu.memory_space<vmem>>, vector<128x128xf32>
    %cst_50 = arith.constant dense<0.000000e+00> : vector<8x128xf32>
    %80 = tpu.matmul %59, %79, %cst_50 {dimension_numbers = #tpu.dot_dimension_numbers<[1], [0], [0], [1], [0, 0, 1, 1], [], []>} : vector<8x128xf32>, vector<128x128xf32>, vector<8x128xf32> -> vector<8x128xf32>
    %c0_51 = arith.constant 0 : index
    %c128_52 = arith.constant 128 : index
    %81 = vector.load %arg3[%c0_51, %c128_52] : memref<128x512xf32, #tpu.memory_space<vmem>>, vector<128x128xf32>
    %cst_53 = arith.constant dense<0.000000e+00> : vector<8x128xf32>
    %82 = tpu.matmul %54, %81, %cst_53 {dimension_numbers = #tpu.dot_dimension_numbers<[1], [0], [0], [1], [0, 0, 1, 1], [], []>} : vector<8x128xf32>, vector<128x128xf32>, vector<8x128xf32> -> vector<8x128xf32>
    %83 = arith.addf %80, %82 : vector<8x128xf32>
    %cst_54 = arith.constant 5.000000e-01 : f32
    %84 = vector.broadcast %cst_54 : f32 to vector<8x128xf32>
    %85 = arith.mulf %84, %83 : vector<8x128xf32>
    %86 = math.tanh %85 : vector<8x128xf32>
    %cst_55 = arith.constant 5.000000e-01 : f32
    %87 = vector.broadcast %cst_55 : f32 to vector<8x128xf32>
    %88 = arith.mulf %87, %86 : vector<8x128xf32>
    %cst_56 = arith.constant 5.000000e-01 : f32
    %89 = vector.broadcast %cst_56 : f32 to vector<8x128xf32>
    %90 = arith.addf %88, %89 : vector<8x128xf32>
    %91 = arith.mulf %90, %40 : vector<8x128xf32>
    %92 = arith.addf %91, %78 : vector<8x128xf32>
    %c0_57 = arith.constant 0 : index
    %c384_58 = arith.constant 384 : index
    %93 = vector.load %arg2[%c0_57, %c384_58] : memref<128x512xf32, #tpu.memory_space<vmem>>, vector<128x128xf32>
    %cst_59 = arith.constant dense<0.000000e+00> : vector<8x128xf32>
    %94 = tpu.matmul %59, %93, %cst_59 {dimension_numbers = #tpu.dot_dimension_numbers<[1], [0], [0], [1], [0, 0, 1, 1], [], []>} : vector<8x128xf32>, vector<128x128xf32>, vector<8x128xf32> -> vector<8x128xf32>
    %c0_60 = arith.constant 0 : index
    %c384_61 = arith.constant 384 : index
    %95 = vector.load %arg3[%c0_60, %c384_61] : memref<128x512xf32, #tpu.memory_space<vmem>>, vector<128x128xf32>
    %cst_62 = arith.constant dense<0.000000e+00> : vector<8x128xf32>
    %96 = tpu.matmul %54, %95, %cst_62 {dimension_numbers = #tpu.dot_dimension_numbers<[1], [0], [0], [1], [0, 0, 1, 1], [], []>} : vector<8x128xf32>, vector<128x128xf32>, vector<8x128xf32> -> vector<8x128xf32>
    %97 = arith.addf %94, %96 : vector<8x128xf32>
    %cst_63 = arith.constant 5.000000e-01 : f32
    %98 = vector.broadcast %cst_63 : f32 to vector<8x128xf32>
    %99 = arith.mulf %98, %97 : vector<8x128xf32>
    %100 = math.tanh %99 : vector<8x128xf32>
    %cst_64 = arith.constant 5.000000e-01 : f32
    %101 = vector.broadcast %cst_64 : f32 to vector<8x128xf32>
    %102 = arith.mulf %101, %100 : vector<8x128xf32>
    %cst_65 = arith.constant 5.000000e-01 : f32
    %103 = vector.broadcast %cst_65 : f32 to vector<8x128xf32>
    %104 = arith.addf %102, %103 : vector<8x128xf32>
    %105 = math.tanh %92 : vector<8x128xf32>
    %106 = arith.mulf %104, %105 : vector<8x128xf32>
    %c0_66 = arith.constant 0 : index
    %c2 = arith.constant 2 : index
    %107 = vector.load %arg1[%c0_66, %c2] : memref<8x8xi32, #tpu.memory_space<vmem>>, vector<8x1xi32>
    %108 = vector.broadcast %107 : vector<8x1xi32> to vector<8x128xi32>
    %109 = arith.cmpi eq, %108, %0 : vector<8x128xi32>
    %110 = arith.extui %109 : vector<8x128xi1> to vector<8x128xi32>
    %111 = arith.sitofp %110 : vector<8x128xi32> to vector<8x128xf32>
    %c0_67 = arith.constant 0 : index
    %c0_68 = arith.constant 0 : index
    %112 = vector.load %arg2[%c0_67, %c0_68] : memref<128x512xf32, #tpu.memory_space<vmem>>, vector<128x128xf32>
    %cst_69 = arith.constant dense<0.000000e+00> : vector<8x128xf32>
    %113 = tpu.matmul %111, %112, %cst_69 {dimension_numbers = #tpu.dot_dimension_numbers<[1], [0], [0], [1], [0, 0, 1, 1], [], []>} : vector<8x128xf32>, vector<128x128xf32>, vector<8x128xf32> -> vector<8x128xf32>
    %c0_70 = arith.constant 0 : index
    %c0_71 = arith.constant 0 : index
    %114 = vector.load %arg3[%c0_70, %c0_71] : memref<128x512xf32, #tpu.memory_space<vmem>>, vector<128x128xf32>
    %cst_72 = arith.constant dense<0.000000e+00> : vector<8x128xf32>
    %115 = tpu.matmul %106, %114, %cst_72 {dimension_numbers = #tpu.dot_dimension_numbers<[1], [0], [0], [1], [0, 0, 1, 1], [], []>} : vector<8x128xf32>, vector<128x128xf32>, vector<8x128xf32> -> vector<8x128xf32>
    %116 = arith.addf %113, %115 : vector<8x128xf32>
    %cst_73 = arith.constant 5.000000e-01 : f32
    %117 = vector.broadcast %cst_73 : f32 to vector<8x128xf32>
    %118 = arith.mulf %117, %116 : vector<8x128xf32>
    %119 = math.tanh %118 : vector<8x128xf32>
    %cst_74 = arith.constant 5.000000e-01 : f32
    %120 = vector.broadcast %cst_74 : f32 to vector<8x128xf32>
    %121 = arith.mulf %120, %119 : vector<8x128xf32>
    %cst_75 = arith.constant 5.000000e-01 : f32
    %122 = vector.broadcast %cst_75 : f32 to vector<8x128xf32>
    %123 = arith.addf %121, %122 : vector<8x128xf32>
    %c0_76 = arith.constant 0 : index
    %c256_77 = arith.constant 256 : index
    %124 = vector.load %arg2[%c0_76, %c256_77] : memref<128x512xf32, #tpu.memory_space<vmem>>, vector<128x128xf32>
    %cst_78 = arith.constant dense<0.000000e+00> : vector<8x128xf32>
    %125 = tpu.matmul %111, %124, %cst_78 {dimension_numbers = #tpu.dot_dimension_numbers<[1], [0], [0], [1], [0, 0, 1, 1], [], []>} : vector<8x128xf32>, vector<128x128xf32>, vector<8x128xf32> -> vector<8x128xf32>
    %c0_79 = arith.constant 0 : index
    %c256_80 = arith.constant 256 : index
    %126 = vector.load %arg3[%c0_79, %c256_80] : memref<128x512xf32, #tpu.memory_space<vmem>>, vector<128x128xf32>
    %cst_81 = arith.constant dense<0.000000e+00> : vector<8x128xf32>
    %127 = tpu.matmul %106, %126, %cst_81 {dimension_numbers = #tpu.dot_dimension_numbers<[1], [0], [0], [1], [0, 0, 1, 1], [], []>} : vector<8x128xf32>, vector<128x128xf32>, vector<8x128xf32> -> vector<8x128xf32>
    %128 = arith.addf %125, %127 : vector<8x128xf32>
    %129 = math.tanh %128 : vector<8x128xf32>
    %130 = arith.mulf %123, %129 : vector<8x128xf32>
    %c0_82 = arith.constant 0 : index
    %c128_83 = arith.constant 128 : index
    %131 = vector.load %arg2[%c0_82, %c128_83] : memref<128x512xf32, #tpu.memory_space<vmem>>, vector<128x128xf32>
    %cst_84 = arith.constant dense<0.000000e+00> : vector<8x128xf32>
    %132 = tpu.matmul %111, %131, %cst_84 {dimension_numbers = #tpu.dot_dimension_numbers<[1], [0], [0], [1], [0, 0, 1, 1], [], []>} : vector<8x128xf32>, vector<128x128xf32>, vector<8x128xf32> -> vector<8x128xf32>
    %c0_85 = arith.constant 0 : index
    %c128_86 = arith.constant 128 : index
    %133 = vector.load %arg3[%c0_85, %c128_86] : memref<128x512xf32, #tpu.memory_space<vmem>>, vector<128x128xf32>
    %cst_87 = arith.constant dense<0.000000e+00> : vector<8x128xf32>
    %134 = tpu.matmul %106, %133, %cst_87 {dimension_numbers = #tpu.dot_dimension_numbers<[1], [0], [0], [1], [0, 0, 1, 1], [], []>} : vector<8x128xf32>, vector<128x128xf32>, vector<8x128xf32> -> vector<8x128xf32>
    %135 = arith.addf %132, %134 : vector<8x128xf32>
    %cst_88 = arith.constant 5.000000e-01 : f32
    %136 = vector.broadcast %cst_88 : f32 to vector<8x128xf32>
    %137 = arith.mulf %136, %135 : vector<8x128xf32>
    %138 = math.tanh %137 : vector<8x128xf32>
    %cst_89 = arith.constant 5.000000e-01 : f32
    %139 = vector.broadcast %cst_89 : f32 to vector<8x128xf32>
    %140 = arith.mulf %139, %138 : vector<8x128xf32>
    %cst_90 = arith.constant 5.000000e-01 : f32
    %141 = vector.broadcast %cst_90 : f32 to vector<8x128xf32>
    %142 = arith.addf %140, %141 : vector<8x128xf32>
    %143 = arith.mulf %142, %92 : vector<8x128xf32>
    %144 = arith.addf %143, %130 : vector<8x128xf32>
    %c0_91 = arith.constant 0 : index
    %c384_92 = arith.constant 384 : index
    %145 = vector.load %arg2[%c0_91, %c384_92] : memref<128x512xf32, #tpu.memory_space<vmem>>, vector<128x128xf32>
    %cst_93 = arith.constant dense<0.000000e+00> : vector<8x128xf32>
    %146 = tpu.matmul %111, %145, %cst_93 {dimension_numbers = #tpu.dot_dimension_numbers<[1], [0], [0], [1], [0, 0, 1, 1], [], []>} : vector<8x128xf32>, vector<128x128xf32>, vector<8x128xf32> -> vector<8x128xf32>
    %c0_94 = arith.constant 0 : index
    %c384_95 = arith.constant 384 : index
    %147 = vector.load %arg3[%c0_94, %c384_95] : memref<128x512xf32, #tpu.memory_space<vmem>>, vector<128x128xf32>
    %cst_96 = arith.constant dense<0.000000e+00> : vector<8x128xf32>
    %148 = tpu.matmul %106, %147, %cst_96 {dimension_numbers = #tpu.dot_dimension_numbers<[1], [0], [0], [1], [0, 0, 1, 1], [], []>} : vector<8x128xf32>, vector<128x128xf32>, vector<8x128xf32> -> vector<8x128xf32>
    %149 = arith.addf %146, %148 : vector<8x128xf32>
    %cst_97 = arith.constant 5.000000e-01 : f32
    %150 = vector.broadcast %cst_97 : f32 to vector<8x128xf32>
    %151 = arith.mulf %150, %149 : vector<8x128xf32>
    %152 = math.tanh %151 : vector<8x128xf32>
    %cst_98 = arith.constant 5.000000e-01 : f32
    %153 = vector.broadcast %cst_98 : f32 to vector<8x128xf32>
    %154 = arith.mulf %153, %152 : vector<8x128xf32>
    %cst_99 = arith.constant 5.000000e-01 : f32
    %155 = vector.broadcast %cst_99 : f32 to vector<8x128xf32>
    %156 = arith.addf %154, %155 : vector<8x128xf32>
    %157 = math.tanh %144 : vector<8x128xf32>
    %158 = arith.mulf %156, %157 : vector<8x128xf32>
    %c0_100 = arith.constant 0 : index
    %c3 = arith.constant 3 : index
    %159 = vector.load %arg1[%c0_100, %c3] : memref<8x8xi32, #tpu.memory_space<vmem>>, vector<8x1xi32>
    %160 = vector.broadcast %159 : vector<8x1xi32> to vector<8x128xi32>
    %161 = arith.cmpi eq, %160, %0 : vector<8x128xi32>
    %162 = arith.extui %161 : vector<8x128xi1> to vector<8x128xi32>
    %163 = arith.sitofp %162 : vector<8x128xi32> to vector<8x128xf32>
    %c0_101 = arith.constant 0 : index
    %c0_102 = arith.constant 0 : index
    %164 = vector.load %arg2[%c0_101, %c0_102] : memref<128x512xf32, #tpu.memory_space<vmem>>, vector<128x128xf32>
    %cst_103 = arith.constant dense<0.000000e+00> : vector<8x128xf32>
    %165 = tpu.matmul %163, %164, %cst_103 {dimension_numbers = #tpu.dot_dimension_numbers<[1], [0], [0], [1], [0, 0, 1, 1], [], []>} : vector<8x128xf32>, vector<128x128xf32>, vector<8x128xf32> -> vector<8x128xf32>
    %c0_104 = arith.constant 0 : index
    %c0_105 = arith.constant 0 : index
    %166 = vector.load %arg3[%c0_104, %c0_105] : memref<128x512xf32, #tpu.memory_space<vmem>>, vector<128x128xf32>
    %cst_106 = arith.constant dense<0.000000e+00> : vector<8x128xf32>
    %167 = tpu.matmul %158, %166, %cst_106 {dimension_numbers = #tpu.dot_dimension_numbers<[1], [0], [0], [1], [0, 0, 1, 1], [], []>} : vector<8x128xf32>, vector<128x128xf32>, vector<8x128xf32> -> vector<8x128xf32>
    %168 = arith.addf %165, %167 : vector<8x128xf32>
    %cst_107 = arith.constant 5.000000e-01 : f32
    %169 = vector.broadcast %cst_107 : f32 to vector<8x128xf32>
    %170 = arith.mulf %169, %168 : vector<8x128xf32>
    %171 = math.tanh %170 : vector<8x128xf32>
    %cst_108 = arith.constant 5.000000e-01 : f32
    %172 = vector.broadcast %cst_108 : f32 to vector<8x128xf32>
    %173 = arith.mulf %172, %171 : vector<8x128xf32>
    %cst_109 = arith.constant 5.000000e-01 : f32
    %174 = vector.broadcast %cst_109 : f32 to vector<8x128xf32>
    %175 = arith.addf %173, %174 : vector<8x128xf32>
    %c0_110 = arith.constant 0 : index
    %c256_111 = arith.constant 256 : index
    %176 = vector.load %arg2[%c0_110, %c256_111] : memref<128x512xf32, #tpu.memory_space<vmem>>, vector<128x128xf32>
    %cst_112 = arith.constant dense<0.000000e+00> : vector<8x128xf32>
    %177 = tpu.matmul %163, %176, %cst_112 {dimension_numbers = #tpu.dot_dimension_numbers<[1], [0], [0], [1], [0, 0, 1, 1], [], []>} : vector<8x128xf32>, vector<128x128xf32>, vector<8x128xf32> -> vector<8x128xf32>
    %c0_113 = arith.constant 0 : index
    %c256_114 = arith.constant 256 : index
    %178 = vector.load %arg3[%c0_113, %c256_114] : memref<128x512xf32, #tpu.memory_space<vmem>>, vector<128x128xf32>
    %cst_115 = arith.constant dense<0.000000e+00> : vector<8x128xf32>
    %179 = tpu.matmul %158, %178, %cst_115 {dimension_numbers = #tpu.dot_dimension_numbers<[1], [0], [0], [1], [0, 0, 1, 1], [], []>} : vector<8x128xf32>, vector<128x128xf32>, vector<8x128xf32> -> vector<8x128xf32>
    %180 = arith.addf %177, %179 : vector<8x128xf32>
    %181 = math.tanh %180 : vector<8x128xf32>
    %182 = arith.mulf %175, %181 : vector<8x128xf32>
    %c0_116 = arith.constant 0 : index
    %c128_117 = arith.constant 128 : index
    %183 = vector.load %arg2[%c0_116, %c128_117] : memref<128x512xf32, #tpu.memory_space<vmem>>, vector<128x128xf32>
    %cst_118 = arith.constant dense<0.000000e+00> : vector<8x128xf32>
    %184 = tpu.matmul %163, %183, %cst_118 {dimension_numbers = #tpu.dot_dimension_numbers<[1], [0], [0], [1], [0, 0, 1, 1], [], []>} : vector<8x128xf32>, vector<128x128xf32>, vector<8x128xf32> -> vector<8x128xf32>
    %c0_119 = arith.constant 0 : index
    %c128_120 = arith.constant 128 : index
    %185 = vector.load %arg3[%c0_119, %c128_120] : memref<128x512xf32, #tpu.memory_space<vmem>>, vector<128x128xf32>
    %cst_121 = arith.constant dense<0.000000e+00> : vector<8x128xf32>
    %186 = tpu.matmul %158, %185, %cst_121 {dimension_numbers = #tpu.dot_dimension_numbers<[1], [0], [0], [1], [0, 0, 1, 1], [], []>} : vector<8x128xf32>, vector<128x128xf32>, vector<8x128xf32> -> vector<8x128xf32>
    %187 = arith.addf %184, %186 : vector<8x128xf32>
    %cst_122 = arith.constant 5.000000e-01 : f32
    %188 = vector.broadcast %cst_122 : f32 to vector<8x128xf32>
    %189 = arith.mulf %188, %187 : vector<8x128xf32>
    %190 = math.tanh %189 : vector<8x128xf32>
    %cst_123 = arith.constant 5.000000e-01 : f32
    %191 = vector.broadcast %cst_123 : f32 to vector<8x128xf32>
    %192 = arith.mulf %191, %190 : vector<8x128xf32>
    %cst_124 = arith.constant 5.000000e-01 : f32
    %193 = vector.broadcast %cst_124 : f32 to vector<8x128xf32>
    %194 = arith.addf %192, %193 : vector<8x128xf32>
    %195 = arith.mulf %194, %144 : vector<8x128xf32>
    %196 = arith.addf %195, %182 : vector<8x128xf32>
    %c0_125 = arith.constant 0 : index
    %c384_126 = arith.constant 384 : index
    %197 = vector.load %arg2[%c0_125, %c384_126] : memref<128x512xf32, #tpu.memory_space<vmem>>, vector<128x128xf32>
    %cst_127 = arith.constant dense<0.000000e+00> : vector<8x128xf32>
    %198 = tpu.matmul %163, %197, %cst_127 {dimension_numbers = #tpu.dot_dimension_numbers<[1], [0], [0], [1], [0, 0, 1, 1], [], []>} : vector<8x128xf32>, vector<128x128xf32>, vector<8x128xf32> -> vector<8x128xf32>
    %c0_128 = arith.constant 0 : index
    %c384_129 = arith.constant 384 : index
    %199 = vector.load %arg3[%c0_128, %c384_129] : memref<128x512xf32, #tpu.memory_space<vmem>>, vector<128x128xf32>
    %cst_130 = arith.constant dense<0.000000e+00> : vector<8x128xf32>
    %200 = tpu.matmul %158, %199, %cst_130 {dimension_numbers = #tpu.dot_dimension_numbers<[1], [0], [0], [1], [0, 0, 1, 1], [], []>} : vector<8x128xf32>, vector<128x128xf32>, vector<8x128xf32> -> vector<8x128xf32>
    %201 = arith.addf %198, %200 : vector<8x128xf32>
    %cst_131 = arith.constant 5.000000e-01 : f32
    %202 = vector.broadcast %cst_131 : f32 to vector<8x128xf32>
    %203 = arith.mulf %202, %201 : vector<8x128xf32>
    %204 = math.tanh %203 : vector<8x128xf32>
    %cst_132 = arith.constant 5.000000e-01 : f32
    %205 = vector.broadcast %cst_132 : f32 to vector<8x128xf32>
    %206 = arith.mulf %205, %204 : vector<8x128xf32>
    %cst_133 = arith.constant 5.000000e-01 : f32
    %207 = vector.broadcast %cst_133 : f32 to vector<8x128xf32>
    %208 = arith.addf %206, %207 : vector<8x128xf32>
    %209 = math.tanh %196 : vector<8x128xf32>
    %210 = arith.mulf %208, %209 : vector<8x128xf32>
    %c0_134 = arith.constant 0 : index
    %c4 = arith.constant 4 : index
    %211 = vector.load %arg1[%c0_134, %c4] : memref<8x8xi32, #tpu.memory_space<vmem>>, vector<8x1xi32>
    %212 = vector.broadcast %211 : vector<8x1xi32> to vector<8x128xi32>
    %213 = arith.cmpi eq, %212, %0 : vector<8x128xi32>
    %214 = arith.extui %213 : vector<8x128xi1> to vector<8x128xi32>
    %215 = arith.sitofp %214 : vector<8x128xi32> to vector<8x128xf32>
    %c0_135 = arith.constant 0 : index
    %c0_136 = arith.constant 0 : index
    %216 = vector.load %arg2[%c0_135, %c0_136] : memref<128x512xf32, #tpu.memory_space<vmem>>, vector<128x128xf32>
    %cst_137 = arith.constant dense<0.000000e+00> : vector<8x128xf32>
    %217 = tpu.matmul %215, %216, %cst_137 {dimension_numbers = #tpu.dot_dimension_numbers<[1], [0], [0], [1], [0, 0, 1, 1], [], []>} : vector<8x128xf32>, vector<128x128xf32>, vector<8x128xf32> -> vector<8x128xf32>
    %c0_138 = arith.constant 0 : index
    %c0_139 = arith.constant 0 : index
    %218 = vector.load %arg3[%c0_138, %c0_139] : memref<128x512xf32, #tpu.memory_space<vmem>>, vector<128x128xf32>
    %cst_140 = arith.constant dense<0.000000e+00> : vector<8x128xf32>
    %219 = tpu.matmul %210, %218, %cst_140 {dimension_numbers = #tpu.dot_dimension_numbers<[1], [0], [0], [1], [0, 0, 1, 1], [], []>} : vector<8x128xf32>, vector<128x128xf32>, vector<8x128xf32> -> vector<8x128xf32>
    %220 = arith.addf %217, %219 : vector<8x128xf32>
    %cst_141 = arith.constant 5.000000e-01 : f32
    %221 = vector.broadcast %cst_141 : f32 to vector<8x128xf32>
    %222 = arith.mulf %221, %220 : vector<8x128xf32>
    %223 = math.tanh %222 : vector<8x128xf32>
    %cst_142 = arith.constant 5.000000e-01 : f32
    %224 = vector.broadcast %cst_142 : f32 to vector<8x128xf32>
    %225 = arith.mulf %224, %223 : vector<8x128xf32>
    %cst_143 = arith.constant 5.000000e-01 : f32
    %226 = vector.broadcast %cst_143 : f32 to vector<8x128xf32>
    %227 = arith.addf %225, %226 : vector<8x128xf32>
    %c0_144 = arith.constant 0 : index
    %c256_145 = arith.constant 256 : index
    %228 = vector.load %arg2[%c0_144, %c256_145] : memref<128x512xf32, #tpu.memory_space<vmem>>, vector<128x128xf32>
    %cst_146 = arith.constant dense<0.000000e+00> : vector<8x128xf32>
    %229 = tpu.matmul %215, %228, %cst_146 {dimension_numbers = #tpu.dot_dimension_numbers<[1], [0], [0], [1], [0, 0, 1, 1], [], []>} : vector<8x128xf32>, vector<128x128xf32>, vector<8x128xf32> -> vector<8x128xf32>
    %c0_147 = arith.constant 0 : index
    %c256_148 = arith.constant 256 : index
    %230 = vector.load %arg3[%c0_147, %c256_148] : memref<128x512xf32, #tpu.memory_space<vmem>>, vector<128x128xf32>
    %cst_149 = arith.constant dense<0.000000e+00> : vector<8x128xf32>
    %231 = tpu.matmul %210, %230, %cst_149 {dimension_numbers = #tpu.dot_dimension_numbers<[1], [0], [0], [1], [0, 0, 1, 1], [], []>} : vector<8x128xf32>, vector<128x128xf32>, vector<8x128xf32> -> vector<8x128xf32>
    %232 = arith.addf %229, %231 : vector<8x128xf32>
    %233 = math.tanh %232 : vector<8x128xf32>
    %234 = arith.mulf %227, %233 : vector<8x128xf32>
    %c0_150 = arith.constant 0 : index
    %c128_151 = arith.constant 128 : index
    %235 = vector.load %arg2[%c0_150, %c128_151] : memref<128x512xf32, #tpu.memory_space<vmem>>, vector<128x128xf32>
    %cst_152 = arith.constant dense<0.000000e+00> : vector<8x128xf32>
    %236 = tpu.matmul %215, %235, %cst_152 {dimension_numbers = #tpu.dot_dimension_numbers<[1], [0], [0], [1], [0, 0, 1, 1], [], []>} : vector<8x128xf32>, vector<128x128xf32>, vector<8x128xf32> -> vector<8x128xf32>
    %c0_153 = arith.constant 0 : index
    %c128_154 = arith.constant 128 : index
    %237 = vector.load %arg3[%c0_153, %c128_154] : memref<128x512xf32, #tpu.memory_space<vmem>>, vector<128x128xf32>
    %cst_155 = arith.constant dense<0.000000e+00> : vector<8x128xf32>
    %238 = tpu.matmul %210, %237, %cst_155 {dimension_numbers = #tpu.dot_dimension_numbers<[1], [0], [0], [1], [0, 0, 1, 1], [], []>} : vector<8x128xf32>, vector<128x128xf32>, vector<8x128xf32> -> vector<8x128xf32>
    %239 = arith.addf %236, %238 : vector<8x128xf32>
    %cst_156 = arith.constant 5.000000e-01 : f32
    %240 = vector.broadcast %cst_156 : f32 to vector<8x128xf32>
    %241 = arith.mulf %240, %239 : vector<8x128xf32>
    %242 = math.tanh %241 : vector<8x128xf32>
    %cst_157 = arith.constant 5.000000e-01 : f32
    %243 = vector.broadcast %cst_157 : f32 to vector<8x128xf32>
    %244 = arith.mulf %243, %242 : vector<8x128xf32>
    %cst_158 = arith.constant 5.000000e-01 : f32
    %245 = vector.broadcast %cst_158 : f32 to vector<8x128xf32>
    %246 = arith.addf %244, %245 : vector<8x128xf32>
    %247 = arith.mulf %246, %196 : vector<8x128xf32>
    %248 = arith.addf %247, %234 : vector<8x128xf32>
    %c0_159 = arith.constant 0 : index
    %c384_160 = arith.constant 384 : index
    %249 = vector.load %arg2[%c0_159, %c384_160] : memref<128x512xf32, #tpu.memory_space<vmem>>, vector<128x128xf32>
    %cst_161 = arith.constant dense<0.000000e+00> : vector<8x128xf32>
    %250 = tpu.matmul %215, %249, %cst_161 {dimension_numbers = #tpu.dot_dimension_numbers<[1], [0], [0], [1], [0, 0, 1, 1], [], []>} : vector<8x128xf32>, vector<128x128xf32>, vector<8x128xf32> -> vector<8x128xf32>
    %c0_162 = arith.constant 0 : index
    %c384_163 = arith.constant 384 : index
    %251 = vector.load %arg3[%c0_162, %c384_163] : memref<128x512xf32, #tpu.memory_space<vmem>>, vector<128x128xf32>
    %cst_164 = arith.constant dense<0.000000e+00> : vector<8x128xf32>
    %252 = tpu.matmul %210, %251, %cst_164 {dimension_numbers = #tpu.dot_dimension_numbers<[1], [0], [0], [1], [0, 0, 1, 1], [], []>} : vector<8x128xf32>, vector<128x128xf32>, vector<8x128xf32> -> vector<8x128xf32>
    %253 = arith.addf %250, %252 : vector<8x128xf32>
    %cst_165 = arith.constant 5.000000e-01 : f32
    %254 = vector.broadcast %cst_165 : f32 to vector<8x128xf32>
    %255 = arith.mulf %254, %253 : vector<8x128xf32>
    %256 = math.tanh %255 : vector<8x128xf32>
    %cst_166 = arith.constant 5.000000e-01 : f32
    %257 = vector.broadcast %cst_166 : f32 to vector<8x128xf32>
    %258 = arith.mulf %257, %256 : vector<8x128xf32>
    %cst_167 = arith.constant 5.000000e-01 : f32
    %259 = vector.broadcast %cst_167 : f32 to vector<8x128xf32>
    %260 = arith.addf %258, %259 : vector<8x128xf32>
    %261 = math.tanh %248 : vector<8x128xf32>
    %262 = arith.mulf %260, %261 : vector<8x128xf32>
    %c0_168 = arith.constant 0 : index
    %c5 = arith.constant 5 : index
    %263 = vector.load %arg1[%c0_168, %c5] : memref<8x8xi32, #tpu.memory_space<vmem>>, vector<8x1xi32>
    %264 = vector.broadcast %263 : vector<8x1xi32> to vector<8x128xi32>
    %265 = arith.cmpi eq, %264, %0 : vector<8x128xi32>
    %266 = arith.extui %265 : vector<8x128xi1> to vector<8x128xi32>
    %267 = arith.sitofp %266 : vector<8x128xi32> to vector<8x128xf32>
    %c0_169 = arith.constant 0 : index
    %c0_170 = arith.constant 0 : index
    %268 = vector.load %arg2[%c0_169, %c0_170] : memref<128x512xf32, #tpu.memory_space<vmem>>, vector<128x128xf32>
    %cst_171 = arith.constant dense<0.000000e+00> : vector<8x128xf32>
    %269 = tpu.matmul %267, %268, %cst_171 {dimension_numbers = #tpu.dot_dimension_numbers<[1], [0], [0], [1], [0, 0, 1, 1], [], []>} : vector<8x128xf32>, vector<128x128xf32>, vector<8x128xf32> -> vector<8x128xf32>
    %c0_172 = arith.constant 0 : index
    %c0_173 = arith.constant 0 : index
    %270 = vector.load %arg3[%c0_172, %c0_173] : memref<128x512xf32, #tpu.memory_space<vmem>>, vector<128x128xf32>
    %cst_174 = arith.constant dense<0.000000e+00> : vector<8x128xf32>
    %271 = tpu.matmul %262, %270, %cst_174 {dimension_numbers = #tpu.dot_dimension_numbers<[1], [0], [0], [1], [0, 0, 1, 1], [], []>} : vector<8x128xf32>, vector<128x128xf32>, vector<8x128xf32> -> vector<8x128xf32>
    %272 = arith.addf %269, %271 : vector<8x128xf32>
    %cst_175 = arith.constant 5.000000e-01 : f32
    %273 = vector.broadcast %cst_175 : f32 to vector<8x128xf32>
    %274 = arith.mulf %273, %272 : vector<8x128xf32>
    %275 = math.tanh %274 : vector<8x128xf32>
    %cst_176 = arith.constant 5.000000e-01 : f32
    %276 = vector.broadcast %cst_176 : f32 to vector<8x128xf32>
    %277 = arith.mulf %276, %275 : vector<8x128xf32>
    %cst_177 = arith.constant 5.000000e-01 : f32
    %278 = vector.broadcast %cst_177 : f32 to vector<8x128xf32>
    %279 = arith.addf %277, %278 : vector<8x128xf32>
    %c0_178 = arith.constant 0 : index
    %c256_179 = arith.constant 256 : index
    %280 = vector.load %arg2[%c0_178, %c256_179] : memref<128x512xf32, #tpu.memory_space<vmem>>, vector<128x128xf32>
    %cst_180 = arith.constant dense<0.000000e+00> : vector<8x128xf32>
    %281 = tpu.matmul %267, %280, %cst_180 {dimension_numbers = #tpu.dot_dimension_numbers<[1], [0], [0], [1], [0, 0, 1, 1], [], []>} : vector<8x128xf32>, vector<128x128xf32>, vector<8x128xf32> -> vector<8x128xf32>
    %c0_181 = arith.constant 0 : index
    %c256_182 = arith.constant 256 : index
    %282 = vector.load %arg3[%c0_181, %c256_182] : memref<128x512xf32, #tpu.memory_space<vmem>>, vector<128x128xf32>
    %cst_183 = arith.constant dense<0.000000e+00> : vector<8x128xf32>
    %283 = tpu.matmul %262, %282, %cst_183 {dimension_numbers = #tpu.dot_dimension_numbers<[1], [0], [0], [1], [0, 0, 1, 1], [], []>} : vector<8x128xf32>, vector<128x128xf32>, vector<8x128xf32> -> vector<8x128xf32>
    %284 = arith.addf %281, %283 : vector<8x128xf32>
    %285 = math.tanh %284 : vector<8x128xf32>
    %286 = arith.mulf %279, %285 : vector<8x128xf32>
    %c0_184 = arith.constant 0 : index
    %c128_185 = arith.constant 128 : index
    %287 = vector.load %arg2[%c0_184, %c128_185] : memref<128x512xf32, #tpu.memory_space<vmem>>, vector<128x128xf32>
    %cst_186 = arith.constant dense<0.000000e+00> : vector<8x128xf32>
    %288 = tpu.matmul %267, %287, %cst_186 {dimension_numbers = #tpu.dot_dimension_numbers<[1], [0], [0], [1], [0, 0, 1, 1], [], []>} : vector<8x128xf32>, vector<128x128xf32>, vector<8x128xf32> -> vector<8x128xf32>
    %c0_187 = arith.constant 0 : index
    %c128_188 = arith.constant 128 : index
    %289 = vector.load %arg3[%c0_187, %c128_188] : memref<128x512xf32, #tpu.memory_space<vmem>>, vector<128x128xf32>
    %cst_189 = arith.constant dense<0.000000e+00> : vector<8x128xf32>
    %290 = tpu.matmul %262, %289, %cst_189 {dimension_numbers = #tpu.dot_dimension_numbers<[1], [0], [0], [1], [0, 0, 1, 1], [], []>} : vector<8x128xf32>, vector<128x128xf32>, vector<8x128xf32> -> vector<8x128xf32>
    %291 = arith.addf %288, %290 : vector<8x128xf32>
    %cst_190 = arith.constant 5.000000e-01 : f32
    %292 = vector.broadcast %cst_190 : f32 to vector<8x128xf32>
    %293 = arith.mulf %292, %291 : vector<8x128xf32>
    %294 = math.tanh %293 : vector<8x128xf32>
    %cst_191 = arith.constant 5.000000e-01 : f32
    %295 = vector.broadcast %cst_191 : f32 to vector<8x128xf32>
    %296 = arith.mulf %295, %294 : vector<8x128xf32>
    %cst_192 = arith.constant 5.000000e-01 : f32
    %297 = vector.broadcast %cst_192 : f32 to vector<8x128xf32>
    %298 = arith.addf %296, %297 : vector<8x128xf32>
    %299 = arith.mulf %298, %248 : vector<8x128xf32>
    %300 = arith.addf %299, %286 : vector<8x128xf32>
    %c0_193 = arith.constant 0 : index
    %c384_194 = arith.constant 384 : index
    %301 = vector.load %arg2[%c0_193, %c384_194] : memref<128x512xf32, #tpu.memory_space<vmem>>, vector<128x128xf32>
    %cst_195 = arith.constant dense<0.000000e+00> : vector<8x128xf32>
    %302 = tpu.matmul %267, %301, %cst_195 {dimension_numbers = #tpu.dot_dimension_numbers<[1], [0], [0], [1], [0, 0, 1, 1], [], []>} : vector<8x128xf32>, vector<128x128xf32>, vector<8x128xf32> -> vector<8x128xf32>
    %c0_196 = arith.constant 0 : index
    %c384_197 = arith.constant 384 : index
    %303 = vector.load %arg3[%c0_196, %c384_197] : memref<128x512xf32, #tpu.memory_space<vmem>>, vector<128x128xf32>
    %cst_198 = arith.constant dense<0.000000e+00> : vector<8x128xf32>
    %304 = tpu.matmul %262, %303, %cst_198 {dimension_numbers = #tpu.dot_dimension_numbers<[1], [0], [0], [1], [0, 0, 1, 1], [], []>} : vector<8x128xf32>, vector<128x128xf32>, vector<8x128xf32> -> vector<8x128xf32>
    %305 = arith.addf %302, %304 : vector<8x128xf32>
    %cst_199 = arith.constant 5.000000e-01 : f32
    %306 = vector.broadcast %cst_199 : f32 to vector<8x128xf32>
    %307 = arith.mulf %306, %305 : vector<8x128xf32>
    %308 = math.tanh %307 : vector<8x128xf32>
    %cst_200 = arith.constant 5.000000e-01 : f32
    %309 = vector.broadcast %cst_200 : f32 to vector<8x128xf32>
    %310 = arith.mulf %309, %308 : vector<8x128xf32>
    %cst_201 = arith.constant 5.000000e-01 : f32
    %311 = vector.broadcast %cst_201 : f32 to vector<8x128xf32>
    %312 = arith.addf %310, %311 : vector<8x128xf32>
    %313 = math.tanh %300 : vector<8x128xf32>
    %314 = arith.mulf %312, %313 : vector<8x128xf32>
    %c0_202 = arith.constant 0 : index
    %c6 = arith.constant 6 : index
    %315 = vector.load %arg1[%c0_202, %c6] : memref<8x8xi32, #tpu.memory_space<vmem>>, vector<8x1xi32>
    %316 = vector.broadcast %315 : vector<8x1xi32> to vector<8x128xi32>
    %317 = arith.cmpi eq, %316, %0 : vector<8x128xi32>
    %318 = arith.extui %317 : vector<8x128xi1> to vector<8x128xi32>
    %319 = arith.sitofp %318 : vector<8x128xi32> to vector<8x128xf32>
    %c0_203 = arith.constant 0 : index
    %c0_204 = arith.constant 0 : index
    %320 = vector.load %arg2[%c0_203, %c0_204] : memref<128x512xf32, #tpu.memory_space<vmem>>, vector<128x128xf32>
    %cst_205 = arith.constant dense<0.000000e+00> : vector<8x128xf32>
    %321 = tpu.matmul %319, %320, %cst_205 {dimension_numbers = #tpu.dot_dimension_numbers<[1], [0], [0], [1], [0, 0, 1, 1], [], []>} : vector<8x128xf32>, vector<128x128xf32>, vector<8x128xf32> -> vector<8x128xf32>
    %c0_206 = arith.constant 0 : index
    %c0_207 = arith.constant 0 : index
    %322 = vector.load %arg3[%c0_206, %c0_207] : memref<128x512xf32, #tpu.memory_space<vmem>>, vector<128x128xf32>
    %cst_208 = arith.constant dense<0.000000e+00> : vector<8x128xf32>
    %323 = tpu.matmul %314, %322, %cst_208 {dimension_numbers = #tpu.dot_dimension_numbers<[1], [0], [0], [1], [0, 0, 1, 1], [], []>} : vector<8x128xf32>, vector<128x128xf32>, vector<8x128xf32> -> vector<8x128xf32>
    %324 = arith.addf %321, %323 : vector<8x128xf32>
    %cst_209 = arith.constant 5.000000e-01 : f32
    %325 = vector.broadcast %cst_209 : f32 to vector<8x128xf32>
    %326 = arith.mulf %325, %324 : vector<8x128xf32>
    %327 = math.tanh %326 : vector<8x128xf32>
    %cst_210 = arith.constant 5.000000e-01 : f32
    %328 = vector.broadcast %cst_210 : f32 to vector<8x128xf32>
    %329 = arith.mulf %328, %327 : vector<8x128xf32>
    %cst_211 = arith.constant 5.000000e-01 : f32
    %330 = vector.broadcast %cst_211 : f32 to vector<8x128xf32>
    %331 = arith.addf %329, %330 : vector<8x128xf32>
    %c0_212 = arith.constant 0 : index
    %c256_213 = arith.constant 256 : index
    %332 = vector.load %arg2[%c0_212, %c256_213] : memref<128x512xf32, #tpu.memory_space<vmem>>, vector<128x128xf32>
    %cst_214 = arith.constant dense<0.000000e+00> : vector<8x128xf32>
    %333 = tpu.matmul %319, %332, %cst_214 {dimension_numbers = #tpu.dot_dimension_numbers<[1], [0], [0], [1], [0, 0, 1, 1], [], []>} : vector<8x128xf32>, vector<128x128xf32>, vector<8x128xf32> -> vector<8x128xf32>
    %c0_215 = arith.constant 0 : index
    %c256_216 = arith.constant 256 : index
    %334 = vector.load %arg3[%c0_215, %c256_216] : memref<128x512xf32, #tpu.memory_space<vmem>>, vector<128x128xf32>
    %cst_217 = arith.constant dense<0.000000e+00> : vector<8x128xf32>
    %335 = tpu.matmul %314, %334, %cst_217 {dimension_numbers = #tpu.dot_dimension_numbers<[1], [0], [0], [1], [0, 0, 1, 1], [], []>} : vector<8x128xf32>, vector<128x128xf32>, vector<8x128xf32> -> vector<8x128xf32>
    %336 = arith.addf %333, %335 : vector<8x128xf32>
    %337 = math.tanh %336 : vector<8x128xf32>
    %338 = arith.mulf %331, %337 : vector<8x128xf32>
    %c0_218 = arith.constant 0 : index
    %c128_219 = arith.constant 128 : index
    %339 = vector.load %arg2[%c0_218, %c128_219] : memref<128x512xf32, #tpu.memory_space<vmem>>, vector<128x128xf32>
    %cst_220 = arith.constant dense<0.000000e+00> : vector<8x128xf32>
    %340 = tpu.matmul %319, %339, %cst_220 {dimension_numbers = #tpu.dot_dimension_numbers<[1], [0], [0], [1], [0, 0, 1, 1], [], []>} : vector<8x128xf32>, vector<128x128xf32>, vector<8x128xf32> -> vector<8x128xf32>
    %c0_221 = arith.constant 0 : index
    %c128_222 = arith.constant 128 : index
    %341 = vector.load %arg3[%c0_221, %c128_222] : memref<128x512xf32, #tpu.memory_space<vmem>>, vector<128x128xf32>
    %cst_223 = arith.constant dense<0.000000e+00> : vector<8x128xf32>
    %342 = tpu.matmul %314, %341, %cst_223 {dimension_numbers = #tpu.dot_dimension_numbers<[1], [0], [0], [1], [0, 0, 1, 1], [], []>} : vector<8x128xf32>, vector<128x128xf32>, vector<8x128xf32> -> vector<8x128xf32>
    %343 = arith.addf %340, %342 : vector<8x128xf32>
    %cst_224 = arith.constant 5.000000e-01 : f32
    %344 = vector.broadcast %cst_224 : f32 to vector<8x128xf32>
    %345 = arith.mulf %344, %343 : vector<8x128xf32>
    %346 = math.tanh %345 : vector<8x128xf32>
    %cst_225 = arith.constant 5.000000e-01 : f32
    %347 = vector.broadcast %cst_225 : f32 to vector<8x128xf32>
    %348 = arith.mulf %347, %346 : vector<8x128xf32>
    %cst_226 = arith.constant 5.000000e-01 : f32
    %349 = vector.broadcast %cst_226 : f32 to vector<8x128xf32>
    %350 = arith.addf %348, %349 : vector<8x128xf32>
    %351 = arith.mulf %350, %300 : vector<8x128xf32>
    %352 = arith.addf %351, %338 : vector<8x128xf32>
    %c0_227 = arith.constant 0 : index
    %c384_228 = arith.constant 384 : index
    %353 = vector.load %arg2[%c0_227, %c384_228] : memref<128x512xf32, #tpu.memory_space<vmem>>, vector<128x128xf32>
    %cst_229 = arith.constant dense<0.000000e+00> : vector<8x128xf32>
    %354 = tpu.matmul %319, %353, %cst_229 {dimension_numbers = #tpu.dot_dimension_numbers<[1], [0], [0], [1], [0, 0, 1, 1], [], []>} : vector<8x128xf32>, vector<128x128xf32>, vector<8x128xf32> -> vector<8x128xf32>
    %c0_230 = arith.constant 0 : index
    %c384_231 = arith.constant 384 : index
    %355 = vector.load %arg3[%c0_230, %c384_231] : memref<128x512xf32, #tpu.memory_space<vmem>>, vector<128x128xf32>
    %cst_232 = arith.constant dense<0.000000e+00> : vector<8x128xf32>
    %356 = tpu.matmul %314, %355, %cst_232 {dimension_numbers = #tpu.dot_dimension_numbers<[1], [0], [0], [1], [0, 0, 1, 1], [], []>} : vector<8x128xf32>, vector<128x128xf32>, vector<8x128xf32> -> vector<8x128xf32>
    %357 = arith.addf %354, %356 : vector<8x128xf32>
    %cst_233 = arith.constant 5.000000e-01 : f32
    %358 = vector.broadcast %cst_233 : f32 to vector<8x128xf32>
    %359 = arith.mulf %358, %357 : vector<8x128xf32>
    %360 = math.tanh %359 : vector<8x128xf32>
    %cst_234 = arith.constant 5.000000e-01 : f32
    %361 = vector.broadcast %cst_234 : f32 to vector<8x128xf32>
    %362 = arith.mulf %361, %360 : vector<8x128xf32>
    %cst_235 = arith.constant 5.000000e-01 : f32
    %363 = vector.broadcast %cst_235 : f32 to vector<8x128xf32>
    %364 = arith.addf %362, %363 : vector<8x128xf32>
    %365 = math.tanh %352 : vector<8x128xf32>
    %366 = arith.mulf %364, %365 : vector<8x128xf32>
    %c0_236 = arith.constant 0 : index
    %c7 = arith.constant 7 : index
    %367 = vector.load %arg1[%c0_236, %c7] : memref<8x8xi32, #tpu.memory_space<vmem>>, vector<8x1xi32>
    %368 = vector.broadcast %367 : vector<8x1xi32> to vector<8x128xi32>
    %369 = arith.cmpi eq, %368, %0 : vector<8x128xi32>
    %370 = arith.extui %369 : vector<8x128xi1> to vector<8x128xi32>
    %371 = arith.sitofp %370 : vector<8x128xi32> to vector<8x128xf32>
    %c0_237 = arith.constant 0 : index
    %c0_238 = arith.constant 0 : index
    %372 = vector.load %arg2[%c0_237, %c0_238] : memref<128x512xf32, #tpu.memory_space<vmem>>, vector<128x128xf32>
    %cst_239 = arith.constant dense<0.000000e+00> : vector<8x128xf32>
    %373 = tpu.matmul %371, %372, %cst_239 {dimension_numbers = #tpu.dot_dimension_numbers<[1], [0], [0], [1], [0, 0, 1, 1], [], []>} : vector<8x128xf32>, vector<128x128xf32>, vector<8x128xf32> -> vector<8x128xf32>
    %c0_240 = arith.constant 0 : index
    %c0_241 = arith.constant 0 : index
    %374 = vector.load %arg3[%c0_240, %c0_241] : memref<128x512xf32, #tpu.memory_space<vmem>>, vector<128x128xf32>
    %cst_242 = arith.constant dense<0.000000e+00> : vector<8x128xf32>
    %375 = tpu.matmul %366, %374, %cst_242 {dimension_numbers = #tpu.dot_dimension_numbers<[1], [0], [0], [1], [0, 0, 1, 1], [], []>} : vector<8x128xf32>, vector<128x128xf32>, vector<8x128xf32> -> vector<8x128xf32>
    %376 = arith.addf %373, %375 : vector<8x128xf32>
    %cst_243 = arith.constant 5.000000e-01 : f32
    %377 = vector.broadcast %cst_243 : f32 to vector<8x128xf32>
    %378 = arith.mulf %377, %376 : vector<8x128xf32>
    %379 = math.tanh %378 : vector<8x128xf32>
    %cst_244 = arith.constant 5.000000e-01 : f32
    %380 = vector.broadcast %cst_244 : f32 to vector<8x128xf32>
    %381 = arith.mulf %380, %379 : vector<8x128xf32>
    %cst_245 = arith.constant 5.000000e-01 : f32
    %382 = vector.broadcast %cst_245 : f32 to vector<8x128xf32>
    %383 = arith.addf %381, %382 : vector<8x128xf32>
    %c0_246 = arith.constant 0 : index
    %c256_247 = arith.constant 256 : index
    %384 = vector.load %arg2[%c0_246, %c256_247] : memref<128x512xf32, #tpu.memory_space<vmem>>, vector<128x128xf32>
    %cst_248 = arith.constant dense<0.000000e+00> : vector<8x128xf32>
    %385 = tpu.matmul %371, %384, %cst_248 {dimension_numbers = #tpu.dot_dimension_numbers<[1], [0], [0], [1], [0, 0, 1, 1], [], []>} : vector<8x128xf32>, vector<128x128xf32>, vector<8x128xf32> -> vector<8x128xf32>
    %c0_249 = arith.constant 0 : index
    %c256_250 = arith.constant 256 : index
    %386 = vector.load %arg3[%c0_249, %c256_250] : memref<128x512xf32, #tpu.memory_space<vmem>>, vector<128x128xf32>
    %cst_251 = arith.constant dense<0.000000e+00> : vector<8x128xf32>
    %387 = tpu.matmul %366, %386, %cst_251 {dimension_numbers = #tpu.dot_dimension_numbers<[1], [0], [0], [1], [0, 0, 1, 1], [], []>} : vector<8x128xf32>, vector<128x128xf32>, vector<8x128xf32> -> vector<8x128xf32>
    %388 = arith.addf %385, %387 : vector<8x128xf32>
    %389 = math.tanh %388 : vector<8x128xf32>
    %390 = arith.mulf %383, %389 : vector<8x128xf32>
    %c0_252 = arith.constant 0 : index
    %c128_253 = arith.constant 128 : index
    %391 = vector.load %arg2[%c0_252, %c128_253] : memref<128x512xf32, #tpu.memory_space<vmem>>, vector<128x128xf32>
    %cst_254 = arith.constant dense<0.000000e+00> : vector<8x128xf32>
    %392 = tpu.matmul %371, %391, %cst_254 {dimension_numbers = #tpu.dot_dimension_numbers<[1], [0], [0], [1], [0, 0, 1, 1], [], []>} : vector<8x128xf32>, vector<128x128xf32>, vector<8x128xf32> -> vector<8x128xf32>
    %c0_255 = arith.constant 0 : index
    %c128_256 = arith.constant 128 : index
    %393 = vector.load %arg3[%c0_255, %c128_256] : memref<128x512xf32, #tpu.memory_space<vmem>>, vector<128x128xf32>
    %cst_257 = arith.constant dense<0.000000e+00> : vector<8x128xf32>
    %394 = tpu.matmul %366, %393, %cst_257 {dimension_numbers = #tpu.dot_dimension_numbers<[1], [0], [0], [1], [0, 0, 1, 1], [], []>} : vector<8x128xf32>, vector<128x128xf32>, vector<8x128xf32> -> vector<8x128xf32>
    %395 = arith.addf %392, %394 : vector<8x128xf32>
    %cst_258 = arith.constant 5.000000e-01 : f32
    %396 = vector.broadcast %cst_258 : f32 to vector<8x128xf32>
    %397 = arith.mulf %396, %395 : vector<8x128xf32>
    %398 = math.tanh %397 : vector<8x128xf32>
    %cst_259 = arith.constant 5.000000e-01 : f32
    %399 = vector.broadcast %cst_259 : f32 to vector<8x128xf32>
    %400 = arith.mulf %399, %398 : vector<8x128xf32>
    %cst_260 = arith.constant 5.000000e-01 : f32
    %401 = vector.broadcast %cst_260 : f32 to vector<8x128xf32>
    %402 = arith.addf %400, %401 : vector<8x128xf32>
    %403 = arith.mulf %402, %352 : vector<8x128xf32>
    %404 = arith.addf %403, %390 : vector<8x128xf32>
    %c0_261 = arith.constant 0 : index
    %c384_262 = arith.constant 384 : index
    %405 = vector.load %arg2[%c0_261, %c384_262] : memref<128x512xf32, #tpu.memory_space<vmem>>, vector<128x128xf32>
    %cst_263 = arith.constant dense<0.000000e+00> : vector<8x128xf32>
    %406 = tpu.matmul %371, %405, %cst_263 {dimension_numbers = #tpu.dot_dimension_numbers<[1], [0], [0], [1], [0, 0, 1, 1], [], []>} : vector<8x128xf32>, vector<128x128xf32>, vector<8x128xf32> -> vector<8x128xf32>
    %c0_264 = arith.constant 0 : index
    %c384_265 = arith.constant 384 : index
    %407 = vector.load %arg3[%c0_264, %c384_265] : memref<128x512xf32, #tpu.memory_space<vmem>>, vector<128x128xf32>
    %cst_266 = arith.constant dense<0.000000e+00> : vector<8x128xf32>
    %408 = tpu.matmul %366, %407, %cst_266 {dimension_numbers = #tpu.dot_dimension_numbers<[1], [0], [0], [1], [0, 0, 1, 1], [], []>} : vector<8x128xf32>, vector<128x128xf32>, vector<8x128xf32> -> vector<8x128xf32>
    %409 = arith.addf %406, %408 : vector<8x128xf32>
    %cst_267 = arith.constant 5.000000e-01 : f32
    %410 = vector.broadcast %cst_267 : f32 to vector<8x128xf32>
    %411 = arith.mulf %410, %409 : vector<8x128xf32>
    %412 = math.tanh %411 : vector<8x128xf32>
    %cst_268 = arith.constant 5.000000e-01 : f32
    %413 = vector.broadcast %cst_268 : f32 to vector<8x128xf32>
    %414 = arith.mulf %413, %412 : vector<8x128xf32>
    %cst_269 = arith.constant 5.000000e-01 : f32
    %415 = vector.broadcast %cst_269 : f32 to vector<8x128xf32>
    %416 = arith.addf %414, %415 : vector<8x128xf32>
    %417 = math.tanh %404 : vector<8x128xf32>
    %418 = arith.mulf %416, %417 : vector<8x128xf32>
    %c0_270 = arith.constant 0 : index
    %c0_271 = arith.constant 0 : index
    %419 = vector.load %arg4[%c0_270, %c0_271] : memref<8x128xf32, #tpu.memory_space<vmem>>, vector<8x128xf32>
    tpu.vector_store %arg4[%c0_270, %c0_271], %418 {strides = array<i32>} : memref<8x128xf32, #tpu.memory_space<vmem>>, vector<8x128xf32>,
    return
  }
  func.func @transform_0(%arg0: i32) -> (i32, i32) {
    %c0_i32 = arith.constant 0 : i32
    %c0_i32_0 = arith.constant 0 : i32
    return %arg0, %c0_i32 : i32, i32
  }
  func.func @transform_1(%arg0: i32) -> (i32, i32) {
    %c0_i32 = arith.constant 0 : i32
    %c0_i32_0 = arith.constant 0 : i32
    %c0_i32_1 = arith.constant 0 : i32
    return %c0_i32, %c0_i32_0 : i32, i32
  }
  func.func @transform_2(%arg0: i32) -> (i32, i32) {
    %c0_i32 = arith.constant 0 : i32
    %c0_i32_0 = arith.constant 0 : i32
    %c0_i32_1 = arith.constant 0 : i32
    return %c0_i32, %c0_i32_0 : i32, i32
  }
  func.func @transform_3(%arg0: i32) -> (i32, i32) {
    %c0_i32 = arith.constant 0 : i32
    %c0_i32_0 = arith.constant 0 : i32
    return %arg0, %c0_i32 : i32, i32
  }
}

</mosaic_0001>

<bundles_post_ra>
// kernel: tpu_custom_call.1
= control target key start
LH: loop header
LB: loop body
LE: loop exit
PB: predicated region body
PF: predicated region fallthrough
CT: control target
= control target key end

     0   :  { %8 = vsyncpa [#allocation3], 0  ;;  %s11667_s0 = inlined_call_operand.hbm [shape: s32[8,8], index: 0, kind: input, shape index: {}]   ;;  %s11668_s1 = inlined_call_operand.hbm [shape: f32[128,512], index: 1, kind: input, shape index: {}]   ;;  %s11669_s2 = inlined_call_operand.hbm [shape: f32[128,512], index: 2, kind: input, shape index: {}]   ;;  %s11670_s3 = inlined_call_operand.hbm [shape: f32[8,128], index: 3, kind: output, shape index: {}]  }
   0x1   :  { %9 = vsyncpa [#allocation6], 0 }
   0x2   :  { %10 = vsyncpa [#allocation4], 0  ;;  %s10045_s12 = smov [#allocation5]   ;;  %s9951_s16 = scalar_lea.hbm %s11668_s1, 8192 }
   0x3   :  { %s26_s13 = sshll.u32 %s10045_s12, 4  ;;  %p9952_p0 = scmp.ne.s32.totalorder %s11668_s1, %s9951_s16  ;;  %s27_s13 = int_to_ptr.vmem [resolvable:$true] %s26_s13 }
   0x4   :  { %p9955_p1 = scmp.lt.u32.totalorder %s9951_s16, %s11668_s1 }
   0x6   :  { %p9957_p2 = pnand %p9955_p1, %p9952_p0 }
   0x8   :  { %9960 = shalt.err (!%p9957_p2)
}
   0x9   :  { %s9961_s21 = scalar_lea.vmem %s27_s13, 8192  ;;  %p9966_p4 = scmp.lt.s32.totalorder %s27_s13, %s27_s13 }
   0xa   :  { %p9962_p3 = scmp.ne.s32.totalorder %s27_s13, %s9961_s21  ;;  %p9967_p5 = scmp.lt.s32.totalorder %s9961_s21, %s9961_s21 }
   0xc   :  { %p9968_p6 = por %p9967_p5, %p9966_p4 }
   0xe   :  { %p9969_p7 = pnand %p9968_p6, %p9962_p3 }
  0x10   :  { %9972 = shalt.err (!%p9969_p7)
}
  0x11   :  { %s10046_s22 = smov 512   ;;  %s10047_s23 = smov 32  }
  0x12   :  { %32 = dma.hbm_to_vmem [thread:$0]  %s11668_s1, 8192, %s27_s13, [#allocation6], %s10046_s22, %s10046_s22, %s10047_s23  }
  0x13   :  { %s10048_s26 = smov [#allocation2]   ;;  %s10049_s28 = smov [#allocation7]  }
  0x14   :  { %s17_s27 = sshll.u32 %s10048_s26, 4  ;;  %s38_s29 = sshll.u32 %s10049_s28, 4  ;;  %s18_s27 = int_to_ptr.vmem [resolvable:$true] %s17_s27  ;;  %s39_s29 = int_to_ptr.vmem [resolvable:$true] %s38_s29 }
  0x15   :  { %s9973_s5 = scalar_lea.hbm %s11667_s0, 128 }
  0x16   :  { %p9974_p8 = scmp.ne.s32.totalorder %s11667_s0, %s9973_s5  ;;  %p9977_p9 = scmp.lt.u32.totalorder %s9973_s5, %s11667_s0 }
  0x18   :  { %p9979_p10 = pnand %p9977_p9, %p9974_p8 }
  0x1a   :  { %9982 = shalt.err (!%p9979_p10)
}
  0x1b   :  { %s9983_s1 = scalar_lea.vmem %s18_s27, 128  ;;  %p9988_p12 = scmp.lt.s32.totalorder %s18_s27, %s18_s27 }
  0x1c   :  { %p9984_p11 = scmp.ne.s32.totalorder %s18_s27, %s9983_s1  ;;  %p9989_p13 = scmp.lt.s32.totalorder %s9983_s1, %s9983_s1 }
  0x1e   :  { %p9990_p0 = por %p9989_p13, %p9988_p12 }
  0x20   :  { %p9991_p1 = pnand %p9990_p0, %p9984_p11 }
  0x22   :  { %9994 = shalt.err (!%p9991_p1)
}
  0x23   :  { %20 = dma.hbm_to_vmem [thread:$0]  %s11667_s0, 128, %s18_s27, [#allocation3]  }
  0x24   :  { %s9995_s14 = scalar_lea.hbm %s11669_s2, 8192 }
  0x25   :  { %p9996_p2 = scmp.ne.s32.totalorder %s11669_s2, %s9995_s14  ;;  %p9999_p3 = scmp.lt.u32.totalorder %s9995_s14, %s11669_s2 }
  0x27   :  { %p10001_p4 = pnand %p9999_p3, %p9996_p2 }
  0x29   :  { %10004 = shalt.err (!%p10001_p4)
}
  0x2a   :  { %s10005_s19 = scalar_lea.vmem %s39_s29, 8192  ;;  %p10010_p6 = scmp.lt.s32.totalorder %s39_s29, %s39_s29 }
  0x2b   :  { %p10006_p5 = scmp.ne.s32.totalorder %s39_s29, %s10005_s19  ;;  %p10011_p7 = scmp.lt.s32.totalorder %s10005_s19, %s10005_s19 }
  0x2d   :  { %p10012_p8 = por %p10011_p7, %p10010_p6 }
  0x2f   :  { %p10013_p9 = pnand %p10012_p8, %p10006_p5 }
  0x31   :  { %10016 = shalt.err (!%p10013_p9)
}
  0x32   :  { %44 = dma.hbm_to_vmem [thread:$0]  %s11669_s2, 8192, %s39_s29, [#allocation6], %s10046_s22, %s10046_s22, %s10047_s23  }
  0x33   :  { %10039 = dma.done.wait [#allocation3], 128  }
  0x34   :  { %10040 = vsyncadd [#allocation3], 4294967168 }
  0x35   :  { %10041 = dma.done.wait [#allocation6], 16384  }
  0x36   :  { %10042 = vsyncadd [#allocation6], 4294950912  ;;  %v10050_v0 = vmov 0   ;;  %v11741_v1 = vmov 0.0|0.0   ;;  %vm10052_vm0 = vmmov 0   ;;  %v11679_v2 = vmov 0.0  }
  0x37   :  { %9860 = vset.pattern.permute.xlu0 %v10050_v0  ;;  %8242 = vmatprep.subr.bf16.mxu0 %v11741_v1  ;;  %v10131_v3 = vld [vmem:[#allocation2] sm:$0xff]  ;;  %v79_v4 = vld [vmem:[#allocation7] sm:$0xff]  ;;  %v255_v7 = vld [vmem:[#allocation7 + $0x10] sm:$0xff]  ;;  %s10062_s2 = smov [#allocation8]  }
  0x38   :  { %8290 = vmatprep.subr.bf16.mxu1 %v11741_v1  ;;  %6034 = vmatprep.mubr.msk.f32.mxu0 %vm10052_vm0, %v11679_v2  ;;  %v80_v5 = vld [vmem:[#allocation7 + $0x20] sm:$0xff]  ;;  %v256_v8 = vld [vmem:[#allocation7 + $0x30] sm:$0xff]  ;;  %s4864_s21 = sshll.u32 %s10062_s2, 4  ;;  %s4865_s21 = int_to_ptr.vmem [resolvable:$true] %s4864_s21 }
  0x39   :  { %6104 = vmatprep.mubr.msk.f32.mxu1 %vm10052_vm0, %v11679_v2  ;;  %58 = vperm.xlu0 %9860, %v10131_v3   ;;  %v10134_v6 = vpack.c.bf16 %v80_v5, %v79_v4  ;;  %v81_v9 = vld [vmem:[#allocation7 + $0x40] sm:$0xff]  ;;  %v10136_v10 = vpack.c.bf16 %v256_v8, %v255_v7  ;;  %v257_v12 = vld [vmem:[#allocation7 + $0x50] sm:$0xff]  ;;  %s10017_s22 = scalar_lea.vmem %s4865_s21, 128  ;;  %p10022_p11 = scmp.lt.s32.totalorder %s4865_s21, %s4865_s21 }
  0x3a   :  { %v82_v11 = vld [vmem:[#allocation7 + $0x60] sm:$0xff]  ;;  %v258_v13 = vld [vmem:[#allocation7 + $0x70] sm:$0xff]  ;;  %p10018_p10 = scmp.ne.s32.totalorder %s4865_s21, %s10017_s22  ;;  %p10023_p12 = scmp.lt.s32.totalorder %s10017_s22, %s10017_s22 }
  0x3b   :  { %11745 = vst [vmem:[#allocation12_spill] sm:$0xff] %v10134_v6  ;;  %11746 = vst [vmem:[#allocation13_spill] sm:$0xff] %v10136_v10  ;;  %8244 = vmatpush3.bf16.msra.mxu0 %v10134_v6  ;;  %v10139_v14 = vpack.c.bf16 %v82_v11, %v81_v9  ;;  %8292 = vmatpush3.bf16.msra.mxu1 %v10136_v10  ;;  %v10143_v15 = vpack.c.bf16 %v258_v13, %v257_v12  ;;  %v83_v16 = vld [vmem:[#allocation7 + $0x80] sm:$0xff]  ;;  %v259_v18 = vld [vmem:[#allocation7 + $0x90] sm:$0xff] }
  0x3c   :  { %8245 = vmatprep.subr.bf16.mxu0 %v11741_v1  ;;  %v84_v17 = vld [vmem:[#allocation7 + $0xa0] sm:$0xff]  ;;  %8293 = vmatprep.subr.bf16.mxu1 %v11741_v1  ;;  %v260_v19 = vld [vmem:[#allocation7 + $0xb0] sm:$0xff]  ;;  %p10024_p13 = por %p10023_p12, %p10022_p11 }
  0x3d   :  { %11747 = vst [vmem:[#allocation14_spill] sm:$0xff] %v10139_v14  ;;  %11748 = vst [vmem:[#allocation15_spill] sm:$0xff] %v10143_v15  ;;  %v10147_v20 = vpack.c.bf16 %v84_v17, %v83_v16  ;;  %v10151_v21 = vpack.c.bf16 %v260_v19, %v259_v18  ;;  %v85_v22 = vld [vmem:[#allocation7 + $0xc0] sm:$0xff]  ;;  %v261_v24 = vld [vmem:[#allocation7 + $0xd0] sm:$0xff] }
  0x3e   :  { %v86_v23 = vld [vmem:[#allocation7 + $0xe0] sm:$0xff]  ;;  %v262_v25 = vld [vmem:[#allocation7 + $0xf0] sm:$0xff]  ;;  %p10025_p0 = pnand %p10024_p13, %p10018_p10 }
  0x3f   :  { %8247 = vmatpush3.bf16.msra.mxu0 %v10139_v14  ;;  %11749 = vst [vmem:[#allocation16_spill] sm:$0xff] %v10147_v20  ;;  %8295 = vmatpush3.bf16.msra.mxu1 %v10143_v15  ;;  %11750 = vst [vmem:[#allocation17_spill] sm:$0xff] %v10151_v21  ;;  %v10155_v26 = vpack.c.bf16 %v86_v23, %v85_v22  ;;  %v10159_v27 = vpack.c.bf16 %v262_v25, %v261_v24  ;;  %v87_v28 = vld [vmem:[#allocation7 + $0x100] sm:$0xff]  ;;  %v263_v30 = vld [vmem:[#allocation7 + $0x110] sm:$0xff] }
  0x40   :  { %8248 = vmatprep.subr.bf16.mxu0 %v11741_v1  ;;  %8296 = vmatprep.subr.bf16.mxu1 %v11741_v1  ;;  %v88_v29 = vld [vmem:[#allocation7 + $0x120] sm:$0xff]  ;;  %v264_v31 = vld [vmem:[#allocation7 + $0x130] sm:$0xff] }
  0x41   :  { %11751 = vst [vmem:[#allocation18_spill] sm:$0xff] %v10155_v26  ;;  %11752 = vst [vmem:[#allocation19_spill] sm:$0xff] %v10159_v27  ;;  %v10163_v32 = vpack.c.bf16 %v88_v29, %v87_v28  ;;  %v10167_v33 = vpack.c.bf16 %v264_v31, %v263_v30  ;;  %v89_v34 = vld [vmem:[#allocation7 + $0x140] sm:$0xff]  ;;  %v265_v36 = vld [vmem:[#allocation7 + $0x150] sm:$0xff] }
  0x42   :  { %v90_v35 = vld [vmem:[#allocation7 + $0x160] sm:$0xff]  ;;  %v266_v37 = vld [vmem:[#allocation7 + $0x170] sm:$0xff] }
  0x43   :  { %8250 = vmatpush3.bf16.msra.mxu0 %v10147_v20  ;;  %8298 = vmatpush3.bf16.msra.mxu1 %v10151_v21  ;;  %11753 = vst [vmem:[#allocation20_spill] sm:$0xff] %v10163_v32  ;;  %11754 = vst [vmem:[#allocation21_spill] sm:$0xff] %v10167_v33  ;;  %v10171_v38 = vpack.c.bf16 %v90_v35, %v89_v34  ;;  %v10175_v39 = vpack.c.bf16 %v266_v37, %v265_v36  ;;  %v91_v40 = vld [vmem:[#allocation7 + $0x180] sm:$0xff]  ;;  %v267_v42 = vld [vmem:[#allocation7 + $0x190] sm:$0xff] }
  0x44   :  { %8251 = vmatprep.subr.bf16.mxu0 %v11741_v1  ;;  %8299 = vmatprep.subr.bf16.mxu1 %v11741_v1  ;;  %v92_v41 = vld [vmem:[#allocation7 + $0x1a0] sm:$0xff]  ;;  %v268_v43 = vld [vmem:[#allocation7 + $0x1b0] sm:$0xff] }
  0x45   :  { %11755 = vst [vmem:[#allocation22_spill] sm:$0xff] %v10171_v38  ;;  %11756 = vst [vmem:[#allocation23_spill] sm:$0xff] %v10175_v39  ;;  %v10179_v44 = vpack.c.bf16 %v92_v41, %v91_v40  ;;  %v10183_v45 = vpack.c.bf16 %v268_v43, %v267_v42  ;;  %v93_v46 = vld [vmem:[#allocation7 + $0x1c0] sm:$0xff]  ;;  %v269_v48 = vld [vmem:[#allocation7 + $0x1d0] sm:$0xff] }
  0x46   :  { %v94_v47 = vld [vmem:[#allocation7 + $0x1e0] sm:$0xff]  ;;  %v270_v49 = vld [vmem:[#allocation7 + $0x1f0] sm:$0xff] }
  0x47   :  { %8253 = vmatpush3.bf16.msra.mxu0 %v10155_v26  ;;  %8301 = vmatpush3.bf16.msra.mxu1 %v10159_v27  ;;  %11757 = vst [vmem:[#allocation24_spill] sm:$0xff] %v10179_v44  ;;  %11758 = vst [vmem:[#allocation25_spill] sm:$0xff] %v10183_v45  ;;  %v10187_v50 = vpack.c.bf16 %v94_v47, %v93_v46  ;;  %v10191_v51 = vpack.c.bf16 %v270_v49, %v269_v48  ;;  %v63_v52 = vld [vmem:[#allocation5] sm:$0xff]  ;;  %v239_v54 = vld [vmem:[#allocation5 + $0x10] sm:$0xff] }
  0x48   :  { %8254 = vmatprep.subr.bf16.mxu0 %v11741_v1  ;;  %8302 = vmatprep.subr.bf16.mxu1 %v11741_v1  ;;  %v64_v53 = vld [vmem:[#allocation5 + $0x20] sm:$0xff]  ;;  %v240_v55 = vld [vmem:[#allocation5 + $0x30] sm:$0xff] }
  0x49   :  { %11759 = vst [vmem:[#allocation26_spill] sm:$0xff] %v10187_v50  ;;  %11760 = vst [vmem:[#allocation27_spill] sm:$0xff] %v10191_v51  ;;  %v10195_v56 = vpack.c.bf16 %v64_v53, %v63_v52  ;;  %v10199_v57 = vpack.c.bf16 %v240_v55, %v239_v54  ;;  %v65_v58 = vld [vmem:[#allocation5 + $0x40] sm:$0xff]  ;;  %v241_v60 = vld [vmem:[#allocation5 + $0x50] sm:$0xff]  ;;  %v10054_v55 = vmov 1  }
  0x4a   :  { %v66_v59 = vld [vmem:[#allocation5 + $0x60] sm:$0xff]  ;;  %v242_v61 = vld [vmem:[#allocation5 + $0x70] sm:$0xff]  ;;  %9861 = vset.pattern.permute.xlu0 %v10054_v55  ;;  %v437_v55 = vld [vmem:[#allocation7 + $0x108] sm:$0xff] }
  0x4b   :  { %8256 = vmatpush3.bf16.msra.mxu0 %v10163_v32  ;;  %8304 = vmatpush3.bf16.msra.mxu1 %v10167_v33  ;;  %v10205_v62 = vpack.c.bf16 %v66_v59, %v65_v58  ;;  %v10209_v63 = vpack.c.bf16 %v242_v61, %v241_v60  ;;  %v67_v0 = vld [vmem:[#allocation5 + $0x80] sm:$0xff]  ;;  %v243_v5 = vld [vmem:[#allocation5 + $0x90] sm:$0xff]  ;;  %v54_v58 = vlaneseq  ;;  %v429_v59 = vld [vmem:[#allocation7 + $0x8] sm:$0xff] }
  0x4c   :  { %8257 = vmatprep.subr.bf16.mxu0 %v11741_v1  ;;  %8305 = vmatprep.subr.bf16.mxu1 %v11741_v1  ;;  %v68_v4 = vld [vmem:[#allocation5 + $0xa0] sm:$0xff]  ;;  %v244_v7 = vld [vmem:[#allocation5 + $0xb0] sm:$0xff]  ;;  %v430_v60 = vld [vmem:[#allocation7 + $0x28] sm:$0xff] }
  0x4d   :  { %v10217_v8 = vpack.c.bf16 %v68_v4, %v67_v0  ;;  %v10221_v9 = vpack.c.bf16 %v244_v7, %v243_v5  ;;  %v69_v11 = vld [vmem:[#allocation5 + $0xc0] sm:$0xff]  ;;  %v245_v13 = vld [vmem:[#allocation5 + $0xd0] sm:$0xff]  ;;  %770 = vperm.xlu0 %9861, %v10131_v3   ;;  %v607_v61 = vld [vmem:[#allocation7 + $0x18] sm:$0xff]  ;;  %v10269_v4 = vand.u32 127, %v54_v58  ;;  %v10271_v5 = vpack.c.bf16 %v430_v60, %v429_v59 }
  0x4e   :  { %v70_v12 = vld [vmem:[#allocation5 + $0xe0] sm:$0xff]  ;;  %v246_v16 = vld [vmem:[#allocation5 + $0xf0] sm:$0xff]  ;;  %v608_v0 = vld [vmem:[#allocation7 + $0x38] sm:$0xff] }
  0x4f   :  { %8259 = vmatpush3.bf16.msra.mxu0 %v10171_v38  ;;  %8307 = vmatpush3.bf16.msra.mxu1 %v10175_v39  ;;  %v10225_v17 = vpack.c.bf16 %v70_v12, %v69_v11  ;;  %v10229_v18 = vpack.c.bf16 %v246_v16, %v245_v13  ;;  %v71_v19 = vld [vmem:[#allocation5 + $0x100] sm:$0xff]  ;;  %v247_v23 = vld [vmem:[#allocation5 + $0x110] sm:$0xff]  ;;  %v10273_v7 = vpack.c.bf16 %v608_v0, %v607_v61  ;;  %v431_v11 = vld [vmem:[#allocation7 + $0x48] sm:$0xff] }
  0x50   :  { %8260 = vmatprep.subr.bf16.mxu0 %v11741_v1  ;;  %8308 = vmatprep.subr.bf16.mxu1 %v11741_v1  ;;  %v72_v22 = vld [vmem:[#allocation5 + $0x120] sm:$0xff]  ;;  %v248_v24 = vld [vmem:[#allocation5 + $0x130] sm:$0xff]  ;;  %v432_v13 = vld [vmem:[#allocation7 + $0x68] sm:$0xff] }
  0x51   :  { %v10233_v25 = vpack.c.bf16 %v72_v22, %v71_v19  ;;  %v10237_v28 = vpack.c.bf16 %v248_v24, %v247_v23  ;;  %v73_v29 = vld [vmem:[#allocation5 + $0x140] sm:$0xff]  ;;  %v249_v31 = vld [vmem:[#allocation5 + $0x150] sm:$0xff]  ;;  %v609_v16 = vld [vmem:[#allocation7 + $0x58] sm:$0xff]  ;;  %v11671_v22 = vmov 1.0   ;;  %v10289_v23 = vpack.c.bf16 %v432_v13, %v431_v11 }
  0x52   :  { %v74_v30 = vld [vmem:[#allocation5 + $0x160] sm:$0xff]  ;;  %v250_v34 = vld [vmem:[#allocation5 + $0x170] sm:$0xff]  ;;  %v610_v19 = vld [vmem:[#allocation7 + $0x78] sm:$0xff] }
  0x53   :  { %8262 = vmatpush3.bf16.msra.mxu0 %v10179_v44  ;;  %8310 = vmatpush3.bf16.msra.mxu1 %v10183_v45  ;;  %v10241_v35 = vpack.c.bf16 %v74_v30, %v73_v29  ;;  %v10245_v36 = vpack.c.bf16 %v250_v34, %v249_v31  ;;  %v75_v37 = vld [vmem:[#allocation5 + $0x180] sm:$0xff]  ;;  %v251_v41 = vld [vmem:[#allocation5 + $0x190] sm:$0xff]  ;;  %v10291_v24 = vpack.c.bf16 %v610_v19, %v609_v16  ;;  %v433_v29 = vld [vmem:[#allocation7 + $0x88] sm:$0xff] }
  0x54   :  { %8263 = vmatprep.subr.bf16.mxu0 %v11741_v1  ;;  %8311 = vmatprep.subr.bf16.mxu1 %v11741_v1  ;;  %v76_v40 = vld [vmem:[#allocation5 + $0x1a0] sm:$0xff]  ;;  %v252_v42 = vld [vmem:[#allocation5 + $0x1b0] sm:$0xff]  ;;  %v434_v30 = vld [vmem:[#allocation7 + $0xa8] sm:$0xff] }
  0x55   :  { %v10249_v43 = vpack.c.bf16 %v76_v40, %v75_v37  ;;  %v10253_v46 = vpack.c.bf16 %v252_v42, %v251_v41  ;;  %v77_v47 = vld [vmem:[#allocation5 + $0x1c0] sm:$0xff]  ;;  %v253_v49 = vld [vmem:[#allocation5 + $0x1d0] sm:$0xff]  ;;  %v611_v31 = vld [vmem:[#allocation7 + $0x98] sm:$0xff]  ;;  %v10301_v37 = vpack.c.bf16 %v434_v30, %v433_v29 }
  0x56   :  { %v78_v48 = vld [vmem:[#allocation5 + $0x1e0] sm:$0xff]  ;;  %v254_v52 = vld [vmem:[#allocation5 + $0x1f0] sm:$0xff]  ;;  %v612_v34 = vld [vmem:[#allocation7 + $0xb8] sm:$0xff] }
  0x57   :  { %8265 = vmatpush3.bf16.msra.mxu0 %v10187_v50  ;;  %8313 = vmatpush3.bf16.msra.mxu1 %v10191_v51  ;;  %v10257_v53 = vpack.c.bf16 %v78_v48, %v77_v47  ;;  %v10261_v54 = vpack.c.bf16 %v254_v52, %v253_v49  ;;  %v10303_v40 = vpack.c.bf16 %v612_v34, %v611_v31  ;;  %v435_v41 = vld [vmem:[#allocation7 + $0xc8] sm:$0xff]  ;;  %v613_v47 = vld [vmem:[#allocation7 + $0xd8] sm:$0xff] }
  0x58   :  { %8266 = vmatprep.subr.bf16.mxu0 %v11741_v1  ;;  %8314 = vmatprep.subr.bf16.mxu1 %v11741_v1  ;;  %v436_v42 = vld [vmem:[#allocation7 + $0xe8] sm:$0xff]  ;;  %v614_v48 = vld [vmem:[#allocation7 + $0xf8] sm:$0xff] }
  0x59   :  { %v10309_v49 = vpack.c.bf16 %v436_v42, %v435_v41  ;;  %v10311_v52 = vpack.c.bf16 %v614_v48, %v613_v47  ;;  %v438_v58 = vld [vmem:[#allocation7 + $0x128] sm:$0xff]  ;;  %v615_v59 = vld [vmem:[#allocation7 + $0x118] sm:$0xff] }
  0x5a   :  { %6035 = vmatmul.mubr.f32.vlgmr.msra.gmra.mrb[0].mxu0 %v11679_v2  ;;  %6105 = vmatmul.mubr.f32.vlgmr.msra.gmra.mrb[0].mxu1 %v11679_v2  ;;  %v616_v60 = vld [vmem:[#allocation7 + $0x138] sm:$0xff]  ;;  %v10317_v61 = vpack.c.bf16 %v438_v58, %v437_v55  ;;  %v439_v11 = vld [vmem:[#allocation7 + $0x148] sm:$0xff] }
  0x5b   :  { %8268 = vmatpush3.bf16.msra.mxu0 %v10195_v56  ;;  %8316 = vmatpush3.bf16.msra.mxu1 %v10199_v57  ;;  %v10319_v0 = vpack.c.bf16 %v616_v60, %v615_v59  ;;  %v440_v13 = vld [vmem:[#allocation7 + $0x168] sm:$0xff]  ;;  %v617_v16 = vld [vmem:[#allocation7 + $0x158] sm:$0xff] }
  0x5c   :  { %8269 = vmatprep.subr.bf16.mxu0 %v11741_v1  ;;  %8317 = vmatprep.subr.bf16.mxu1 %v11741_v1  ;;  %v618_v19 = vld [vmem:[#allocation7 + $0x178] sm:$0xff]  ;;  %v10325_v29 = vpack.c.bf16 %v440_v13, %v439_v11  ;;  %v441_v31 = vld [vmem:[#allocation7 + $0x188] sm:$0xff] }
  0x5d   :  { %6069 = vmatprep.mubr.msk.f32.mxu0 %vm10052_vm0, %v11679_v2  ;;  %6139 = vmatprep.mubr.msk.f32.mxu1 %vm10052_vm0, %v11679_v2  ;;  %v10327_v30 = vpack.c.bf16 %v618_v19, %v617_v16  ;;  %v442_v34 = vld [vmem:[#allocation7 + $0x1a8] sm:$0xff]  ;;  %v619_v41 = vld [vmem:[#allocation7 + $0x198] sm:$0xff] }
  0x5e   :  { %v620_v42 = vld [vmem:[#allocation7 + $0x1b8] sm:$0xff]  ;;  %v10333_v47 = vpack.c.bf16 %v442_v34, %v441_v31  ;;  %v443_v55 = vld [vmem:[#allocation7 + $0x1c8] sm:$0xff] }
  0x5f   :  { %8271 = vmatpush3.bf16.msra.mxu0 %v10205_v62  ;;  %8319 = vmatpush3.bf16.msra.mxu1 %v10209_v63  ;;  %v10335_v48 = vpack.c.bf16 %v620_v42, %v619_v41  ;;  %v444_v58 = vld [vmem:[#allocation7 + $0x1e8] sm:$0xff]  ;;  %v621_v59 = vld [vmem:[#allocation7 + $0x1d8] sm:$0xff] }
  0x60   :  { %8272 = vmatprep.subr.bf16.mxu0 %v11741_v1  ;;  %8320 = vmatprep.subr.bf16.mxu1 %v11741_v1  ;;  %v622_v60 = vld [vmem:[#allocation7 + $0x1f8] sm:$0xff]  ;;  %v10341_v11 = vpack.c.bf16 %v444_v58, %v443_v55  ;;  %v413_v16 = vld [vmem:[#allocation5 + $0x8] sm:$0xff] }
  0x61   :  { %v10343_v13 = vpack.c.bf16 %v622_v60, %v621_v59  ;;  %v414_v19 = vld [vmem:[#allocation5 + $0x28] sm:$0xff]  ;;  %v591_v31 = vld [vmem:[#allocation5 + $0x18] sm:$0xff] }
  0x62   :  { %v592_v34 = vld [vmem:[#allocation5 + $0x38] sm:$0xff]  ;;  %v10349_v41 = vpack.c.bf16 %v414_v19, %v413_v16  ;;  %v415_v55 = vld [vmem:[#allocation5 + $0x48] sm:$0xff] }
  0x63   :  { %8274 = vmatpush3.bf16.msra.mxu0 %v10217_v8  ;;  %8322 = vmatpush3.bf16.msra.mxu1 %v10221_v9  ;;  %11761 = vst [vmem:[#allocation28_spill] sm:$0xff] %v10343_v13  ;;  %v10351_v42 = vpack.c.bf16 %v592_v34, %v591_v31  ;;  %v416_v58 = vld [vmem:[#allocation5 + $0x68] sm:$0xff]  ;;  %v593_v59 = vld [vmem:[#allocation5 + $0x58] sm:$0xff] }
  0x64   :  { %8275 = vmatprep.subr.bf16.mxu0 %v11741_v1  ;;  %8323 = vmatprep.subr.bf16.mxu1 %v11741_v1  ;;  %11762 = vst [vmem:[#allocation29_spill] sm:$0xff] %v10349_v41  ;;  %v594_v60 = vld [vmem:[#allocation5 + $0x78] sm:$0xff]  ;;  %v10359_v16 = vpack.c.bf16 %v416_v58, %v415_v55  ;;  %v417_v31 = vld [vmem:[#allocation5 + $0x88] sm:$0xff] }
  0x65   :  { %11763 = vst [vmem:[#allocation30_spill] sm:$0xff] %v10351_v42  ;;  %v10361_v19 = vpack.c.bf16 %v594_v60, %v593_v59  ;;  %v418_v34 = vld [vmem:[#allocation5 + $0xa8] sm:$0xff] }
  0x66   :  { %11764 = vst [vmem:[#allocation31_spill] sm:$0xff] %v10359_v16  ;;  %v10371_v55 = vpack.c.bf16 %v418_v34, %v417_v31  ;;  %v419_v59 = vld [vmem:[#allocation5 + $0xc8] sm:$0xff]  ;;  %v600_v34 = vld [vmem:[#allocation5 + $0x138] sm:$0xff] }
  0x67   :  { %8277 = vmatpush3.bf16.msra.mxu0 %v10225_v17  ;;  %8325 = vmatpush3.bf16.msra.mxu1 %v10229_v18  ;;  %11765 = vst [vmem:[#allocation32_spill] sm:$0xff] %v10361_v19  ;;  %v420_v60 = vld [vmem:[#allocation5 + $0xe8] sm:$0xff] }
  0x68   :  { %8278 = vmatprep.subr.bf16.mxu0 %v11741_v1  ;;  %8326 = vmatprep.subr.bf16.mxu1 %v11741_v1  ;;  %11766 = vst [vmem:[#allocation33_spill] sm:$0xff] %v10371_v55  ;;  %v421_v31 = vld [vmem:[#allocation5 + $0x108] sm:$0xff] }
  0x6b   :  { %8280 = vmatpush3.bf16.msra.mxu0 %v10233_v25  ;;  %8328 = vmatpush3.bf16.msra.mxu1 %v10237_v28 }
  0x6c   :  { %8281 = vmatprep.subr.bf16.mxu0 %v11741_v1  ;;  %8329 = vmatprep.subr.bf16.mxu1 %v11741_v1 }
  0x6f   :  { %8283 = vmatpush3.bf16.msra.mxu0 %v10241_v35  ;;  %8331 = vmatpush3.bf16.msra.mxu1 %v10245_v36 }
  0x70   :  { %8284 = vmatprep.subr.bf16.mxu0 %v11741_v1  ;;  %8332 = vmatprep.subr.bf16.mxu1 %v11741_v1 }
  0x73   :  { %8286 = vmatpush3.bf16.msra.mxu0 %v10249_v43  ;;  %8334 = vmatpush3.bf16.msra.mxu1 %v10253_v46 }
  0x74   :  { %8287 = vmatprep.subr.bf16.mxu0 %v11741_v1  ;;  %8335 = vmatprep.subr.bf16.mxu1 %v11741_v1 }
  0x77   :  { %8289 = vmatpush3.bf16.msra.mxu0 %v10257_v53  ;;  %8337 = vmatpush3.bf16.msra.mxu1 %v10261_v54 }
  0x78   :  { %8338 = vmatprep.subr.bf16.mxu0 %v11741_v1  ;;  %8386 = vmatprep.subr.bf16.mxu1 %v11741_v1 }
  0xb8   :  { %v10275_v12 = vpop.permute.xlu0 %58 }
  0xb9   :  { %vm60_vm1 = vcmp.eq.s32.totalorder %v10275_v12, %v10269_v4 }
  0xba   :  { %6070 = vmatmul.mubr.msk.f32.vlgmr.msra.gmra.mrb[0].mxu0 %vm60_vm1, %v11671_v22  ;;  %6140 = vmatmul.mubr.msk.f32.vlgmr.msra.gmra.mrb[0].mxu1 %vm60_vm1, %v11671_v22  ;;  %v595_v22 = vld [vmem:[#allocation5 + $0x98] sm:$0xff] }
  0xbb   :  { %8340 = vmatpush3.bf16.msra.mxu0 %v10271_v5  ;;  %8388 = vmatpush3.bf16.msra.mxu1 %v10273_v7 }
  0xbc   :  { %8341 = vmatprep.subr.bf16.mxu0 %v11741_v1  ;;  %8389 = vmatprep.subr.bf16.mxu1 %v11741_v1 }
  0xbd   :  { %6174 = vmatprep.mubr.msk.f32.mxu0 %vm10052_vm0, %v11679_v2  ;;  %6244 = vmatprep.mubr.msk.f32.mxu1 %vm10052_vm0, %v11679_v2 }
  0xbf   :  { %8343 = vmatpush3.bf16.msra.mxu0 %v10289_v23  ;;  %8391 = vmatpush3.bf16.msra.mxu1 %v10291_v24 }
  0xc0   :  { %8344 = vmatprep.subr.bf16.mxu0 %v11741_v1  ;;  %8392 = vmatprep.subr.bf16.mxu1 %v11741_v1 }
  0xc3   :  { %8346 = vmatpush3.bf16.msra.mxu0 %v10301_v37  ;;  %8394 = vmatpush3.bf16.msra.mxu1 %v10303_v40 }
  0xc4   :  { %8347 = vmatprep.subr.bf16.mxu0 %v11741_v1  ;;  %8395 = vmatprep.subr.bf16.mxu1 %v11741_v1 }
  0xc7   :  { %8349 = vmatpush3.bf16.msra.mxu0 %v10309_v49  ;;  %8397 = vmatpush3.bf16.msra.mxu1 %v10311_v52 }
  0xc8   :  { %8350 = vmatprep.subr.bf16.mxu0 %v11741_v1  ;;  %8398 = vmatprep.subr.bf16.mxu1 %v11741_v1 }
  0xcb   :  { %8352 = vmatpush3.bf16.msra.mxu0 %v10317_v61  ;;  %8400 = vmatpush3.bf16.msra.mxu1 %v10319_v0 }
  0xcc   :  { %8353 = vmatprep.subr.bf16.mxu0 %v11741_v1  ;;  %8401 = vmatprep.subr.bf16.mxu1 %v11741_v1 }
  0xcf   :  { %8355 = vmatpush3.bf16.msra.mxu0 %v10325_v29  ;;  %8403 = vmatpush3.bf16.msra.mxu1 %v10327_v30 }
  0xd0   :  { %8356 = vmatprep.subr.bf16.mxu0 %v11741_v1  ;;  %8404 = vmatprep.subr.bf16.mxu1 %v11741_v1 }
  0xd3   :  { %8358 = vmatpush3.bf16.msra.mxu0 %v10333_v47  ;;  %8406 = vmatpush3.bf16.msra.mxu1 %v10335_v48 }
  0xd4   :  { %8359 = vmatprep.subr.bf16.mxu0 %v11741_v1  ;;  %8407 = vmatprep.subr.bf16.mxu1 %v11741_v1 }
  0xd7   :  { %8361 = vmatpush3.bf16.msra.mxu0 %v10341_v11  ;;  %8409 = vmatpush3.bf16.msra.mxu1 %v10343_v13  ;;  %v596_v13 = vld [vmem:[#allocation5 + $0xb8] sm:$0xff] }
  0xd8   :  { %8362 = vmatprep.subr.bf16.mxu0 %v11741_v1  ;;  %8410 = vmatprep.subr.bf16.mxu1 %v11741_v1  ;;  %v10373_v58 = vpack.c.bf16 %v596_v13, %v595_v22  ;;  %v422_v22 = vld [vmem:[#allocation5 + $0x128] sm:$0xff]  ;;  %v599_v13 = vld [vmem:[#allocation5 + $0x118] sm:$0xff] }
  0xda   :  { %6175 = vmatmul.mubr.f32.vlgmr.msra.gmra.mrb[2].mxu0 %v11679_v2  ;;  %6245 = vmatmul.mubr.f32.vlgmr.msra.gmra.mrb[2].mxu1 %v11679_v2  ;;  %11767 = vst [vmem:[#allocation34_spill] sm:$0xff] %v10373_v58 }
  0xdb   :  { %8364 = vmatpush3.bf16.msra.mxu0 %v10349_v41  ;;  %8412 = vmatpush3.bf16.msra.mxu1 %v10351_v42  ;;  %v597_v42 = vld [vmem:[#allocation5 + $0xd8] sm:$0xff] }
  0xdc   :  { %8365 = vmatprep.subr.bf16.mxu0 %v11741_v1  ;;  %8413 = vmatprep.subr.bf16.mxu1 %v11741_v1  ;;  %v598_v41 = vld [vmem:[#allocation5 + $0xf8] sm:$0xff] }
  0xdd   :  { %6209 = vmatprep.mubr.msk.f32.mxu0 %vm10052_vm0, %v11679_v2  ;;  %6279 = vmatprep.mubr.msk.f32.mxu1 %vm10052_vm0, %v11679_v2  ;;  %v10379_v2 = vpack.c.bf16 %v420_v60, %v419_v59  ;;  %v423_v59 = vld [vmem:[#allocation5 + $0x148] sm:$0xff]  ;;  %v602_v60 = vld [vmem:[#allocation5 + $0x178] sm:$0xff] }
  0xdf   :  { %8367 = vmatpush3.bf16.msra.mxu0 %v10359_v16  ;;  %8415 = vmatpush3.bf16.msra.mxu1 %v10361_v19  ;;  %11768 = vst [vmem:[#allocation35_spill] sm:$0xff] %v10379_v2  ;;  %v10381_v16 = vpack.c.bf16 %v598_v41, %v597_v42  ;;  %v10387_v19 = vpack.c.bf16 %v422_v22, %v421_v31  ;;  %v424_v41 = vld [vmem:[#allocation5 + $0x168] sm:$0xff]  ;;  %v601_v42 = vld [vmem:[#allocation5 + $0x158] sm:$0xff] }
  0xe0   :  { %8368 = vmatprep.subr.bf16.mxu0 %v11741_v1  ;;  %8416 = vmatprep.subr.bf16.mxu1 %v11741_v1  ;;  %v425_v31 = vld [vmem:[#allocation5 + $0x188] sm:$0xff] }
  0xe1   :  { %11769 = vst [vmem:[#allocation36_spill] sm:$0xff] %v10381_v16  ;;  %11770 = vst [vmem:[#allocation37_spill] sm:$0xff] %v10387_v19  ;;  %v426_v22 = vld [vmem:[#allocation5 + $0x1a8] sm:$0xff] }
  0xe3   :  { %8370 = vmatpush3.bf16.msra.mxu0 %v10371_v55  ;;  %8418 = vmatpush3.bf16.msra.mxu1 %v10373_v58  ;;  %v10389_v55 = vpack.c.bf16 %v600_v34, %v599_v13  ;;  %v10395_v58 = vpack.c.bf16 %v424_v41, %v423_v59  ;;  %v603_v13 = vld [vmem:[#allocation5 + $0x198] sm:$0xff]  ;;  %v427_v59 = vld [vmem:[#allocation5 + $0x1c8] sm:$0xff] }
  0xe4   :  { %8371 = vmatprep.subr.bf16.mxu0 %v11741_v1  ;;  %8419 = vmatprep.subr.bf16.mxu1 %v11741_v1  ;;  %v604_v34 = vld [vmem:[#allocation5 + $0x1b8] sm:$0xff]  ;;  %v428_v41 = vld [vmem:[#allocation5 + $0x1e8] sm:$0xff] }
  0xe5   :  { %11771 = vst [vmem:[#allocation38_spill] sm:$0xff] %v10389_v55  ;;  %11772 = vst [vmem:[#allocation39_spill] sm:$0xff] %v10395_v58 }
  0xe7   :  { %8373 = vmatpush3.bf16.msra.mxu0 %v10379_v2  ;;  %8421 = vmatpush3.bf16.msra.mxu1 %v10381_v16  ;;  %v10397_v2 = vpack.c.bf16 %v602_v60, %v601_v42  ;;  %v10403_v16 = vpack.c.bf16 %v426_v22, %v425_v31  ;;  %v605_v42 = vld [vmem:[#allocation5 + $0x1d8] sm:$0xff]  ;;  %v11778_v31 = vmov 1.0   ;;  %v11779_v22 = vmov 0.0  }
  0xe8   :  { %8374 = vmatprep.subr.bf16.mxu0 %v11741_v1  ;;  %8422 = vmatprep.subr.bf16.mxu1 %v11741_v1  ;;  %v606_v60 = vld [vmem:[#allocation5 + $0x1f8] sm:$0xff] }
  0xe9   :  { %11773 = vst [vmem:[#allocation40_spill] sm:$0xff] %v10397_v2  ;;  %11774 = vst [vmem:[#allocation41_spill] sm:$0xff] %v10403_v16 }
  0xeb   :  { %8376 = vmatpush3.bf16.msra.mxu0 %v10387_v19  ;;  %8424 = vmatpush3.bf16.msra.mxu1 %v10389_v55  ;;  %v10405_v19 = vpack.c.bf16 %v604_v34, %v603_v13  ;;  %v10411_v55 = vpack.c.bf16 %v428_v41, %v427_v59 }
  0xec   :  { %8377 = vmatprep.subr.bf16.mxu0 %v11741_v1  ;;  %8425 = vmatprep.subr.bf16.mxu1 %v11741_v1 }
  0xed   :  { %11775 = vst [vmem:[#allocation42_spill] sm:$0xff] %v10405_v19  ;;  %11776 = vst [vmem:[#allocation43_spill] sm:$0xff] %v10411_v55 }
  0xef   :  { %8379 = vmatpush3.bf16.msra.mxu0 %v10395_v58  ;;  %8427 = vmatpush3.bf16.msra.mxu1 %v10397_v2  ;;  %v10413_v58 = vpack.c.bf16 %v606_v60, %v605_v42 }
  0xf0   :  { %8380 = vmatprep.subr.bf16.mxu0 %v11741_v1  ;;  %8428 = vmatprep.subr.bf16.mxu1 %v11741_v1 }
  0xf1   :  { %11777 = vst [vmem:[#allocation44_spill] sm:$0xff] %v10413_v58 }
  0xf3   :  { %8382 = vmatpush3.bf16.msra.mxu0 %v10403_v16  ;;  %8430 = vmatpush3.bf16.msra.mxu1 %v10405_v19 }
  0xf4   :  { %8383 = vmatprep.subr.bf16.mxu0 %v11741_v1  ;;  %8431 = vmatprep.subr.bf16.mxu1 %v11741_v1 }
  0xf7   :  { %8385 = vmatpush3.bf16.msra.mxu0 %v10411_v55  ;;  %8433 = vmatpush3.bf16.msra.mxu1 %v10413_v58 }
  0xf8   :  { %8434 = vmatprep.subr.bf16.mxu0 %v11741_v1  ;;  %8482 = vmatprep.subr.bf16.mxu1 %v11741_v1 }
  0xfa   :  { %6210 = vmatmul.mubr.msk.f32.vlgmr.msra.gmra.mrb[2].mxu0 %vm60_vm1, %v11778_v31  ;;  %6280 = vmatmul.mubr.msk.f32.vlgmr.msra.gmra.mrb[2].mxu1 %vm60_vm1, %v11778_v31 }
  0xfb   :  { %8436 = vmatpush3.bf16.msra.mxu0 %v10134_v6  ;;  %8484 = vmatpush3.bf16.msra.mxu1 %v10136_v10 }
  0xfc   :  { %8437 = vmatprep.subr.bf16.mxu0 %v11741_v1  ;;  %8485 = vmatprep.subr.bf16.mxu1 %v11741_v1 }
  0xfd   :  { %6314 = vmatprep.mubr.msk.f32.mxu0 %vm10052_vm0, %v11779_v22  ;;  %6384 = vmatprep.mubr.msk.f32.mxu1 %vm10052_vm0, %v11779_v22 }
  0xff   :  { %8439 = vmatpush3.bf16.msra.mxu0 %v10139_v14  ;;  %8487 = vmatpush3.bf16.msra.mxu1 %v10143_v15 }
 0x100   :  { %8440 = vmatprep.subr.bf16.mxu0 %v11741_v1  ;;  %8488 = vmatprep.subr.bf16.mxu1 %v11741_v1 }
 0x103   :  { %8442 = vmatpush3.bf16.msra.mxu0 %v10147_v20  ;;  %8490 = vmatpush3.bf16.msra.mxu1 %v10151_v21 }
 0x104   :  { %8443 = vmatprep.subr.bf16.mxu0 %v11741_v1  ;;  %8491 = vmatprep.subr.bf16.mxu1 %v11741_v1 }
 0x107   :  { %8445 = vmatpush3.bf16.msra.mxu0 %v10155_v26  ;;  %8493 = vmatpush3.bf16.msra.mxu1 %v10159_v27  ;;  %v10056_v27 = vmov 2  }
 0x108   :  { %8446 = vmatprep.subr.bf16.mxu0 %v11741_v1  ;;  %8494 = vmatprep.subr.bf16.mxu1 %v11741_v1 }
 0x109   :  { %9862 = vset.pattern.permute.xlu1 %v10056_v27  ;;  %v11780_v27 = vld [vmem:[#allocation28_spill] sm:$0xff] }
 0x10a   :  { %1354 = vperm.xlu1 %9862, %v10131_v3   ;;  %v10505_v3 = vpop.permute.xlu0 %770 }
 0x10b   :  { %8448 = vmatpush3.bf16.msra.mxu0 %v10163_v32  ;;  %8496 = vmatpush3.bf16.msra.mxu1 %v10167_v33  ;;  %vm772_vm2 = vcmp.eq.s32.totalorder %v10505_v3, %v10269_v4  ;;  %v11795_v3 = vld [vmem:[#allocation22_spill] sm:$0xff] }
 0x10c   :  { %8449 = vmatprep.subr.bf16.mxu0 %v11741_v1  ;;  %8497 = vmatprep.subr.bf16.mxu1 %v11741_v1 }
 0x10f   :  { %8451 = vmatpush3.bf16.msra.mxu0 %v10171_v38  ;;  %8499 = vmatpush3.bf16.msra.mxu1 %v10175_v39 }
 0x110   :  { %8452 = vmatprep.subr.bf16.mxu0 %v11741_v1  ;;  %8500 = vmatprep.subr.bf16.mxu1 %v11741_v1 }
 0x113   :  { %8454 = vmatpush3.bf16.msra.mxu0 %v10179_v44  ;;  %8502 = vmatpush3.bf16.msra.mxu1 %v10183_v45 }
 0x114   :  { %8455 = vmatprep.subr.bf16.mxu0 %v11741_v1  ;;  %8503 = vmatprep.subr.bf16.mxu1 %v11741_v1 }
 0x117   :  { %8457 = vmatpush3.bf16.msra.mxu0 %v10187_v50  ;;  %8505 = vmatpush3.bf16.msra.mxu1 %v10191_v51 }
 0x118   :  { %8458 = vmatprep.subr.bf16.mxu0 %v11741_v1  ;;  %8506 = vmatprep.subr.bf16.mxu1 %v11741_v1 }
 0x18d   :  { %v231_v12 = vpop.f32.mrb[0].mxu0  ;;  %v407_v13 = vpop.f32.mrb[0].mxu1 }
 0x18e   :  { %v235_v34 = vmul.f32 0.5, %v231_v12  ;;  %v6071_v59 = vpop.f32.mrb[1].mxu0  ;;  %v6141_v41 = vpop.f32.mrb[1].mxu1 }
 0x190   :  { %9869 = vtanh.f32 %v235_v34 }
 0x191   :  { %9871 = vtanh.f32 %v407_v13 }
 0x19a   :  { %v9870_v42 = vpop.eup %9869 }
 0x19b   :  { %v237_v60 = vmul.f32 0.5, %v9870_v42  ;;  %v9872_v44 = vpop.eup %9871 }
 0x19d   :  { %v238_v45 = vadd.f32 0.5, %v237_v60  ;;  %v11784_v60 = vld [vmem:[#allocation32_spill] sm:$0xff] }
 0x19f   :  { %v412_v39 = vmul.f32 %v9872_v44, %v238_v45 }
 0x1cd   :  { %v581_v38 = vpop.f32.mrb[2].mxu0  ;;  %v759_v50 = vpop.f32.mrb[2].mxu1 }
 0x1ce   :  { %v585_v33 = vmul.f32 0.5, %v581_v38  ;;  %v6211_v51 = vpop.f32.mrb[3].mxu0  ;;  %v6281_v32 = vpop.f32.mrb[3].mxu1  ;;  %v763_v12 = vmul.f32 0.5, %v759_v50  ;;  %v11783_v50 = vld [vmem:[#allocation31_spill] sm:$0xff] }
 0x1d0   :  { %9873 = vtanh.f32 %v585_v33  ;;  %v11781_v33 = vld [vmem:[#allocation29_spill] sm:$0xff] }
 0x1d1   :  { %9875 = vtanh.f32 %v763_v12  ;;  %v11785_v12 = vld [vmem:[#allocation33_spill] sm:$0xff] }
 0x1da   :  { %v9874_v59 = vpop.eup %9873 }
 0x1db   :  { %v587_v41 = vmul.f32 0.5, %v9874_v59  ;;  %v9876_v44 = vpop.eup %9875  ;;  %v11786_v59 = vld [vmem:[#allocation34_spill] sm:$0xff] }
 0x1dc   :  { %v765_v45 = vmul.f32 0.5, %v9876_v44  ;;  %v11790_v44 = vld [vmem:[#allocation38_spill] sm:$0xff] }
 0x1dd   :  { %v588_v13 = vadd.f32 0.5, %v587_v41  ;;  %v11787_v41 = vld [vmem:[#allocation35_spill] sm:$0xff] }
 0x1de   :  { %v766_v38 = vadd.f32 0.5, %v765_v45  ;;  %v11791_v45 = vld [vmem:[#allocation39_spill] sm:$0xff] }
 0x1df   :  { %v589_v34 = vmul.f32 0.0, %v588_v13  ;;  %v11788_v13 = vld [vmem:[#allocation36_spill] sm:$0xff] }
 0x1e1   :  { %v10466_v42 = vadd.f32 %v589_v34, %v412_v39  ;;  %v11782_v39 = vld [vmem:[#allocation30_spill] sm:$0xff]  ;;  %v11789_v34 = vld [vmem:[#allocation37_spill] sm:$0xff] }
 0x1e3   :  { %9877 = vtanh.f32 %v10466_v42 }
 0x1ed   :  { %v9878_v51 = vpop.eup %9877 }
 0x1ee   :  { %v10469_v32 = vmul.f32 %v9878_v51, %v766_v38  ;;  %v11792_v38 = vld [vmem:[#allocation19_spill] sm:$0xff]  ;;  %v11793_v51 = vld [vmem:[#allocation20_spill] sm:$0xff] }
 0x1f0   :  { %6315 = vmatmul.mubr.f32.vlgmr.msra.gmra.mrb[4].mxu0 %v10469_v32  ;;  %6385 = vmatmul.mubr.f32.vlgmr.msra.gmra.mrb[4].mxu1 %v10469_v32 }
 0x1f1   :  { %8460 = vmatpush3.bf16.msra.mxu0 %v10195_v56  ;;  %8508 = vmatpush3.bf16.msra.mxu1 %v10199_v57 }
 0x1f2   :  { %8461 = vmatprep.subr.bf16.mxu0 %v11741_v1  ;;  %8509 = vmatprep.subr.bf16.mxu1 %v11741_v1 }
 0x1f3   :  { %6349 = vmatprep.mubr.msk.f32.mxu0 %vm10052_vm0, %v11779_v22  ;;  %6419 = vmatprep.mubr.msk.f32.mxu1 %vm10052_vm0, %v11779_v22 }
 0x1f5   :  { %8463 = vmatpush3.bf16.msra.mxu0 %v10205_v62  ;;  %8511 = vmatpush3.bf16.msra.mxu1 %v10209_v63 }
 0x1f6   :  { %8464 = vmatprep.subr.bf16.mxu0 %v11741_v1  ;;  %8512 = vmatprep.subr.bf16.mxu1 %v11741_v1 }
 0x1f9   :  { %8466 = vmatpush3.bf16.msra.mxu0 %v10217_v8  ;;  %8514 = vmatpush3.bf16.msra.mxu1 %v10221_v9 }
 0x1fa   :  { %8467 = vmatprep.subr.bf16.mxu0 %v11741_v1  ;;  %8515 = vmatprep.subr.bf16.mxu1 %v11741_v1 }
 0x1fd   :  { %8469 = vmatpush3.bf16.msra.mxu0 %v10225_v17  ;;  %8517 = vmatpush3.bf16.msra.mxu1 %v10229_v18 }
 0x1fe   :  { %8470 = vmatprep.subr.bf16.mxu0 %v11741_v1  ;;  %8518 = vmatprep.subr.bf16.mxu1 %v11741_v1 }
 0x201   :  { %8472 = vmatpush3.bf16.msra.mxu0 %v10233_v25  ;;  %8520 = vmatpush3.bf16.msra.mxu1 %v10237_v28 }
 0x202   :  { %8473 = vmatprep.subr.bf16.mxu0 %v11741_v1  ;;  %8521 = vmatprep.subr.bf16.mxu1 %v11741_v1 }
 0x205   :  { %8475 = vmatpush3.bf16.msra.mxu0 %v10241_v35  ;;  %8523 = vmatpush3.bf16.msra.mxu1 %v10245_v36 }
 0x206   :  { %8476 = vmatprep.subr.bf16.mxu0 %v11741_v1  ;;  %8524 = vmatprep.subr.bf16.mxu1 %v11741_v1 }
 0x209   :  { %8478 = vmatpush3.bf16.msra.mxu0 %v10249_v43  ;;  %8526 = vmatpush3.bf16.msra.mxu1 %v10253_v46 }
 0x20a   :  { %8479 = vmatprep.subr.bf16.mxu0 %v11741_v1  ;;  %8527 = vmatprep.subr.bf16.mxu1 %v11741_v1 }
 0x20d   :  { %8481 = vmatpush3.bf16.msra.mxu0 %v10257_v53  ;;  %8529 = vmatpush3.bf16.msra.mxu1 %v10261_v54 }
 0x20e   :  { %8530 = vmatprep.subr.bf16.mxu0 %v11741_v1  ;;  %8578 = vmatprep.subr.bf16.mxu1 %v11741_v1 }
 0x210   :  { %6350 = vmatmul.mubr.msk.f32.vlgmr.msra.gmra.mrb[4].mxu0 %vm772_vm2, %v11778_v31  ;;  %6420 = vmatmul.mubr.msk.f32.vlgmr.msra.gmra.mrb[4].mxu1 %vm772_vm2, %v11778_v31 }
 0x211   :  { %8532 = vmatpush3.bf16.msra.mxu0 %v10271_v5  ;;  %8580 = vmatpush3.bf16.msra.mxu1 %v10273_v7 }
 0x212   :  { %8533 = vmatprep.subr.bf16.mxu0 %v11741_v1  ;;  %8581 = vmatprep.subr.bf16.mxu1 %v11741_v1 }
 0x213   :  { %6454 = vmatprep.mubr.msk.f32.mxu0 %vm10052_vm0, %v11779_v22  ;;  %6524 = vmatprep.mubr.msk.f32.mxu1 %vm10052_vm0, %v11779_v22 }
 0x215   :  { %8535 = vmatpush3.bf16.msra.mxu0 %v10289_v23  ;;  %8583 = vmatpush3.bf16.msra.mxu1 %v10291_v24 }
 0x216   :  { %8536 = vmatprep.subr.bf16.mxu0 %v11741_v1  ;;  %8584 = vmatprep.subr.bf16.mxu1 %v11741_v1 }
 0x219   :  { %8538 = vmatpush3.bf16.msra.mxu0 %v10301_v37  ;;  %8586 = vmatpush3.bf16.msra.mxu1 %v10303_v40 }
 0x21a   :  { %8539 = vmatprep.subr.bf16.mxu0 %v11741_v1  ;;  %8587 = vmatprep.subr.bf16.mxu1 %v11741_v1 }
 0x21d   :  { %8541 = vmatpush3.bf16.msra.mxu0 %v10309_v49  ;;  %8589 = vmatpush3.bf16.msra.mxu1 %v10311_v52 }
 0x21e   :  { %8542 = vmatprep.subr.bf16.mxu0 %v11741_v1  ;;  %8590 = vmatprep.subr.bf16.mxu1 %v11741_v1 }
 0x221   :  { %8544 = vmatpush3.bf16.msra.mxu0 %v10317_v61  ;;  %8592 = vmatpush3.bf16.msra.mxu1 %v10319_v0 }
 0x222   :  { %8545 = vmatprep.subr.bf16.mxu0 %v11741_v1  ;;  %8593 = vmatprep.subr.bf16.mxu1 %v11741_v1 }
 0x225   :  { %8547 = vmatpush3.bf16.msra.mxu0 %v10325_v29  ;;  %8595 = vmatpush3.bf16.msra.mxu1 %v10327_v30 }
 0x226   :  { %8548 = vmatprep.subr.bf16.mxu0 %v11741_v1  ;;  %8596 = vmatprep.subr.bf16.mxu1 %v11741_v1 }
 0x229   :  { %8550 = vmatpush3.bf16.msra.mxu0 %v10333_v47  ;;  %8598 = vmatpush3.bf16.msra.mxu1 %v10335_v48 }
 0x22a   :  { %8551 = vmatprep.subr.bf16.mxu0 %v11741_v1  ;;  %8599 = vmatprep.subr.bf16.mxu1 %v11741_v1 }
 0x22d   :  { %8553 = vmatpush3.bf16.msra.mxu0 %v10341_v11  ;;  %8601 = vmatpush3.bf16.msra.mxu1 %v11780_v27 }
 0x22e   :  { %8554 = vmatprep.subr.bf16.mxu0 %v11741_v1  ;;  %8602 = vmatprep.subr.bf16.mxu1 %v11741_v1 }
 0x230   :  { %6455 = vmatmul.mubr.f32.vlgmr.msra.gmra.mrb[6].mxu0 %v10469_v32  ;;  %6525 = vmatmul.mubr.f32.vlgmr.msra.gmra.mrb[6].mxu1 %v10469_v32  ;;  %v11794_v32 = vld [vmem:[#allocation21_spill] sm:$0xff] }
 0x231   :  { %8556 = vmatpush3.bf16.msra.mxu0 %v11781_v33  ;;  %8604 = vmatpush3.bf16.msra.mxu1 %v11782_v39 }
 0x232   :  { %8557 = vmatprep.subr.bf16.mxu0 %v11741_v1  ;;  %8605 = vmatprep.subr.bf16.mxu1 %v11741_v1 }
 0x233   :  { %6489 = vmatprep.mubr.msk.f32.mxu0 %vm10052_vm0, %v11779_v22  ;;  %6559 = vmatprep.mubr.msk.f32.mxu1 %vm10052_vm0, %v11779_v22 }
 0x235   :  { %8559 = vmatpush3.bf16.msra.mxu0 %v11783_v50  ;;  %8607 = vmatpush3.bf16.msra.mxu1 %v11784_v60 }
 0x236   :  { %8560 = vmatprep.subr.bf16.mxu0 %v11741_v1  ;;  %8608 = vmatprep.subr.bf16.mxu1 %v11741_v1 }
 0x239   :  { %8562 = vmatpush3.bf16.msra.mxu0 %v11785_v12  ;;  %8610 = vmatpush3.bf16.msra.mxu1 %v11786_v59 }
 0x23a   :  { %8563 = vmatprep.subr.bf16.mxu0 %v11741_v1  ;;  %8611 = vmatprep.subr.bf16.mxu1 %v11741_v1 }
 0x23d   :  { %8565 = vmatpush3.bf16.msra.mxu0 %v11787_v41  ;;  %8613 = vmatpush3.bf16.msra.mxu1 %v11788_v13 }
 0x23e   :  { %8566 = vmatprep.subr.bf16.mxu0 %v11741_v1  ;;  %8614 = vmatprep.subr.bf16.mxu1 %v11741_v1 }
 0x241   :  { %8568 = vmatpush3.bf16.msra.mxu0 %v11789_v34  ;;  %8616 = vmatpush3.bf16.msra.mxu1 %v11790_v44 }
 0x242   :  { %8569 = vmatprep.subr.bf16.mxu0 %v11741_v1  ;;  %8617 = vmatprep.subr.bf16.mxu1 %v11741_v1 }
 0x245   :  { %8571 = vmatpush3.bf16.msra.mxu0 %v11791_v45  ;;  %8619 = vmatpush3.bf16.msra.mxu1 %v10397_v2  ;;  %v10057_v2 = vmov 3  }
 0x246   :  { %8572 = vmatprep.subr.bf16.mxu0 %v11741_v1  ;;  %8620 = vmatprep.subr.bf16.mxu1 %v11741_v1 }
 0x247   :  { %9863 = vset.pattern.permute.xlu1 %v10057_v2 }
 0x249   :  { %8574 = vmatpush3.bf16.msra.mxu0 %v10403_v16  ;;  %8622 = vmatpush3.bf16.msra.mxu1 %v10405_v19 }
 0x24a   :  { %8575 = vmatprep.subr.bf16.mxu0 %v11741_v1  ;;  %8623 = vmatprep.subr.bf16.mxu1 %v11741_v1 }
 0x24d   :  { %8577 = vmatpush3.bf16.msra.mxu0 %v10411_v55  ;;  %8625 = vmatpush3.bf16.msra.mxu1 %v10413_v58 }
 0x24e   :  { %8626 = vmatprep.subr.bf16.mxu0 %v11741_v1  ;;  %8674 = vmatprep.subr.bf16.mxu1 %v11741_v1 }
 0x250   :  { %6490 = vmatmul.mubr.msk.f32.vlgmr.msra.gmra.mrb[6].mxu0 %vm772_vm2, %v11778_v31  ;;  %6560 = vmatmul.mubr.msk.f32.vlgmr.msra.gmra.mrb[6].mxu1 %vm772_vm2, %v11778_v31 }
 0x251   :  { %8628 = vmatpush3.bf16.msra.mxu0 %v10134_v6  ;;  %8676 = vmatpush3.bf16.msra.mxu1 %v10136_v10 }
 0x252   :  { %8629 = vmatprep.subr.bf16.mxu0 %v11741_v1  ;;  %8677 = vmatprep.subr.bf16.mxu1 %v11741_v1 }
 0x253   :  { %6594 = vmatprep.mubr.msk.f32.mxu0 %vm10052_vm0, %v11779_v22  ;;  %6664 = vmatprep.mubr.msk.f32.mxu1 %vm10052_vm0, %v11779_v22 }
 0x255   :  { %8631 = vmatpush3.bf16.msra.mxu0 %v10139_v14  ;;  %8679 = vmatpush3.bf16.msra.mxu1 %v10143_v15 }
 0x256   :  { %8632 = vmatprep.subr.bf16.mxu0 %v11741_v1  ;;  %8680 = vmatprep.subr.bf16.mxu1 %v11741_v1 }
 0x259   :  { %8634 = vmatpush3.bf16.msra.mxu0 %v10147_v20  ;;  %8682 = vmatpush3.bf16.msra.mxu1 %v10151_v21  ;;  %v11796_v21 = vld [vmem:[#allocation23_spill] sm:$0xff] }
 0x25a   :  { %8635 = vmatprep.subr.bf16.mxu0 %v11741_v1  ;;  %8683 = vmatprep.subr.bf16.mxu1 %v11741_v1 }
 0x25d   :  { %8637 = vmatpush3.bf16.msra.mxu0 %v10155_v26  ;;  %8685 = vmatpush3.bf16.msra.mxu1 %v11792_v38  ;;  %v11797_v38 = vld [vmem:[#allocation24_spill] sm:$0xff]  ;;  %v11798_v26 = vld [vmem:[#allocation25_spill] sm:$0xff] }
 0x25e   :  { %8638 = vmatprep.subr.bf16.mxu0 %v11741_v1  ;;  %8686 = vmatprep.subr.bf16.mxu1 %v11741_v1 }
 0x261   :  { %8640 = vmatpush3.bf16.msra.mxu0 %v11793_v51  ;;  %8688 = vmatpush3.bf16.msra.mxu1 %v11794_v32  ;;  %v11799_v32 = vld [vmem:[#allocation26_spill] sm:$0xff]  ;;  %v11800_v51 = vld [vmem:[#allocation27_spill] sm:$0xff] }
 0x262   :  { %8641 = vmatprep.subr.bf16.mxu0 %v11741_v1  ;;  %8689 = vmatprep.subr.bf16.mxu1 %v11741_v1 }
 0x265   :  { %8643 = vmatpush3.bf16.msra.mxu0 %v11795_v3  ;;  %8691 = vmatpush3.bf16.msra.mxu1 %v11796_v21 }
 0x266   :  { %8644 = vmatprep.subr.bf16.mxu0 %v11741_v1  ;;  %8692 = vmatprep.subr.bf16.mxu1 %v11741_v1 }
 0x269   :  { %8646 = vmatpush3.bf16.msra.mxu0 %v11797_v38  ;;  %8694 = vmatpush3.bf16.msra.mxu1 %v11798_v26 }
 0x26a   :  { %8647 = vmatprep.subr.bf16.mxu0 %v11741_v1  ;;  %8695 = vmatprep.subr.bf16.mxu1 %v11741_v1 }
 0x26d   :  { %8649 = vmatpush3.bf16.msra.mxu0 %v11799_v32  ;;  %8697 = vmatpush3.bf16.msra.mxu1 %v11800_v51 }
 0x26e   :  { %8650 = vmatprep.subr.bf16.mxu0 %v11741_v1  ;;  %8698 = vmatprep.subr.bf16.mxu1 %v11741_v1  ;;  %v10639_v1 = vld [vmem:[#allocation2] sm:$0xff] }
 0x26f   :  { %1938 = vperm.xlu1 %9863, %v10639_v1  }
 0x2e3   :  { %v911_v21 = vpop.f32.mrb[4].mxu0  ;;  %v1055_v3 = vpop.f32.mrb[4].mxu1 }
 0x2e4   :  { %v915_v20 = vmul.f32 0.5, %v911_v21  ;;  %v6351_v15 = vpop.f32.mrb[5].mxu0  ;;  %v6421_v14 = vpop.f32.mrb[5].mxu1 }
 0x2e6   :  { %9879 = vtanh.f32 %v915_v20 }
 0x2e7   :  { %9881 = vtanh.f32 %v1055_v3  ;;  %v11805_v3 = vld [vmem:[#allocation43_spill] sm:$0xff] }
 0x2f0   :  { %v9880_v26 = vpop.eup %9879 }
 0x2f1   :  { %v917_v38 = vmul.f32 0.5, %v9880_v26  ;;  %v9882_v6 = vpop.eup %9881 }
 0x2f3   :  { %v918_v10 = vadd.f32 0.5, %v917_v38  ;;  %v11801_v38 = vmov 0.0|0.0  }
 0x2f5   :  { %v1060_v58 = vmul.f32 %v9882_v6, %v918_v10 }
 0x323   :  { %v1197_v55 = vpop.f32.mrb[6].mxu0  ;;  %v1343_v32 = vpop.f32.mrb[6].mxu1 }
 0x324   :  { %v1201_v19 = vmul.f32 0.5, %v1197_v55  ;;  %v6491_v51 = vpop.f32.mrb[7].mxu0  ;;  %v6561_v16 = vpop.f32.mrb[7].mxu1  ;;  %v1347_v14 = vmul.f32 0.5, %v1343_v32  ;;  %v11804_v32 = vld [vmem:[#allocation42_spill] sm:$0xff] }
 0x325   :  { %v11803_v51 = vld [vmem:[#allocation41_spill] sm:$0xff] }
 0x326   :  { %9883 = vtanh.f32 %v1201_v19 }
 0x327   :  { %9885 = vtanh.f32 %v1347_v14  ;;  %v11806_v14 = vld [vmem:[#allocation44_spill] sm:$0xff] }
 0x330   :  { %v9884_v15 = vpop.eup %9883 }
 0x331   :  { %v1203_v20 = vmul.f32 0.5, %v9884_v15  ;;  %v9886_v10 = vpop.eup %9885  ;;  %v11807_v15 = vld [vmem:[#allocation12_spill] sm:$0xff] }
 0x332   :  { %v1349_v16 = vmul.f32 0.5, %v9886_v10  ;;  %v11811_v10 = vld [vmem:[#allocation16_spill] sm:$0xff] }
 0x333   :  { %v1204_v21 = vadd.f32 0.5, %v1203_v20  ;;  %v11808_v20 = vld [vmem:[#allocation13_spill] sm:$0xff] }
 0x334   :  { %v1350_v19 = vadd.f32 0.5, %v1349_v16  ;;  %v11812_v16 = vld [vmem:[#allocation17_spill] sm:$0xff] }
 0x335   :  { %v1205_v26 = vmul.f32 %v1204_v21, %v10466_v42  ;;  %v11802_v42 = vld [vmem:[#allocation40_spill] sm:$0xff]  ;;  %v11809_v21 = vld [vmem:[#allocation14_spill] sm:$0xff] }
 0x337   :  { %v10643_v6 = vadd.f32 %v1205_v26, %v1060_v58  ;;  %v10682_v58 = vpop.permute.xlu1 %1354  ;;  %v11810_v26 = vld [vmem:[#allocation15_spill] sm:$0xff] }
 0x338   :  { %vm1356_vm3 = vcmp.eq.s32.totalorder %v10682_v58, %v10269_v4  ;;  %v11816_v58 = vld [vmem:[#allocation21_spill] sm:$0xff] }
 0x339   :  { %9887 = vtanh.f32 %v10643_v6 }
 0x343   :  { %v9888_v55 = vpop.eup %9887 }
 0x344   :  { %v10646_v2 = vmul.f32 %v9888_v55, %v1350_v19  ;;  %v11813_v19 = vld [vmem:[#allocation18_spill] sm:$0xff]  ;;  %v11814_v55 = vld [vmem:[#allocation19_spill] sm:$0xff] }
 0x346   :  { %6595 = vmatmul.mubr.f32.vlgmr.msra.gmra.mrb[8].mxu0 %v10646_v2  ;;  %6665 = vmatmul.mubr.f32.vlgmr.msra.gmra.mrb[8].mxu1 %v10646_v2 }
 0x347   :  { %8652 = vmatpush3.bf16.msra.mxu0 %v10195_v56  ;;  %8700 = vmatpush3.bf16.msra.mxu1 %v10199_v57 }
 0x348   :  { %8653 = vmatprep.subr.bf16.mxu0 %v11801_v38  ;;  %8701 = vmatprep.subr.bf16.mxu1 %v11801_v38 }
 0x349   :  { %6629 = vmatprep.mubr.msk.f32.mxu0 %vm10052_vm0, %v11779_v22  ;;  %6699 = vmatprep.mubr.msk.f32.mxu1 %vm10052_vm0, %v11779_v22 }
 0x34b   :  { %8655 = vmatpush3.bf16.msra.mxu0 %v10205_v62  ;;  %8703 = vmatpush3.bf16.msra.mxu1 %v10209_v63 }
 0x34c   :  { %8656 = vmatprep.subr.bf16.mxu0 %v11801_v38  ;;  %8704 = vmatprep.subr.bf16.mxu1 %v11801_v38 }
 0x34f   :  { %8658 = vmatpush3.bf16.msra.mxu0 %v10217_v8  ;;  %8706 = vmatpush3.bf16.msra.mxu1 %v10221_v9 }
 0x350   :  { %8659 = vmatprep.subr.bf16.mxu0 %v11801_v38  ;;  %8707 = vmatprep.subr.bf16.mxu1 %v11801_v38 }
 0x353   :  { %8661 = vmatpush3.bf16.msra.mxu0 %v10225_v17  ;;  %8709 = vmatpush3.bf16.msra.mxu1 %v10229_v18 }
 0x354   :  { %8662 = vmatprep.subr.bf16.mxu0 %v11801_v38  ;;  %8710 = vmatprep.subr.bf16.mxu1 %v11801_v38 }
 0x357   :  { %8664 = vmatpush3.bf16.msra.mxu0 %v10233_v25  ;;  %8712 = vmatpush3.bf16.msra.mxu1 %v10237_v28 }
 0x358   :  { %8665 = vmatprep.subr.bf16.mxu0 %v11801_v38  ;;  %8713 = vmatprep.subr.bf16.mxu1 %v11801_v38 }
 0x35b   :  { %8667 = vmatpush3.bf16.msra.mxu0 %v10241_v35  ;;  %8715 = vmatpush3.bf16.msra.mxu1 %v10245_v36 }
 0x35c   :  { %8668 = vmatprep.subr.bf16.mxu0 %v11801_v38  ;;  %8716 = vmatprep.subr.bf16.mxu1 %v11801_v38 }
 0x35f   :  { %8670 = vmatpush3.bf16.msra.mxu0 %v10249_v43  ;;  %8718 = vmatpush3.bf16.msra.mxu1 %v10253_v46 }
 0x360   :  { %8671 = vmatprep.subr.bf16.mxu0 %v11801_v38  ;;  %8719 = vmatprep.subr.bf16.mxu1 %v11801_v38 }
 0x363   :  { %8673 = vmatpush3.bf16.msra.mxu0 %v10257_v53  ;;  %8721 = vmatpush3.bf16.msra.mxu1 %v10261_v54 }
 0x364   :  { %8722 = vmatprep.subr.bf16.mxu0 %v11801_v38  ;;  %8770 = vmatprep.subr.bf16.mxu1 %v11801_v38 }
 0x366   :  { %6630 = vmatmul.mubr.msk.f32.vlgmr.msra.gmra.mrb[8].mxu0 %vm1356_vm3, %v11778_v31  ;;  %6700 = vmatmul.mubr.msk.f32.vlgmr.msra.gmra.mrb[8].mxu1 %vm1356_vm3, %v11778_v31 }
 0x367   :  { %8724 = vmatpush3.bf16.msra.mxu0 %v10271_v5  ;;  %8772 = vmatpush3.bf16.msra.mxu1 %v10273_v7 }
 0x368   :  { %8725 = vmatprep.subr.bf16.mxu0 %v11801_v38  ;;  %8773 = vmatprep.subr.bf16.mxu1 %v11801_v38 }
 0x369   :  { %6734 = vmatprep.mubr.msk.f32.mxu0 %vm10052_vm0, %v11779_v22  ;;  %6804 = vmatprep.mubr.msk.f32.mxu1 %vm10052_vm0, %v11779_v22 }
 0x36b   :  { %8727 = vmatpush3.bf16.msra.mxu0 %v10289_v23  ;;  %8775 = vmatpush3.bf16.msra.mxu1 %v10291_v24 }
 0x36c   :  { %8728 = vmatprep.subr.bf16.mxu0 %v11801_v38  ;;  %8776 = vmatprep.subr.bf16.mxu1 %v11801_v38 }
 0x36f   :  { %8730 = vmatpush3.bf16.msra.mxu0 %v10301_v37  ;;  %8778 = vmatpush3.bf16.msra.mxu1 %v10303_v40 }
 0x370   :  { %8731 = vmatprep.subr.bf16.mxu0 %v11801_v38  ;;  %8779 = vmatprep.subr.bf16.mxu1 %v11801_v38 }
 0x373   :  { %8733 = vmatpush3.bf16.msra.mxu0 %v10309_v49  ;;  %8781 = vmatpush3.bf16.msra.mxu1 %v10311_v52 }
 0x374   :  { %8734 = vmatprep.subr.bf16.mxu0 %v11801_v38  ;;  %8782 = vmatprep.subr.bf16.mxu1 %v11801_v38 }
 0x377   :  { %8736 = vmatpush3.bf16.msra.mxu0 %v10317_v61  ;;  %8784 = vmatpush3.bf16.msra.mxu1 %v10319_v0 }
 0x378   :  { %8737 = vmatprep.subr.bf16.mxu0 %v11801_v38  ;;  %8785 = vmatprep.subr.bf16.mxu1 %v11801_v38 }
 0x37b   :  { %8739 = vmatpush3.bf16.msra.mxu0 %v10325_v29  ;;  %8787 = vmatpush3.bf16.msra.mxu1 %v10327_v30 }
 0x37c   :  { %8740 = vmatprep.subr.bf16.mxu0 %v11801_v38  ;;  %8788 = vmatprep.subr.bf16.mxu1 %v11801_v38 }
 0x37f   :  { %8742 = vmatpush3.bf16.msra.mxu0 %v10333_v47  ;;  %8790 = vmatpush3.bf16.msra.mxu1 %v10335_v48 }
 0x380   :  { %8743 = vmatprep.subr.bf16.mxu0 %v11801_v38  ;;  %8791 = vmatprep.subr.bf16.mxu1 %v11801_v38 }
 0x383   :  { %8745 = vmatpush3.bf16.msra.mxu0 %v10341_v11  ;;  %8793 = vmatpush3.bf16.msra.mxu1 %v11780_v27 }
 0x384   :  { %8746 = vmatprep.subr.bf16.mxu0 %v11801_v38  ;;  %8794 = vmatprep.subr.bf16.mxu1 %v11801_v38 }
 0x386   :  { %6735 = vmatmul.mubr.f32.vlgmr.msra.gmra.mrb[10].mxu0 %v10646_v2  ;;  %6805 = vmatmul.mubr.f32.vlgmr.msra.gmra.mrb[10].mxu1 %v10646_v2  ;;  %v11815_v2 = vld [vmem:[#allocation20_spill] sm:$0xff] }
 0x387   :  { %8748 = vmatpush3.bf16.msra.mxu0 %v11781_v33  ;;  %8796 = vmatpush3.bf16.msra.mxu1 %v11782_v39 }
 0x388   :  { %8749 = vmatprep.subr.bf16.mxu0 %v11801_v38  ;;  %8797 = vmatprep.subr.bf16.mxu1 %v11801_v38 }
 0x389   :  { %6769 = vmatprep.mubr.msk.f32.mxu0 %vm10052_vm0, %v11779_v22  ;;  %6839 = vmatprep.mubr.msk.f32.mxu1 %vm10052_vm0, %v11779_v22 }
 0x38b   :  { %8751 = vmatpush3.bf16.msra.mxu0 %v11783_v50  ;;  %8799 = vmatpush3.bf16.msra.mxu1 %v11784_v60 }
 0x38c   :  { %8752 = vmatprep.subr.bf16.mxu0 %v11801_v38  ;;  %8800 = vmatprep.subr.bf16.mxu1 %v11801_v38 }
 0x38f   :  { %8754 = vmatpush3.bf16.msra.mxu0 %v11785_v12  ;;  %8802 = vmatpush3.bf16.msra.mxu1 %v11786_v59 }
 0x390   :  { %8755 = vmatprep.subr.bf16.mxu0 %v11801_v38  ;;  %8803 = vmatprep.subr.bf16.mxu1 %v11801_v38 }
 0x393   :  { %8757 = vmatpush3.bf16.msra.mxu0 %v11787_v41  ;;  %8805 = vmatpush3.bf16.msra.mxu1 %v11788_v13 }
 0x394   :  { %8758 = vmatprep.subr.bf16.mxu0 %v11801_v38  ;;  %8806 = vmatprep.subr.bf16.mxu1 %v11801_v38 }
 0x397   :  { %8760 = vmatpush3.bf16.msra.mxu0 %v11789_v34  ;;  %8808 = vmatpush3.bf16.msra.mxu1 %v11790_v44 }
 0x398   :  { %8761 = vmatprep.subr.bf16.mxu0 %v11801_v38  ;;  %8809 = vmatprep.subr.bf16.mxu1 %v11801_v38 }
 0x39b   :  { %8763 = vmatpush3.bf16.msra.mxu0 %v11791_v45  ;;  %8811 = vmatpush3.bf16.msra.mxu1 %v11802_v42  ;;  %v10058_v45 = vmov 4  }
 0x39c   :  { %8764 = vmatprep.subr.bf16.mxu0 %v11801_v38  ;;  %8812 = vmatprep.subr.bf16.mxu1 %v11801_v38 }
 0x39d   :  { %9864 = vset.pattern.permute.xlu1 %v10058_v45  ;;  %v10857_v45 = vpop.permute.xlu1 %1938 }
 0x39e   :  { %2522 = vperm.xlu1 %9864, %v10639_v1   ;;  %vm1940_vm4 = vcmp.eq.s32.totalorder %v10857_v45, %v10269_v4  ;;  %v11838_v45 = vld [vmem:[#allocation21_spill] sm:$0xff] }
 0x39f   :  { %8766 = vmatpush3.bf16.msra.mxu0 %v11803_v51  ;;  %8814 = vmatpush3.bf16.msra.mxu1 %v11804_v32 }
 0x3a0   :  { %8767 = vmatprep.subr.bf16.mxu0 %v11801_v38  ;;  %8815 = vmatprep.subr.bf16.mxu1 %v11801_v38 }
 0x3a3   :  { %8769 = vmatpush3.bf16.msra.mxu0 %v11805_v3  ;;  %8817 = vmatpush3.bf16.msra.mxu1 %v11806_v14 }
 0x3a4   :  { %8818 = vmatprep.subr.bf16.mxu0 %v11801_v38  ;;  %8866 = vmatprep.subr.bf16.mxu1 %v11801_v38 }
 0x3a6   :  { %6770 = vmatmul.mubr.msk.f32.vlgmr.msra.gmra.mrb[10].mxu0 %vm1356_vm3, %v11778_v31  ;;  %6840 = vmatmul.mubr.msk.f32.vlgmr.msra.gmra.mrb[10].mxu1 %vm1356_vm3, %v11778_v31 }
 0x3a7   :  { %8820 = vmatpush3.bf16.msra.mxu0 %v11807_v15  ;;  %8868 = vmatpush3.bf16.msra.mxu1 %v11808_v20 }
 0x3a8   :  { %8821 = vmatprep.subr.bf16.mxu0 %v11801_v38  ;;  %8869 = vmatprep.subr.bf16.mxu1 %v11801_v38 }
 0x3a9   :  { %6874 = vmatprep.mubr.msk.f32.mxu0 %vm10052_vm0, %v11779_v22  ;;  %6944 = vmatprep.mubr.msk.f32.mxu1 %vm10052_vm0, %v11779_v22 }
 0x3ab   :  { %8823 = vmatpush3.bf16.msra.mxu0 %v11809_v21  ;;  %8871 = vmatpush3.bf16.msra.mxu1 %v11810_v26 }
 0x3ac   :  { %8824 = vmatprep.subr.bf16.mxu0 %v11801_v38  ;;  %8872 = vmatprep.subr.bf16.mxu1 %v11801_v38 }
 0x3af   :  { %8826 = vmatpush3.bf16.msra.mxu0 %v11811_v10  ;;  %8874 = vmatpush3.bf16.msra.mxu1 %v11812_v16  ;;  %v11817_v16 = vld [vmem:[#allocation22_spill] sm:$0xff]  ;;  %v11818_v10 = vld [vmem:[#allocation23_spill] sm:$0xff] }
 0x3b0   :  { %8827 = vmatprep.subr.bf16.mxu0 %v11801_v38  ;;  %8875 = vmatprep.subr.bf16.mxu1 %v11801_v38 }
 0x3b3   :  { %8829 = vmatpush3.bf16.msra.mxu0 %v11813_v19  ;;  %8877 = vmatpush3.bf16.msra.mxu1 %v11814_v55  ;;  %v11819_v55 = vld [vmem:[#allocation24_spill] sm:$0xff]  ;;  %v11820_v19 = vld [vmem:[#allocation25_spill] sm:$0xff] }
 0x3b4   :  { %8830 = vmatprep.subr.bf16.mxu0 %v11801_v38  ;;  %8878 = vmatprep.subr.bf16.mxu1 %v11801_v38 }
 0x3b7   :  { %8832 = vmatpush3.bf16.msra.mxu0 %v11815_v2  ;;  %8880 = vmatpush3.bf16.msra.mxu1 %v11816_v58  ;;  %v11821_v58 = vld [vmem:[#allocation26_spill] sm:$0xff]  ;;  %v11822_v2 = vld [vmem:[#allocation27_spill] sm:$0xff] }
 0x3b8   :  { %8833 = vmatprep.subr.bf16.mxu0 %v11801_v38  ;;  %8881 = vmatprep.subr.bf16.mxu1 %v11801_v38 }
 0x3bb   :  { %8835 = vmatpush3.bf16.msra.mxu0 %v11817_v16  ;;  %8883 = vmatpush3.bf16.msra.mxu1 %v11818_v10 }
 0x3bc   :  { %8836 = vmatprep.subr.bf16.mxu0 %v11801_v38  ;;  %8884 = vmatprep.subr.bf16.mxu1 %v11801_v38 }
 0x3bf   :  { %8838 = vmatpush3.bf16.msra.mxu0 %v11819_v55  ;;  %8886 = vmatpush3.bf16.msra.mxu1 %v11820_v19 }
 0x3c0   :  { %8839 = vmatprep.subr.bf16.mxu0 %v11801_v38  ;;  %8887 = vmatprep.subr.bf16.mxu1 %v11801_v38 }
 0x3c3   :  { %8841 = vmatpush3.bf16.msra.mxu0 %v11821_v58  ;;  %8889 = vmatpush3.bf16.msra.mxu1 %v11822_v2 }
 0x3c4   :  { %8842 = vmatprep.subr.bf16.mxu0 %v11801_v38  ;;  %8890 = vmatprep.subr.bf16.mxu1 %v11801_v38 }
 0x439   :  { %v1495_v10 = vpop.f32.mrb[8].mxu0  ;;  %v1639_v16 = vpop.f32.mrb[8].mxu1 }
 0x43a   :  { %v1499_v26 = vmul.f32 0.5, %v1495_v10  ;;  %v6631_v21 = vpop.f32.mrb[9].mxu0  ;;  %v6701_v20 = vpop.f32.mrb[9].mxu1 }
 0x43c   :  { %9889 = vtanh.f32 %v1499_v26 }
 0x43d   :  { %9891 = vtanh.f32 %v1639_v16 }
 0x446   :  { %v9890_v19 = vpop.eup %9889 }
 0x447   :  { %v1501_v55 = vmul.f32 0.5, %v9890_v19  ;;  %v9892_v14 = vpop.eup %9891 }
 0x449   :  { %v1502_v15 = vadd.f32 0.5, %v1501_v55  ;;  %v11825_v55 = vld [vmem:[#allocation41_spill] sm:$0xff] }
 0x44b   :  { %v1644_v3 = vmul.f32 %v9892_v14, %v1502_v15 }
 0x479   :  { %v1781_v32 = vpop.f32.mrb[10].mxu0  ;;  %v1927_v58 = vpop.f32.mrb[10].mxu1 }
 0x47a   :  { %v1785_v51 = vmul.f32 0.5, %v1781_v32  ;;  %v6771_v2 = vpop.f32.mrb[11].mxu0  ;;  %v6841_v42 = vpop.f32.mrb[11].mxu1  ;;  %v1931_v10 = vmul.f32 0.5, %v1927_v58  ;;  %v11827_v58 = vld [vmem:[#allocation43_spill] sm:$0xff] }
 0x47b   :  { %v11826_v2 = vld [vmem:[#allocation42_spill] sm:$0xff] }
 0x47c   :  { %9893 = vtanh.f32 %v1785_v51 }
 0x47d   :  { %9895 = vtanh.f32 %v1931_v10  ;;  %v11828_v10 = vld [vmem:[#allocation44_spill] sm:$0xff] }
 0x486   :  { %v9894_v21 = vpop.eup %9893 }
 0x487   :  { %v1787_v20 = vmul.f32 0.5, %v9894_v21  ;;  %v9896_v14 = vpop.eup %9895  ;;  %v11829_v21 = vld [vmem:[#allocation12_spill] sm:$0xff] }
 0x488   :  { %v1933_v32 = vmul.f32 0.5, %v9896_v14  ;;  %v11833_v14 = vld [vmem:[#allocation16_spill] sm:$0xff] }
 0x489   :  { %v1788_v26 = vadd.f32 0.5, %v1787_v20  ;;  %v11830_v20 = vld [vmem:[#allocation13_spill] sm:$0xff] }
 0x48a   :  { %v1934_v15 = vadd.f32 0.5, %v1933_v32  ;;  %v11834_v32 = vld [vmem:[#allocation17_spill] sm:$0xff] }
 0x48b   :  { %v1789_v16 = vmul.f32 %v1788_v26, %v10643_v6  ;;  %v11823_v6 = vld [vmem:[#allocation39_spill] sm:$0xff]  ;;  %v11831_v26 = vld [vmem:[#allocation14_spill] sm:$0xff] }
 0x48d   :  { %v10818_v19 = vadd.f32 %v1789_v16, %v1644_v3  ;;  %v11824_v3 = vld [vmem:[#allocation40_spill] sm:$0xff]  ;;  %v11832_v16 = vld [vmem:[#allocation15_spill] sm:$0xff] }
 0x48f   :  { %9897 = vtanh.f32 %v10818_v19 }
 0x499   :  { %v9898_v42 = vpop.eup %9897 }
 0x49a   :  { %v10821_v51 = vmul.f32 %v9898_v42, %v1934_v15  ;;  %v11835_v15 = vld [vmem:[#allocation18_spill] sm:$0xff]  ;;  %v11836_v42 = vld [vmem:[#allocation19_spill] sm:$0xff] }
 0x49c   :  { %6875 = vmatmul.mubr.f32.vlgmr.msra.gmra.mrb[12].mxu0 %v10821_v51  ;;  %6945 = vmatmul.mubr.f32.vlgmr.msra.gmra.mrb[12].mxu1 %v10821_v51 }
 0x49d   :  { %8844 = vmatpush3.bf16.msra.mxu0 %v10195_v56  ;;  %8892 = vmatpush3.bf16.msra.mxu1 %v10199_v57 }
 0x49e   :  { %8845 = vmatprep.subr.bf16.mxu0 %v11801_v38  ;;  %8893 = vmatprep.subr.bf16.mxu1 %v11801_v38 }
 0x49f   :  { %6909 = vmatprep.mubr.msk.f32.mxu0 %vm10052_vm0, %v11779_v22  ;;  %6979 = vmatprep.mubr.msk.f32.mxu1 %vm10052_vm0, %v11779_v22 }
 0x4a1   :  { %8847 = vmatpush3.bf16.msra.mxu0 %v10205_v62  ;;  %8895 = vmatpush3.bf16.msra.mxu1 %v10209_v63 }
 0x4a2   :  { %8848 = vmatprep.subr.bf16.mxu0 %v11801_v38  ;;  %8896 = vmatprep.subr.bf16.mxu1 %v11801_v38 }
 0x4a5   :  { %8850 = vmatpush3.bf16.msra.mxu0 %v10217_v8  ;;  %8898 = vmatpush3.bf16.msra.mxu1 %v10221_v9 }
 0x4a6   :  { %8851 = vmatprep.subr.bf16.mxu0 %v11801_v38  ;;  %8899 = vmatprep.subr.bf16.mxu1 %v11801_v38 }
 0x4a9   :  { %8853 = vmatpush3.bf16.msra.mxu0 %v10225_v17  ;;  %8901 = vmatpush3.bf16.msra.mxu1 %v10229_v18 }
 0x4aa   :  { %8854 = vmatprep.subr.bf16.mxu0 %v11801_v38  ;;  %8902 = vmatprep.subr.bf16.mxu1 %v11801_v38 }
 0x4ad   :  { %8856 = vmatpush3.bf16.msra.mxu0 %v10233_v25  ;;  %8904 = vmatpush3.bf16.msra.mxu1 %v10237_v28 }
 0x4ae   :  { %8857 = vmatprep.subr.bf16.mxu0 %v11801_v38  ;;  %8905 = vmatprep.subr.bf16.mxu1 %v11801_v38 }
 0x4b1   :  { %8859 = vmatpush3.bf16.msra.mxu0 %v10241_v35  ;;  %8907 = vmatpush3.bf16.msra.mxu1 %v10245_v36 }
 0x4b2   :  { %8860 = vmatprep.subr.bf16.mxu0 %v11801_v38  ;;  %8908 = vmatprep.subr.bf16.mxu1 %v11801_v38 }
 0x4b5   :  { %8862 = vmatpush3.bf16.msra.mxu0 %v10249_v43  ;;  %8910 = vmatpush3.bf16.msra.mxu1 %v10253_v46 }
 0x4b6   :  { %8863 = vmatprep.subr.bf16.mxu0 %v11801_v38  ;;  %8911 = vmatprep.subr.bf16.mxu1 %v11801_v38 }
 0x4b9   :  { %8865 = vmatpush3.bf16.msra.mxu0 %v10257_v53  ;;  %8913 = vmatpush3.bf16.msra.mxu1 %v10261_v54 }
 0x4ba   :  { %8914 = vmatprep.subr.bf16.mxu0 %v11801_v38  ;;  %8962 = vmatprep.subr.bf16.mxu1 %v11801_v38 }
 0x4bc   :  { %6910 = vmatmul.mubr.msk.f32.vlgmr.msra.gmra.mrb[12].mxu0 %vm1940_vm4, %v11778_v31  ;;  %6980 = vmatmul.mubr.msk.f32.vlgmr.msra.gmra.mrb[12].mxu1 %vm1940_vm4, %v11778_v31 }
 0x4bd   :  { %8916 = vmatpush3.bf16.msra.mxu0 %v10271_v5  ;;  %8964 = vmatpush3.bf16.msra.mxu1 %v10273_v7 }
 0x4be   :  { %8917 = vmatprep.subr.bf16.mxu0 %v11801_v38  ;;  %8965 = vmatprep.subr.bf16.mxu1 %v11801_v38 }
 0x4bf   :  { %7014 = vmatprep.mubr.msk.f32.mxu0 %vm10052_vm0, %v11779_v22  ;;  %7084 = vmatprep.mubr.msk.f32.mxu1 %vm10052_vm0, %v11779_v22 }
 0x4c1   :  { %8919 = vmatpush3.bf16.msra.mxu0 %v10289_v23  ;;  %8967 = vmatpush3.bf16.msra.mxu1 %v10291_v24 }
 0x4c2   :  { %8920 = vmatprep.subr.bf16.mxu0 %v11801_v38  ;;  %8968 = vmatprep.subr.bf16.mxu1 %v11801_v38 }
 0x4c5   :  { %8922 = vmatpush3.bf16.msra.mxu0 %v10301_v37  ;;  %8970 = vmatpush3.bf16.msra.mxu1 %v10303_v40 }
 0x4c6   :  { %8923 = vmatprep.subr.bf16.mxu0 %v11801_v38  ;;  %8971 = vmatprep.subr.bf16.mxu1 %v11801_v38 }
 0x4c9   :  { %8925 = vmatpush3.bf16.msra.mxu0 %v10309_v49  ;;  %8973 = vmatpush3.bf16.msra.mxu1 %v10311_v52 }
 0x4ca   :  { %8926 = vmatprep.subr.bf16.mxu0 %v11801_v38  ;;  %8974 = vmatprep.subr.bf16.mxu1 %v11801_v38 }
 0x4cd   :  { %8928 = vmatpush3.bf16.msra.mxu0 %v10317_v61  ;;  %8976 = vmatpush3.bf16.msra.mxu1 %v10319_v0 }
 0x4ce   :  { %8929 = vmatprep.subr.bf16.mxu0 %v11801_v38  ;;  %8977 = vmatprep.subr.bf16.mxu1 %v11801_v38 }
 0x4d1   :  { %8931 = vmatpush3.bf16.msra.mxu0 %v10325_v29  ;;  %8979 = vmatpush3.bf16.msra.mxu1 %v10327_v30 }
 0x4d2   :  { %8932 = vmatprep.subr.bf16.mxu0 %v11801_v38  ;;  %8980 = vmatprep.subr.bf16.mxu1 %v11801_v38 }
 0x4d5   :  { %8934 = vmatpush3.bf16.msra.mxu0 %v10333_v47  ;;  %8982 = vmatpush3.bf16.msra.mxu1 %v10335_v48 }
 0x4d6   :  { %8935 = vmatprep.subr.bf16.mxu0 %v11801_v38  ;;  %8983 = vmatprep.subr.bf16.mxu1 %v11801_v38 }
 0x4d9   :  { %8937 = vmatpush3.bf16.msra.mxu0 %v10341_v11  ;;  %8985 = vmatpush3.bf16.msra.mxu1 %v11780_v27 }
 0x4da   :  { %8938 = vmatprep.subr.bf16.mxu0 %v11801_v38  ;;  %8986 = vmatprep.subr.bf16.mxu1 %v11801_v38 }
 0x4dc   :  { %7015 = vmatmul.mubr.f32.vlgmr.msra.gmra.mrb[14].mxu0 %v10821_v51  ;;  %7085 = vmatmul.mubr.f32.vlgmr.msra.gmra.mrb[14].mxu1 %v10821_v51  ;;  %v11837_v51 = vld [vmem:[#allocation20_spill] sm:$0xff] }
 0x4dd   :  { %8940 = vmatpush3.bf16.msra.mxu0 %v11781_v33  ;;  %8988 = vmatpush3.bf16.msra.mxu1 %v11782_v39 }
 0x4de   :  { %8941 = vmatprep.subr.bf16.mxu0 %v11801_v38  ;;  %8989 = vmatprep.subr.bf16.mxu1 %v11801_v38 }
 0x4df   :  { %7049 = vmatprep.mubr.msk.f32.mxu0 %vm10052_vm0, %v11779_v22  ;;  %7119 = vmatprep.mubr.msk.f32.mxu1 %vm10052_vm0, %v11779_v22 }
 0x4e1   :  { %8943 = vmatpush3.bf16.msra.mxu0 %v11783_v50  ;;  %8991 = vmatpush3.bf16.msra.mxu1 %v11784_v60 }
 0x4e2   :  { %8944 = vmatprep.subr.bf16.mxu0 %v11801_v38  ;;  %8992 = vmatprep.subr.bf16.mxu1 %v11801_v38 }
 0x4e5   :  { %8946 = vmatpush3.bf16.msra.mxu0 %v11785_v12  ;;  %8994 = vmatpush3.bf16.msra.mxu1 %v11786_v59 }
 0x4e6   :  { %8947 = vmatprep.subr.bf16.mxu0 %v11801_v38  ;;  %8995 = vmatprep.subr.bf16.mxu1 %v11801_v38 }
 0x4e9   :  { %8949 = vmatpush3.bf16.msra.mxu0 %v11787_v41  ;;  %8997 = vmatpush3.bf16.msra.mxu1 %v11788_v13 }
 0x4ea   :  { %8950 = vmatprep.subr.bf16.mxu0 %v11801_v38  ;;  %8998 = vmatprep.subr.bf16.mxu1 %v11801_v38 }
 0x4ed   :  { %8952 = vmatpush3.bf16.msra.mxu0 %v11789_v34  ;;  %9000 = vmatpush3.bf16.msra.mxu1 %v11790_v44 }
 0x4ee   :  { %8953 = vmatprep.subr.bf16.mxu0 %v11801_v38  ;;  %9001 = vmatprep.subr.bf16.mxu1 %v11801_v38 }
 0x4f1   :  { %8955 = vmatpush3.bf16.msra.mxu0 %v11823_v6  ;;  %9003 = vmatpush3.bf16.msra.mxu1 %v11824_v3  ;;  %v10059_v6 = vmov 5  }
 0x4f2   :  { %8956 = vmatprep.subr.bf16.mxu0 %v11801_v38  ;;  %9004 = vmatprep.subr.bf16.mxu1 %v11801_v38 }
 0x4f3   :  { %9865 = vset.pattern.permute.xlu0 %v10059_v6  ;;  %v11846_v6 = vld [vmem:[#allocation40_spill] sm:$0xff] }
 0x4f4   :  { %3106 = vperm.xlu0 %9865, %v10639_v1   ;;  %v11032_v1 = vpop.permute.xlu1 %2522 }
 0x4f5   :  { %8958 = vmatpush3.bf16.msra.mxu0 %v11825_v55  ;;  %9006 = vmatpush3.bf16.msra.mxu1 %v11826_v2  ;;  %vm2524_vm5 = vcmp.eq.s32.totalorder %v11032_v1, %v10269_v4  ;;  %v11861_v1 = vld [vmem:[#allocation22_spill] sm:$0xff] }
 0x4f6   :  { %8959 = vmatprep.subr.bf16.mxu0 %v11801_v38  ;;  %9007 = vmatprep.subr.bf16.mxu1 %v11801_v38 }
 0x4f9   :  { %8961 = vmatpush3.bf16.msra.mxu0 %v11827_v58  ;;  %9009 = vmatpush3.bf16.msra.mxu1 %v11828_v10 }
 0x4fa   :  { %9010 = vmatprep.subr.bf16.mxu0 %v11801_v38  ;;  %9058 = vmatprep.subr.bf16.mxu1 %v11801_v38 }
 0x4fc   :  { %7050 = vmatmul.mubr.msk.f32.vlgmr.msra.gmra.mrb[14].mxu0 %vm1940_vm4, %v11778_v31  ;;  %7120 = vmatmul.mubr.msk.f32.vlgmr.msra.gmra.mrb[14].mxu1 %vm1940_vm4, %v11778_v31 }
 0x4fd   :  { %9012 = vmatpush3.bf16.msra.mxu0 %v11829_v21  ;;  %9060 = vmatpush3.bf16.msra.mxu1 %v11830_v20 }
 0x4fe   :  { %9013 = vmatprep.subr.bf16.mxu0 %v11801_v38  ;;  %9061 = vmatprep.subr.bf16.mxu1 %v11801_v38 }
 0x4ff   :  { %7154 = vmatprep.mubr.msk.f32.mxu0 %vm10052_vm0, %v11779_v22  ;;  %7224 = vmatprep.mubr.msk.f32.mxu1 %vm10052_vm0, %v11779_v22 }
 0x501   :  { %9015 = vmatpush3.bf16.msra.mxu0 %v11831_v26  ;;  %9063 = vmatpush3.bf16.msra.mxu1 %v11832_v16 }
 0x502   :  { %9016 = vmatprep.subr.bf16.mxu0 %v11801_v38  ;;  %9064 = vmatprep.subr.bf16.mxu1 %v11801_v38 }
 0x505   :  { %9018 = vmatpush3.bf16.msra.mxu0 %v11833_v14  ;;  %9066 = vmatpush3.bf16.msra.mxu1 %v11834_v32  ;;  %v11839_v32 = vld [vmem:[#allocation22_spill] sm:$0xff]  ;;  %v11840_v14 = vld [vmem:[#allocation23_spill] sm:$0xff] }
 0x506   :  { %9019 = vmatprep.subr.bf16.mxu0 %v11801_v38  ;;  %9067 = vmatprep.subr.bf16.mxu1 %v11801_v38 }
 0x509   :  { %9021 = vmatpush3.bf16.msra.mxu0 %v11835_v15  ;;  %9069 = vmatpush3.bf16.msra.mxu1 %v11836_v42  ;;  %v11841_v42 = vld [vmem:[#allocation24_spill] sm:$0xff]  ;;  %v11842_v15 = vld [vmem:[#allocation25_spill] sm:$0xff] }
 0x50a   :  { %9022 = vmatprep.subr.bf16.mxu0 %v11801_v38  ;;  %9070 = vmatprep.subr.bf16.mxu1 %v11801_v38 }
 0x50d   :  { %9024 = vmatpush3.bf16.msra.mxu0 %v11837_v51  ;;  %9072 = vmatpush3.bf16.msra.mxu1 %v11838_v45  ;;  %v11843_v45 = vld [vmem:[#allocation26_spill] sm:$0xff]  ;;  %v11844_v51 = vld [vmem:[#allocation27_spill] sm:$0xff] }
 0x50e   :  { %9025 = vmatprep.subr.bf16.mxu0 %v11801_v38  ;;  %9073 = vmatprep.subr.bf16.mxu1 %v11801_v38 }
 0x511   :  { %9027 = vmatpush3.bf16.msra.mxu0 %v11839_v32  ;;  %9075 = vmatpush3.bf16.msra.mxu1 %v11840_v14 }
 0x512   :  { %9028 = vmatprep.subr.bf16.mxu0 %v11801_v38  ;;  %9076 = vmatprep.subr.bf16.mxu1 %v11801_v38 }
 0x515   :  { %9030 = vmatpush3.bf16.msra.mxu0 %v11841_v42  ;;  %9078 = vmatpush3.bf16.msra.mxu1 %v11842_v15 }
 0x516   :  { %9031 = vmatprep.subr.bf16.mxu0 %v11801_v38  ;;  %9079 = vmatprep.subr.bf16.mxu1 %v11801_v38 }
 0x519   :  { %9033 = vmatpush3.bf16.msra.mxu0 %v11843_v45  ;;  %9081 = vmatpush3.bf16.msra.mxu1 %v11844_v51 }
 0x51a   :  { %9034 = vmatprep.subr.bf16.mxu0 %v11801_v38  ;;  %9082 = vmatprep.subr.bf16.mxu1 %v11801_v38 }
 0x58f   :  { %v2079_v14 = vpop.f32.mrb[12].mxu0  ;;  %v2223_v32 = vpop.f32.mrb[12].mxu1 }
 0x590   :  { %v2083_v16 = vmul.f32 0.5, %v2079_v14  ;;  %v6911_v26 = vpop.f32.mrb[13].mxu0  ;;  %v6981_v20 = vpop.f32.mrb[13].mxu1 }
 0x592   :  { %9899 = vtanh.f32 %v2083_v16 }
 0x593   :  { %9901 = vtanh.f32 %v2223_v32 }
 0x59c   :  { %v9900_v15 = vpop.eup %9899 }
 0x59d   :  { %v2085_v42 = vmul.f32 0.5, %v9900_v15  ;;  %v9902_v10 = vpop.eup %9901 }
 0x59f   :  { %v2086_v21 = vadd.f32 0.5, %v2085_v42  ;;  %v11848_v42 = vld [vmem:[#allocation42_spill] sm:$0xff] }
 0x5a1   :  { %v2228_v58 = vmul.f32 %v9902_v10, %v2086_v21 }
 0x5cf   :  { %v2365_v2 = vpop.f32.mrb[14].mxu0  ;;  %v2511_v45 = vpop.f32.mrb[14].mxu1 }
 0x5d0   :  { %v2369_v55 = vmul.f32 0.5, %v2365_v2  ;;  %v7051_v51 = vpop.f32.mrb[15].mxu0  ;;  %v7121_v3 = vpop.f32.mrb[15].mxu1  ;;  %v2515_v14 = vmul.f32 0.5, %v2511_v45  ;;  %v11850_v45 = vld [vmem:[#allocation44_spill] sm:$0xff] }
 0x5d1   :  { %v11849_v51 = vld [vmem:[#allocation43_spill] sm:$0xff] }
 0x5d2   :  { %9903 = vtanh.f32 %v2369_v55 }
 0x5d3   :  { %9905 = vtanh.f32 %v2515_v14  ;;  %v11851_v14 = vld [vmem:[#allocation12_spill] sm:$0xff] }
 0x5dc   :  { %v9904_v26 = vpop.eup %9903 }
 0x5dd   :  { %v2371_v20 = vmul.f32 0.5, %v9904_v26  ;;  %v9906_v10 = vpop.eup %9905  ;;  %v11852_v26 = vld [vmem:[#allocation13_spill] sm:$0xff] }
 0x5de   :  { %v2517_v2 = vmul.f32 0.5, %v9906_v10  ;;  %v11856_v10 = vld [vmem:[#allocation17_spill] sm:$0xff] }
 0x5df   :  { %v2372_v16 = vadd.f32 0.5, %v2371_v20  ;;  %v11853_v20 = vld [vmem:[#allocation14_spill] sm:$0xff] }
 0x5e0   :  { %v2518_v21 = vadd.f32 0.5, %v2517_v2  ;;  %v11857_v2 = vld [vmem:[#allocation18_spill] sm:$0xff] }
 0x5e1   :  { %v2373_v32 = vmul.f32 %v2372_v16, %v10818_v19  ;;  %v11845_v19 = vld [vmem:[#allocation39_spill] sm:$0xff] }
 0x5e2   :  { %v11854_v16 = vld [vmem:[#allocation15_spill] sm:$0xff] }
 0x5e3   :  { %v10993_v15 = vadd.f32 %v2373_v32, %v2228_v58  ;;  %v11847_v58 = vld [vmem:[#allocation41_spill] sm:$0xff]  ;;  %v11855_v32 = vld [vmem:[#allocation16_spill] sm:$0xff] }
 0x5e5   :  { %9907 = vtanh.f32 %v10993_v15 }
 0x5ef   :  { %v9908_v3 = vpop.eup %9907 }
 0x5f0   :  { %v10996_v55 = vmul.f32 %v9908_v3, %v2518_v21  ;;  %v11858_v21 = vld [vmem:[#allocation19_spill] sm:$0xff]  ;;  %v11859_v3 = vld [vmem:[#allocation20_spill] sm:$0xff] }
 0x5f2   :  { %7155 = vmatmul.mubr.f32.vlgmr.msra.gmra.mrb[16].mxu0 %v10996_v55  ;;  %7225 = vmatmul.mubr.f32.vlgmr.msra.gmra.mrb[16].mxu1 %v10996_v55 }
 0x5f3   :  { %9036 = vmatpush3.bf16.msra.mxu0 %v10195_v56  ;;  %9084 = vmatpush3.bf16.msra.mxu1 %v10199_v57 }
 0x5f4   :  { %9037 = vmatprep.subr.bf16.mxu0 %v11801_v38  ;;  %9085 = vmatprep.subr.bf16.mxu1 %v11801_v38 }
 0x5f5   :  { %7189 = vmatprep.mubr.msk.f32.mxu0 %vm10052_vm0, %v11779_v22  ;;  %7259 = vmatprep.mubr.msk.f32.mxu1 %vm10052_vm0, %v11779_v22 }
 0x5f7   :  { %9039 = vmatpush3.bf16.msra.mxu0 %v10205_v62  ;;  %9087 = vmatpush3.bf16.msra.mxu1 %v10209_v63 }
 0x5f8   :  { %9040 = vmatprep.subr.bf16.mxu0 %v11801_v38  ;;  %9088 = vmatprep.subr.bf16.mxu1 %v11801_v38 }
 0x5fb   :  { %9042 = vmatpush3.bf16.msra.mxu0 %v10217_v8  ;;  %9090 = vmatpush3.bf16.msra.mxu1 %v10221_v9 }
 0x5fc   :  { %9043 = vmatprep.subr.bf16.mxu0 %v11801_v38  ;;  %9091 = vmatprep.subr.bf16.mxu1 %v11801_v38 }
 0x5ff   :  { %9045 = vmatpush3.bf16.msra.mxu0 %v10225_v17  ;;  %9093 = vmatpush3.bf16.msra.mxu1 %v10229_v18 }
 0x600   :  { %9046 = vmatprep.subr.bf16.mxu0 %v11801_v38  ;;  %9094 = vmatprep.subr.bf16.mxu1 %v11801_v38 }
 0x603   :  { %9048 = vmatpush3.bf16.msra.mxu0 %v10233_v25  ;;  %9096 = vmatpush3.bf16.msra.mxu1 %v10237_v28 }
 0x604   :  { %9049 = vmatprep.subr.bf16.mxu0 %v11801_v38  ;;  %9097 = vmatprep.subr.bf16.mxu1 %v11801_v38 }
 0x607   :  { %9051 = vmatpush3.bf16.msra.mxu0 %v10241_v35  ;;  %9099 = vmatpush3.bf16.msra.mxu1 %v10245_v36 }
 0x608   :  { %9052 = vmatprep.subr.bf16.mxu0 %v11801_v38  ;;  %9100 = vmatprep.subr.bf16.mxu1 %v11801_v38 }
 0x60b   :  { %9054 = vmatpush3.bf16.msra.mxu0 %v10249_v43  ;;  %9102 = vmatpush3.bf16.msra.mxu1 %v10253_v46 }
 0x60c   :  { %9055 = vmatprep.subr.bf16.mxu0 %v11801_v38  ;;  %9103 = vmatprep.subr.bf16.mxu1 %v11801_v38 }
 0x60f   :  { %9057 = vmatpush3.bf16.msra.mxu0 %v10257_v53  ;;  %9105 = vmatpush3.bf16.msra.mxu1 %v10261_v54 }
 0x610   :  { %9106 = vmatprep.subr.bf16.mxu0 %v11801_v38  ;;  %9154 = vmatprep.subr.bf16.mxu1 %v11801_v38 }
 0x612   :  { %7190 = vmatmul.mubr.msk.f32.vlgmr.msra.gmra.mrb[16].mxu0 %vm2524_vm5, %v11778_v31  ;;  %7260 = vmatmul.mubr.msk.f32.vlgmr.msra.gmra.mrb[16].mxu1 %vm2524_vm5, %v11778_v31 }
 0x613   :  { %9108 = vmatpush3.bf16.msra.mxu0 %v10271_v5  ;;  %9156 = vmatpush3.bf16.msra.mxu1 %v10273_v7 }
 0x614   :  { %9109 = vmatprep.subr.bf16.mxu0 %v11801_v38  ;;  %9157 = vmatprep.subr.bf16.mxu1 %v11801_v38 }
 0x615   :  { %7294 = vmatprep.mubr.msk.f32.mxu0 %vm10052_vm0, %v11779_v22  ;;  %7364 = vmatprep.mubr.msk.f32.mxu1 %vm10052_vm0, %v11779_v22 }
 0x617   :  { %9111 = vmatpush3.bf16.msra.mxu0 %v10289_v23  ;;  %9159 = vmatpush3.bf16.msra.mxu1 %v10291_v24 }
 0x618   :  { %9112 = vmatprep.subr.bf16.mxu0 %v11801_v38  ;;  %9160 = vmatprep.subr.bf16.mxu1 %v11801_v38 }
 0x61b   :  { %9114 = vmatpush3.bf16.msra.mxu0 %v10301_v37  ;;  %9162 = vmatpush3.bf16.msra.mxu1 %v10303_v40 }
 0x61c   :  { %9115 = vmatprep.subr.bf16.mxu0 %v11801_v38  ;;  %9163 = vmatprep.subr.bf16.mxu1 %v11801_v38 }
 0x61f   :  { %9117 = vmatpush3.bf16.msra.mxu0 %v10309_v49  ;;  %9165 = vmatpush3.bf16.msra.mxu1 %v10311_v52 }
 0x620   :  { %9118 = vmatprep.subr.bf16.mxu0 %v11801_v38  ;;  %9166 = vmatprep.subr.bf16.mxu1 %v11801_v38 }
 0x623   :  { %9120 = vmatpush3.bf16.msra.mxu0 %v10317_v61  ;;  %9168 = vmatpush3.bf16.msra.mxu1 %v10319_v0 }
 0x624   :  { %9121 = vmatprep.subr.bf16.mxu0 %v11801_v38  ;;  %9169 = vmatprep.subr.bf16.mxu1 %v11801_v38 }
 0x627   :  { %9123 = vmatpush3.bf16.msra.mxu0 %v10325_v29  ;;  %9171 = vmatpush3.bf16.msra.mxu1 %v10327_v30 }
 0x628   :  { %9124 = vmatprep.subr.bf16.mxu0 %v11801_v38  ;;  %9172 = vmatprep.subr.bf16.mxu1 %v11801_v38 }
 0x62b   :  { %9126 = vmatpush3.bf16.msra.mxu0 %v10333_v47  ;;  %9174 = vmatpush3.bf16.msra.mxu1 %v10335_v48 }
 0x62c   :  { %9127 = vmatprep.subr.bf16.mxu0 %v11801_v38  ;;  %9175 = vmatprep.subr.bf16.mxu1 %v11801_v38 }
 0x62f   :  { %9129 = vmatpush3.bf16.msra.mxu0 %v10341_v11  ;;  %9177 = vmatpush3.bf16.msra.mxu1 %v11780_v27 }
 0x630   :  { %9130 = vmatprep.subr.bf16.mxu0 %v11801_v38  ;;  %9178 = vmatprep.subr.bf16.mxu1 %v11801_v38 }
 0x632   :  { %7295 = vmatmul.mubr.f32.vlgmr.msra.gmra.mrb[18].mxu0 %v10996_v55  ;;  %7365 = vmatmul.mubr.f32.vlgmr.msra.gmra.mrb[18].mxu1 %v10996_v55  ;;  %v11860_v55 = vld [vmem:[#allocation21_spill] sm:$0xff] }
 0x633   :  { %9132 = vmatpush3.bf16.msra.mxu0 %v11781_v33  ;;  %9180 = vmatpush3.bf16.msra.mxu1 %v11782_v39 }
 0x634   :  { %9133 = vmatprep.subr.bf16.mxu0 %v11801_v38  ;;  %9181 = vmatprep.subr.bf16.mxu1 %v11801_v38 }
 0x635   :  { %7329 = vmatprep.mubr.msk.f32.mxu0 %vm10052_vm0, %v11779_v22  ;;  %7399 = vmatprep.mubr.msk.f32.mxu1 %vm10052_vm0, %v11779_v22 }
 0x637   :  { %9135 = vmatpush3.bf16.msra.mxu0 %v11783_v50  ;;  %9183 = vmatpush3.bf16.msra.mxu1 %v11784_v60 }
 0x638   :  { %9136 = vmatprep.subr.bf16.mxu0 %v11801_v38  ;;  %9184 = vmatprep.subr.bf16.mxu1 %v11801_v38 }
 0x63b   :  { %9138 = vmatpush3.bf16.msra.mxu0 %v11785_v12  ;;  %9186 = vmatpush3.bf16.msra.mxu1 %v11786_v59 }
 0x63c   :  { %9139 = vmatprep.subr.bf16.mxu0 %v11801_v38  ;;  %9187 = vmatprep.subr.bf16.mxu1 %v11801_v38 }
 0x63f   :  { %9141 = vmatpush3.bf16.msra.mxu0 %v11787_v41  ;;  %9189 = vmatpush3.bf16.msra.mxu1 %v11788_v13 }
 0x640   :  { %9142 = vmatprep.subr.bf16.mxu0 %v11801_v38  ;;  %9190 = vmatprep.subr.bf16.mxu1 %v11801_v38 }
 0x643   :  { %9144 = vmatpush3.bf16.msra.mxu0 %v11789_v34  ;;  %9192 = vmatpush3.bf16.msra.mxu1 %v11790_v44 }
 0x644   :  { %9145 = vmatprep.subr.bf16.mxu0 %v11801_v38  ;;  %9193 = vmatprep.subr.bf16.mxu1 %v11801_v38 }
 0x647   :  { %9147 = vmatpush3.bf16.msra.mxu0 %v11845_v19  ;;  %9195 = vmatpush3.bf16.msra.mxu1 %v11846_v6  ;;  %v10060_v6 = vmov 6   ;;  %v11166_v19 = vld [vmem:[#allocation2] sm:$0xff] }
 0x648   :  { %9148 = vmatprep.subr.bf16.mxu0 %v11801_v38  ;;  %9196 = vmatprep.subr.bf16.mxu1 %v11801_v38 }
 0x649   :  { %9866 = vset.pattern.permute.xlu1 %v10060_v6 }
 0x64a   :  { %3690 = vperm.xlu1 %9866, %v11166_v19  }
 0x64b   :  { %9150 = vmatpush3.bf16.msra.mxu0 %v11847_v58  ;;  %9198 = vmatpush3.bf16.msra.mxu1 %v11848_v42 }
 0x64c   :  { %9151 = vmatprep.subr.bf16.mxu0 %v11801_v38  ;;  %9199 = vmatprep.subr.bf16.mxu1 %v11801_v38 }
 0x64f   :  { %9153 = vmatpush3.bf16.msra.mxu0 %v11849_v51  ;;  %9201 = vmatpush3.bf16.msra.mxu1 %v11850_v45 }
 0x650   :  { %9202 = vmatprep.subr.bf16.mxu0 %v11801_v38  ;;  %9250 = vmatprep.subr.bf16.mxu1 %v11801_v38 }
 0x652   :  { %7330 = vmatmul.mubr.msk.f32.vlgmr.msra.gmra.mrb[18].mxu0 %vm2524_vm5, %v11778_v31  ;;  %7400 = vmatmul.mubr.msk.f32.vlgmr.msra.gmra.mrb[18].mxu1 %vm2524_vm5, %v11778_v31 }
 0x653   :  { %9204 = vmatpush3.bf16.msra.mxu0 %v11851_v14  ;;  %9252 = vmatpush3.bf16.msra.mxu1 %v11852_v26 }
 0x654   :  { %9205 = vmatprep.subr.bf16.mxu0 %v11801_v38  ;;  %9253 = vmatprep.subr.bf16.mxu1 %v11801_v38 }
 0x655   :  { %7434 = vmatprep.mubr.msk.f32.mxu0 %vm10052_vm0, %v11779_v22  ;;  %7504 = vmatprep.mubr.msk.f32.mxu1 %vm10052_vm0, %v11779_v22 }
 0x657   :  { %9207 = vmatpush3.bf16.msra.mxu0 %v11853_v20  ;;  %9255 = vmatpush3.bf16.msra.mxu1 %v11854_v16 }
 0x658   :  { %9208 = vmatprep.subr.bf16.mxu0 %v11801_v38  ;;  %9256 = vmatprep.subr.bf16.mxu1 %v11801_v38 }
 0x65b   :  { %9210 = vmatpush3.bf16.msra.mxu0 %v11855_v32  ;;  %9258 = vmatpush3.bf16.msra.mxu1 %v11856_v10  ;;  %v11862_v10 = vld [vmem:[#allocation23_spill] sm:$0xff] }
 0x65c   :  { %9211 = vmatprep.subr.bf16.mxu0 %v11801_v38  ;;  %9259 = vmatprep.subr.bf16.mxu1 %v11801_v38 }
 0x65f   :  { %9213 = vmatpush3.bf16.msra.mxu0 %v11857_v2  ;;  %9261 = vmatpush3.bf16.msra.mxu1 %v11858_v21  ;;  %v11863_v21 = vld [vmem:[#allocation24_spill] sm:$0xff]  ;;  %v11864_v2 = vld [vmem:[#allocation25_spill] sm:$0xff] }
 0x660   :  { %9214 = vmatprep.subr.bf16.mxu0 %v11801_v38  ;;  %9262 = vmatprep.subr.bf16.mxu1 %v11801_v38 }
 0x663   :  { %9216 = vmatpush3.bf16.msra.mxu0 %v11859_v3  ;;  %9264 = vmatpush3.bf16.msra.mxu1 %v11860_v55  ;;  %v11865_v55 = vld [vmem:[#allocation26_spill] sm:$0xff]  ;;  %v11866_v3 = vld [vmem:[#allocation27_spill] sm:$0xff] }
 0x664   :  { %9217 = vmatprep.subr.bf16.mxu0 %v11801_v38  ;;  %9265 = vmatprep.subr.bf16.mxu1 %v11801_v38 }
 0x667   :  { %9219 = vmatpush3.bf16.msra.mxu0 %v11861_v1  ;;  %9267 = vmatpush3.bf16.msra.mxu1 %v11862_v10 }
 0x668   :  { %9220 = vmatprep.subr.bf16.mxu0 %v11801_v38  ;;  %9268 = vmatprep.subr.bf16.mxu1 %v11801_v38 }
 0x66b   :  { %9222 = vmatpush3.bf16.msra.mxu0 %v11863_v21  ;;  %9270 = vmatpush3.bf16.msra.mxu1 %v11864_v2 }
 0x66c   :  { %9223 = vmatprep.subr.bf16.mxu0 %v11801_v38  ;;  %9271 = vmatprep.subr.bf16.mxu1 %v11801_v38 }
 0x66f   :  { %9225 = vmatpush3.bf16.msra.mxu0 %v11865_v55  ;;  %9273 = vmatpush3.bf16.msra.mxu1 %v11866_v3 }
 0x670   :  { %9226 = vmatprep.subr.bf16.mxu0 %v11801_v38  ;;  %9274 = vmatprep.subr.bf16.mxu1 %v11801_v38 }
 0x6e5   :  { %v2663_v10 = vpop.f32.mrb[16].mxu0  ;;  %v2807_v1 = vpop.f32.mrb[16].mxu1 }
 0x6e6   :  { %v2667_v32 = vmul.f32 0.5, %v2663_v10  ;;  %v7191_v16 = vpop.f32.mrb[17].mxu0  ;;  %v7261_v20 = vpop.f32.mrb[17].mxu1 }
 0x6e8   :  { %9909 = vtanh.f32 %v2667_v32 }
 0x6e9   :  { %9911 = vtanh.f32 %v2807_v1  ;;  %v11871_v1 = vld [vmem:[#allocation43_spill] sm:$0xff] }
 0x6f2   :  { %v9910_v2 = vpop.eup %9909 }
 0x6f3   :  { %v2669_v21 = vmul.f32 0.5, %v9910_v2  ;;  %v9912_v14 = vpop.eup %9911 }
 0x6f5   :  { %v2670_v26 = vadd.f32 0.5, %v2669_v21  ;;  %v11868_v21 = vld [vmem:[#allocation40_spill] sm:$0xff] }
 0x6f7   :  { %v2812_v45 = vmul.f32 %v9912_v14, %v2670_v26 }
 0x725   :  { %v2949_v51 = vpop.f32.mrb[18].mxu0  ;;  %v3095_v55 = vpop.f32.mrb[18].mxu1 }
 0x726   :  { %v2953_v42 = vmul.f32 0.5, %v2949_v51  ;;  %v7331_v3 = vpop.f32.mrb[19].mxu0  ;;  %v7401_v58 = vpop.f32.mrb[19].mxu1  ;;  %v3099_v20 = vmul.f32 0.5, %v3095_v55  ;;  %v11870_v55 = vld [vmem:[#allocation42_spill] sm:$0xff] }
 0x727   :  { %v11869_v3 = vld [vmem:[#allocation41_spill] sm:$0xff] }
 0x728   :  { %9913 = vtanh.f32 %v2953_v42 }
 0x729   :  { %9915 = vtanh.f32 %v3099_v20  ;;  %v11872_v20 = vld [vmem:[#allocation44_spill] sm:$0xff] }
 0x732   :  { %v9914_v16 = vpop.eup %9913 }
 0x733   :  { %v2955_v32 = vmul.f32 0.5, %v9914_v16  ;;  %v9916_v51 = vpop.eup %9915  ;;  %v11873_v16 = vld [vmem:[#allocation12_spill] sm:$0xff] }
 0x734   :  { %v3101_v58 = vmul.f32 0.5, %v9916_v51  ;;  %v11877_v51 = vld [vmem:[#allocation16_spill] sm:$0xff] }
 0x735   :  { %v2956_v10 = vadd.f32 0.5, %v2955_v32  ;;  %v11874_v32 = vld [vmem:[#allocation13_spill] sm:$0xff] }
 0x736   :  { %v3102_v42 = vadd.f32 0.5, %v3101_v58  ;;  %v11878_v58 = vld [vmem:[#allocation17_spill] sm:$0xff] }
 0x737   :  { %v2957_v2 = vmul.f32 %v2956_v10, %v10993_v15  ;;  %v11209_v15 = vpop.permute.xlu0 %3106  ;;  %v11875_v10 = vld [vmem:[#allocation14_spill] sm:$0xff] }
 0x738   :  { %vm3108_vm6 = vcmp.eq.s32.totalorder %v11209_v15, %v10269_v4  ;;  %v11882_v15 = vld [vmem:[#allocation21_spill] sm:$0xff] }
 0x739   :  { %v11170_v14 = vadd.f32 %v2957_v2, %v2812_v45  ;;  %v11867_v45 = vld [vmem:[#allocation39_spill] sm:$0xff] }
 0x73a   :  { %v11876_v2 = vld [vmem:[#allocation15_spill] sm:$0xff] }
 0x73b   :  { %9917 = vtanh.f32 %v11170_v14 }
 0x745   :  { %v9918_v26 = vpop.eup %9917 }
 0x746   :  { %v11173_v6 = vmul.f32 %v9918_v26, %v3102_v42  ;;  %v11879_v42 = vld [vmem:[#allocation18_spill] sm:$0xff]  ;;  %v11880_v26 = vld [vmem:[#allocation19_spill] sm:$0xff] }
 0x748   :  { %7435 = vmatmul.mubr.f32.vlgmr.msra.gmra.mrb[20].mxu0 %v11173_v6  ;;  %7505 = vmatmul.mubr.f32.vlgmr.msra.gmra.mrb[20].mxu1 %v11173_v6 }
 0x749   :  { %9228 = vmatpush3.bf16.msra.mxu0 %v10195_v56  ;;  %9276 = vmatpush3.bf16.msra.mxu1 %v10199_v57 }
 0x74a   :  { %9229 = vmatprep.subr.bf16.mxu0 %v11801_v38  ;;  %9277 = vmatprep.subr.bf16.mxu1 %v11801_v38 }
 0x74b   :  { %7469 = vmatprep.mubr.msk.f32.mxu0 %vm10052_vm0, %v11779_v22  ;;  %7539 = vmatprep.mubr.msk.f32.mxu1 %vm10052_vm0, %v11779_v22 }
 0x74d   :  { %9231 = vmatpush3.bf16.msra.mxu0 %v10205_v62  ;;  %9279 = vmatpush3.bf16.msra.mxu1 %v10209_v63 }
 0x74e   :  { %9232 = vmatprep.subr.bf16.mxu0 %v11801_v38  ;;  %9280 = vmatprep.subr.bf16.mxu1 %v11801_v38 }
 0x751   :  { %9234 = vmatpush3.bf16.msra.mxu0 %v10217_v8  ;;  %9282 = vmatpush3.bf16.msra.mxu1 %v10221_v9 }
 0x752   :  { %9235 = vmatprep.subr.bf16.mxu0 %v11801_v38  ;;  %9283 = vmatprep.subr.bf16.mxu1 %v11801_v38 }
 0x755   :  { %9237 = vmatpush3.bf16.msra.mxu0 %v10225_v17  ;;  %9285 = vmatpush3.bf16.msra.mxu1 %v10229_v18 }
 0x756   :  { %9238 = vmatprep.subr.bf16.mxu0 %v11801_v38  ;;  %9286 = vmatprep.subr.bf16.mxu1 %v11801_v38 }
 0x759   :  { %9240 = vmatpush3.bf16.msra.mxu0 %v10233_v25  ;;  %9288 = vmatpush3.bf16.msra.mxu1 %v10237_v28 }
 0x75a   :  { %9241 = vmatprep.subr.bf16.mxu0 %v11801_v38  ;;  %9289 = vmatprep.subr.bf16.mxu1 %v11801_v38 }
 0x75d   :  { %9243 = vmatpush3.bf16.msra.mxu0 %v10241_v35  ;;  %9291 = vmatpush3.bf16.msra.mxu1 %v10245_v36 }
 0x75e   :  { %9244 = vmatprep.subr.bf16.mxu0 %v11801_v38  ;;  %9292 = vmatprep.subr.bf16.mxu1 %v11801_v38 }
 0x761   :  { %9246 = vmatpush3.bf16.msra.mxu0 %v10249_v43  ;;  %9294 = vmatpush3.bf16.msra.mxu1 %v10253_v46 }
 0x762   :  { %9247 = vmatprep.subr.bf16.mxu0 %v11801_v38  ;;  %9295 = vmatprep.subr.bf16.mxu1 %v11801_v38 }
 0x765   :  { %9249 = vmatpush3.bf16.msra.mxu0 %v10257_v53  ;;  %9297 = vmatpush3.bf16.msra.mxu1 %v10261_v54 }
 0x766   :  { %9298 = vmatprep.subr.bf16.mxu0 %v11801_v38  ;;  %9346 = vmatprep.subr.bf16.mxu1 %v11801_v38 }
 0x768   :  { %7470 = vmatmul.mubr.msk.f32.vlgmr.msra.gmra.mrb[20].mxu0 %vm3108_vm6, %v11778_v31  ;;  %7540 = vmatmul.mubr.msk.f32.vlgmr.msra.gmra.mrb[20].mxu1 %vm3108_vm6, %v11778_v31 }
 0x769   :  { %9300 = vmatpush3.bf16.msra.mxu0 %v10271_v5  ;;  %9348 = vmatpush3.bf16.msra.mxu1 %v10273_v7 }
 0x76a   :  { %9301 = vmatprep.subr.bf16.mxu0 %v11801_v38  ;;  %9349 = vmatprep.subr.bf16.mxu1 %v11801_v38 }
 0x76b   :  { %7574 = vmatprep.mubr.msk.f32.mxu0 %vm10052_vm0, %v11779_v22  ;;  %7644 = vmatprep.mubr.msk.f32.mxu1 %vm10052_vm0, %v11779_v22 }
 0x76d   :  { %9303 = vmatpush3.bf16.msra.mxu0 %v10289_v23  ;;  %9351 = vmatpush3.bf16.msra.mxu1 %v10291_v24 }
 0x76e   :  { %9304 = vmatprep.subr.bf16.mxu0 %v11801_v38  ;;  %9352 = vmatprep.subr.bf16.mxu1 %v11801_v38 }
 0x771   :  { %9306 = vmatpush3.bf16.msra.mxu0 %v10301_v37  ;;  %9354 = vmatpush3.bf16.msra.mxu1 %v10303_v40 }
 0x772   :  { %9307 = vmatprep.subr.bf16.mxu0 %v11801_v38  ;;  %9355 = vmatprep.subr.bf16.mxu1 %v11801_v38 }
 0x775   :  { %9309 = vmatpush3.bf16.msra.mxu0 %v10309_v49  ;;  %9357 = vmatpush3.bf16.msra.mxu1 %v10311_v52 }
 0x776   :  { %9310 = vmatprep.subr.bf16.mxu0 %v11801_v38  ;;  %9358 = vmatprep.subr.bf16.mxu1 %v11801_v38 }
 0x779   :  { %9312 = vmatpush3.bf16.msra.mxu0 %v10317_v61  ;;  %9360 = vmatpush3.bf16.msra.mxu1 %v10319_v0 }
 0x77a   :  { %9313 = vmatprep.subr.bf16.mxu0 %v11801_v38  ;;  %9361 = vmatprep.subr.bf16.mxu1 %v11801_v38 }
 0x77d   :  { %9315 = vmatpush3.bf16.msra.mxu0 %v10325_v29  ;;  %9363 = vmatpush3.bf16.msra.mxu1 %v10327_v30 }
 0x77e   :  { %9316 = vmatprep.subr.bf16.mxu0 %v11801_v38  ;;  %9364 = vmatprep.subr.bf16.mxu1 %v11801_v38 }
 0x781   :  { %9318 = vmatpush3.bf16.msra.mxu0 %v10333_v47  ;;  %9366 = vmatpush3.bf16.msra.mxu1 %v10335_v48 }
 0x782   :  { %9319 = vmatprep.subr.bf16.mxu0 %v11801_v38  ;;  %9367 = vmatprep.subr.bf16.mxu1 %v11801_v38 }
 0x785   :  { %9321 = vmatpush3.bf16.msra.mxu0 %v10341_v11  ;;  %9369 = vmatpush3.bf16.msra.mxu1 %v11780_v27 }
 0x786   :  { %9322 = vmatprep.subr.bf16.mxu0 %v11801_v38  ;;  %9370 = vmatprep.subr.bf16.mxu1 %v11801_v38 }
 0x788   :  { %7575 = vmatmul.mubr.f32.vlgmr.msra.gmra.mrb[22].mxu0 %v11173_v6  ;;  %7645 = vmatmul.mubr.f32.vlgmr.msra.gmra.mrb[22].mxu1 %v11173_v6  ;;  %v11881_v6 = vld [vmem:[#allocation20_spill] sm:$0xff] }
 0x789   :  { %9324 = vmatpush3.bf16.msra.mxu0 %v11781_v33  ;;  %9372 = vmatpush3.bf16.msra.mxu1 %v11782_v39 }
 0x78a   :  { %9325 = vmatprep.subr.bf16.mxu0 %v11801_v38  ;;  %9373 = vmatprep.subr.bf16.mxu1 %v11801_v38 }
 0x78b   :  { %7609 = vmatprep.mubr.msk.f32.mxu0 %vm10052_vm0, %v11779_v22  ;;  %7679 = vmatprep.mubr.msk.f32.mxu1 %vm10052_vm0, %v11779_v22 }
 0x78d   :  { %9327 = vmatpush3.bf16.msra.mxu0 %v11783_v50  ;;  %9375 = vmatpush3.bf16.msra.mxu1 %v11784_v60 }
 0x78e   :  { %9328 = vmatprep.subr.bf16.mxu0 %v11801_v38  ;;  %9376 = vmatprep.subr.bf16.mxu1 %v11801_v38 }
 0x791   :  { %9330 = vmatpush3.bf16.msra.mxu0 %v11785_v12  ;;  %9378 = vmatpush3.bf16.msra.mxu1 %v11786_v59 }
 0x792   :  { %9331 = vmatprep.subr.bf16.mxu0 %v11801_v38  ;;  %9379 = vmatprep.subr.bf16.mxu1 %v11801_v38 }
 0x795   :  { %9333 = vmatpush3.bf16.msra.mxu0 %v11787_v41  ;;  %9381 = vmatpush3.bf16.msra.mxu1 %v11788_v13 }
 0x796   :  { %9334 = vmatprep.subr.bf16.mxu0 %v11801_v38  ;;  %9382 = vmatprep.subr.bf16.mxu1 %v11801_v38 }
 0x799   :  { %9336 = vmatpush3.bf16.msra.mxu0 %v11789_v34  ;;  %9384 = vmatpush3.bf16.msra.mxu1 %v11790_v44 }
 0x79a   :  { %9337 = vmatprep.subr.bf16.mxu0 %v11801_v38  ;;  %9385 = vmatprep.subr.bf16.mxu1 %v11801_v38 }
 0x79d   :  { %9339 = vmatpush3.bf16.msra.mxu0 %v11867_v45  ;;  %9387 = vmatpush3.bf16.msra.mxu1 %v11868_v21  ;;  %v10061_v45 = vmov 7  }
 0x79e   :  { %9340 = vmatprep.subr.bf16.mxu0 %v11801_v38  ;;  %9388 = vmatprep.subr.bf16.mxu1 %v11801_v38 }
 0x79f   :  { %9867 = vset.pattern.permute.xlu1 %v10061_v45  ;;  %9868 = vset.pattern.permute.xlu0 %v10061_v45  ;;  %v11890_v45 = vld [vmem:[#allocation40_spill] sm:$0xff] }
 0x7a0   :  { %4274 = vperm.xlu1 %9867, %v11166_v19   ;;  %v11384_v19 = vpop.permute.xlu1 %3690 }
 0x7a1   :  { %9342 = vmatpush3.bf16.msra.mxu0 %v11869_v3  ;;  %9390 = vmatpush3.bf16.msra.mxu1 %v11870_v55  ;;  %vm3692_vm7 = vcmp.eq.s32.totalorder %v11384_v19, %v10269_v4  ;;  %v11905_v19 = vld [vmem:[#allocation22_spill] sm:$0xff] }
 0x7a2   :  { %9343 = vmatprep.subr.bf16.mxu0 %v11801_v38  ;;  %9391 = vmatprep.subr.bf16.mxu1 %v11801_v38 }
 0x7a5   :  { %9345 = vmatpush3.bf16.msra.mxu0 %v11871_v1  ;;  %9393 = vmatpush3.bf16.msra.mxu1 %v11872_v20 }
 0x7a6   :  { %9394 = vmatprep.subr.bf16.mxu0 %v11801_v38  ;;  %9442 = vmatprep.subr.bf16.mxu1 %v11801_v38 }
 0x7a8   :  { %7610 = vmatmul.mubr.msk.f32.vlgmr.msra.gmra.mrb[22].mxu0 %vm3108_vm6, %v11778_v31  ;;  %7680 = vmatmul.mubr.msk.f32.vlgmr.msra.gmra.mrb[22].mxu1 %vm3108_vm6, %v11778_v31 }
 0x7a9   :  { %9396 = vmatpush3.bf16.msra.mxu0 %v11873_v16  ;;  %9444 = vmatpush3.bf16.msra.mxu1 %v11874_v32 }
 0x7aa   :  { %9397 = vmatprep.subr.bf16.mxu0 %v11801_v38  ;;  %9445 = vmatprep.subr.bf16.mxu1 %v11801_v38 }
 0x7ab   :  { %7714 = vmatprep.mubr.msk.f32.mxu0 %vm10052_vm0, %v11779_v22  ;;  %7784 = vmatprep.mubr.msk.f32.mxu1 %vm10052_vm0, %v11779_v22 }
 0x7ad   :  { %9399 = vmatpush3.bf16.msra.mxu0 %v11875_v10  ;;  %9447 = vmatpush3.bf16.msra.mxu1 %v11876_v2 }
 0x7ae   :  { %9400 = vmatprep.subr.bf16.mxu0 %v11801_v38  ;;  %9448 = vmatprep.subr.bf16.mxu1 %v11801_v38 }
 0x7b1   :  { %9402 = vmatpush3.bf16.msra.mxu0 %v11877_v51  ;;  %9450 = vmatpush3.bf16.msra.mxu1 %v11878_v58  ;;  %v11883_v58 = vld [vmem:[#allocation22_spill] sm:$0xff]  ;;  %v11884_v51 = vld [vmem:[#allocation23_spill] sm:$0xff] }
 0x7b2   :  { %9403 = vmatprep.subr.bf16.mxu0 %v11801_v38  ;;  %9451 = vmatprep.subr.bf16.mxu1 %v11801_v38 }
 0x7b5   :  { %9405 = vmatpush3.bf16.msra.mxu0 %v11879_v42  ;;  %9453 = vmatpush3.bf16.msra.mxu1 %v11880_v26  ;;  %v11885_v26 = vld [vmem:[#allocation24_spill] sm:$0xff]  ;;  %v11886_v42 = vld [vmem:[#allocation25_spill] sm:$0xff] }
 0x7b6   :  { %9406 = vmatprep.subr.bf16.mxu0 %v11801_v38  ;;  %9454 = vmatprep.subr.bf16.mxu1 %v11801_v38 }
 0x7b9   :  { %9408 = vmatpush3.bf16.msra.mxu0 %v11881_v6  ;;  %9456 = vmatpush3.bf16.msra.mxu1 %v11882_v15  ;;  %v11887_v15 = vld [vmem:[#allocation26_spill] sm:$0xff]  ;;  %v11888_v6 = vld [vmem:[#allocation27_spill] sm:$0xff] }
 0x7ba   :  { %9409 = vmatprep.subr.bf16.mxu0 %v11801_v38  ;;  %9457 = vmatprep.subr.bf16.mxu1 %v11801_v38 }
 0x7bd   :  { %9411 = vmatpush3.bf16.msra.mxu0 %v11883_v58  ;;  %9459 = vmatpush3.bf16.msra.mxu1 %v11884_v51 }
 0x7be   :  { %9412 = vmatprep.subr.bf16.mxu0 %v11801_v38  ;;  %9460 = vmatprep.subr.bf16.mxu1 %v11801_v38 }
 0x7c1   :  { %9414 = vmatpush3.bf16.msra.mxu0 %v11885_v26  ;;  %9462 = vmatpush3.bf16.msra.mxu1 %v11886_v42 }
 0x7c2   :  { %9415 = vmatprep.subr.bf16.mxu0 %v11801_v38  ;;  %9463 = vmatprep.subr.bf16.mxu1 %v11801_v38 }
 0x7c5   :  { %9417 = vmatpush3.bf16.msra.mxu0 %v11887_v15  ;;  %9465 = vmatpush3.bf16.msra.mxu1 %v11888_v6 }
 0x7c6   :  { %9418 = vmatprep.subr.bf16.mxu0 %v11801_v38  ;;  %9466 = vmatprep.subr.bf16.mxu1 %v11801_v38 }
 0x83b   :  { %v3247_v51 = vpop.f32.mrb[20].mxu0  ;;  %v3391_v58 = vpop.f32.mrb[20].mxu1 }
 0x83c   :  { %v3251_v2 = vmul.f32 0.5, %v3247_v51  ;;  %v7471_v10 = vpop.f32.mrb[21].mxu0  ;;  %v7541_v32 = vpop.f32.mrb[21].mxu1 }
 0x83e   :  { %9919 = vtanh.f32 %v3251_v2 }
 0x83f   :  { %9921 = vtanh.f32 %v3391_v58 }
 0x848   :  { %v9920_v42 = vpop.eup %9919 }
 0x849   :  { %v3253_v26 = vmul.f32 0.5, %v9920_v42  ;;  %v9922_v20 = vpop.eup %9921 }
 0x84b   :  { %v3254_v16 = vadd.f32 0.5, %v3253_v26  ;;  %v11892_v26 = vld [vmem:[#allocation42_spill] sm:$0xff] }
 0x84d   :  { %v3396_v1 = vmul.f32 %v9922_v20, %v3254_v16 }
 0x87b   :  { %v3533_v55 = vpop.f32.mrb[22].mxu0  ;;  %v3679_v15 = vpop.f32.mrb[22].mxu1 }
 0x87c   :  { %v3537_v3 = vmul.f32 0.5, %v3533_v55  ;;  %v7611_v6 = vpop.f32.mrb[23].mxu0  ;;  %v7681_v21 = vpop.f32.mrb[23].mxu1  ;;  %v3683_v10 = vmul.f32 0.5, %v3679_v15  ;;  %v11894_v15 = vld [vmem:[#allocation44_spill] sm:$0xff] }
 0x87d   :  { %v11893_v6 = vld [vmem:[#allocation43_spill] sm:$0xff] }
 0x87e   :  { %9923 = vtanh.f32 %v3537_v3 }
 0x87f   :  { %9925 = vtanh.f32 %v3683_v10  ;;  %v11895_v10 = vld [vmem:[#allocation12_spill] sm:$0xff] }
 0x888   :  { %v9924_v32 = vpop.eup %9923 }
 0x889   :  { %v3539_v2 = vmul.f32 0.5, %v9924_v32  ;;  %v9926_v55 = vpop.eup %9925  ;;  %v11896_v32 = vld [vmem:[#allocation13_spill] sm:$0xff] }
 0x88a   :  { %v3685_v20 = vmul.f32 0.5, %v9926_v55  ;;  %v11900_v55 = vld [vmem:[#allocation17_spill] sm:$0xff] }
 0x88b   :  { %v3540_v51 = vadd.f32 0.5, %v3539_v2  ;;  %v11897_v2 = vld [vmem:[#allocation14_spill] sm:$0xff] }
 0x88c   :  { %v3686_v21 = vadd.f32 0.5, %v3685_v20  ;;  %v11901_v20 = vld [vmem:[#allocation18_spill] sm:$0xff] }
 0x88d   :  { %v3541_v58 = vmul.f32 %v3540_v51, %v11170_v14  ;;  %v11889_v14 = vld [vmem:[#allocation39_spill] sm:$0xff] }
 0x88e   :  { %v11898_v51 = vld [vmem:[#allocation15_spill] sm:$0xff] }
 0x88f   :  { %v11345_v42 = vadd.f32 %v3541_v58, %v3396_v1  ;;  %v11891_v1 = vld [vmem:[#allocation41_spill] sm:$0xff]  ;;  %v11899_v58 = vld [vmem:[#allocation16_spill] sm:$0xff] }
 0x891   :  { %9927 = vtanh.f32 %v11345_v42 }
 0x89b   :  { %v9928_v3 = vpop.eup %9927 }
 0x89c   :  { %v11348_v16 = vmul.f32 %v9928_v3, %v3686_v21  ;;  %v11902_v21 = vld [vmem:[#allocation19_spill] sm:$0xff]  ;;  %v11903_v3 = vld [vmem:[#allocation20_spill] sm:$0xff] }
 0x89e   :  { %7715 = vmatmul.mubr.f32.vlgmr.msra.gmra.mrb[24].mxu0 %v11348_v16  ;;  %7785 = vmatmul.mubr.f32.vlgmr.msra.gmra.mrb[24].mxu1 %v11348_v16 }
 0x89f   :  { %9420 = vmatpush3.bf16.msra.mxu0 %v10195_v56  ;;  %9468 = vmatpush3.bf16.msra.mxu1 %v10199_v57 }
 0x8a0   :  { %9421 = vmatprep.subr.bf16.mxu0 %v11801_v38  ;;  %9469 = vmatprep.subr.bf16.mxu1 %v11801_v38 }
 0x8a1   :  { %7749 = vmatprep.mubr.msk.f32.mxu0 %vm10052_vm0, %v11779_v22  ;;  %7819 = vmatprep.mubr.msk.f32.mxu1 %vm10052_vm0, %v11779_v22 }
 0x8a3   :  { %9423 = vmatpush3.bf16.msra.mxu0 %v10205_v62  ;;  %9471 = vmatpush3.bf16.msra.mxu1 %v10209_v63 }
 0x8a4   :  { %9424 = vmatprep.subr.bf16.mxu0 %v11801_v38  ;;  %9472 = vmatprep.subr.bf16.mxu1 %v11801_v38 }
 0x8a7   :  { %9426 = vmatpush3.bf16.msra.mxu0 %v10217_v8  ;;  %9474 = vmatpush3.bf16.msra.mxu1 %v10221_v9 }
 0x8a8   :  { %9427 = vmatprep.subr.bf16.mxu0 %v11801_v38  ;;  %9475 = vmatprep.subr.bf16.mxu1 %v11801_v38 }
 0x8ab   :  { %9429 = vmatpush3.bf16.msra.mxu0 %v10225_v17  ;;  %9477 = vmatpush3.bf16.msra.mxu1 %v10229_v18 }
 0x8ac   :  { %9430 = vmatprep.subr.bf16.mxu0 %v11801_v38  ;;  %9478 = vmatprep.subr.bf16.mxu1 %v11801_v38 }
 0x8af   :  { %9432 = vmatpush3.bf16.msra.mxu0 %v10233_v25  ;;  %9480 = vmatpush3.bf16.msra.mxu1 %v10237_v28 }
 0x8b0   :  { %9433 = vmatprep.subr.bf16.mxu0 %v11801_v38  ;;  %9481 = vmatprep.subr.bf16.mxu1 %v11801_v38 }
 0x8b3   :  { %9435 = vmatpush3.bf16.msra.mxu0 %v10241_v35  ;;  %9483 = vmatpush3.bf16.msra.mxu1 %v10245_v36 }
 0x8b4   :  { %9436 = vmatprep.subr.bf16.mxu0 %v11801_v38  ;;  %9484 = vmatprep.subr.bf16.mxu1 %v11801_v38 }
 0x8b7   :  { %9438 = vmatpush3.bf16.msra.mxu0 %v10249_v43  ;;  %9486 = vmatpush3.bf16.msra.mxu1 %v10253_v46 }
 0x8b8   :  { %9439 = vmatprep.subr.bf16.mxu0 %v11801_v38  ;;  %9487 = vmatprep.subr.bf16.mxu1 %v11801_v38 }
 0x8bb   :  { %9441 = vmatpush3.bf16.msra.mxu0 %v10257_v53  ;;  %9489 = vmatpush3.bf16.msra.mxu1 %v10261_v54 }
 0x8bc   :  { %9490 = vmatprep.subr.bf16.mxu0 %v11801_v38  ;;  %9538 = vmatprep.subr.bf16.mxu1 %v11801_v38 }
 0x8be   :  { %7750 = vmatmul.mubr.msk.f32.vlgmr.msra.gmra.mrb[24].mxu0 %vm3692_vm7, %v11778_v31  ;;  %7820 = vmatmul.mubr.msk.f32.vlgmr.msra.gmra.mrb[24].mxu1 %vm3692_vm7, %v11778_v31 }
 0x8bf   :  { %9492 = vmatpush3.bf16.msra.mxu0 %v10271_v5  ;;  %9540 = vmatpush3.bf16.msra.mxu1 %v10273_v7 }
 0x8c0   :  { %9493 = vmatprep.subr.bf16.mxu0 %v11801_v38  ;;  %9541 = vmatprep.subr.bf16.mxu1 %v11801_v38 }
 0x8c1   :  { %7854 = vmatprep.mubr.msk.f32.mxu0 %vm10052_vm0, %v11779_v22  ;;  %7924 = vmatprep.mubr.msk.f32.mxu1 %vm10052_vm0, %v11779_v22 }
 0x8c3   :  { %9495 = vmatpush3.bf16.msra.mxu0 %v10289_v23  ;;  %9543 = vmatpush3.bf16.msra.mxu1 %v10291_v24 }
 0x8c4   :  { %9496 = vmatprep.subr.bf16.mxu0 %v11801_v38  ;;  %9544 = vmatprep.subr.bf16.mxu1 %v11801_v38 }
 0x8c7   :  { %9498 = vmatpush3.bf16.msra.mxu0 %v10301_v37  ;;  %9546 = vmatpush3.bf16.msra.mxu1 %v10303_v40 }
 0x8c8   :  { %9499 = vmatprep.subr.bf16.mxu0 %v11801_v38  ;;  %9547 = vmatprep.subr.bf16.mxu1 %v11801_v38 }
 0x8cb   :  { %9501 = vmatpush3.bf16.msra.mxu0 %v10309_v49  ;;  %9549 = vmatpush3.bf16.msra.mxu1 %v10311_v52 }
 0x8cc   :  { %9502 = vmatprep.subr.bf16.mxu0 %v11801_v38  ;;  %9550 = vmatprep.subr.bf16.mxu1 %v11801_v38 }
 0x8cf   :  { %9504 = vmatpush3.bf16.msra.mxu0 %v10317_v61  ;;  %9552 = vmatpush3.bf16.msra.mxu1 %v10319_v0 }
 0x8d0   :  { %9505 = vmatprep.subr.bf16.mxu0 %v11801_v38  ;;  %9553 = vmatprep.subr.bf16.mxu1 %v11801_v38 }
 0x8d3   :  { %9507 = vmatpush3.bf16.msra.mxu0 %v10325_v29  ;;  %9555 = vmatpush3.bf16.msra.mxu1 %v10327_v30 }
 0x8d4   :  { %9508 = vmatprep.subr.bf16.mxu0 %v11801_v38  ;;  %9556 = vmatprep.subr.bf16.mxu1 %v11801_v38 }
 0x8d7   :  { %9510 = vmatpush3.bf16.msra.mxu0 %v10333_v47  ;;  %9558 = vmatpush3.bf16.msra.mxu1 %v10335_v48 }
 0x8d8   :  { %9511 = vmatprep.subr.bf16.mxu0 %v11801_v38  ;;  %9559 = vmatprep.subr.bf16.mxu1 %v11801_v38 }
 0x8db   :  { %9513 = vmatpush3.bf16.msra.mxu0 %v10341_v11  ;;  %9561 = vmatpush3.bf16.msra.mxu1 %v11780_v27 }
 0x8dc   :  { %9514 = vmatprep.subr.bf16.mxu0 %v11801_v38  ;;  %9562 = vmatprep.subr.bf16.mxu1 %v11801_v38 }
 0x8de   :  { %7855 = vmatmul.mubr.f32.vlgmr.msra.gmra.mrb[26].mxu0 %v11348_v16  ;;  %7925 = vmatmul.mubr.f32.vlgmr.msra.gmra.mrb[26].mxu1 %v11348_v16  ;;  %v11904_v16 = vld [vmem:[#allocation21_spill] sm:$0xff] }
 0x8df   :  { %9516 = vmatpush3.bf16.msra.mxu0 %v11781_v33  ;;  %9564 = vmatpush3.bf16.msra.mxu1 %v11782_v39 }
 0x8e0   :  { %9517 = vmatprep.subr.bf16.mxu0 %v11801_v38  ;;  %9565 = vmatprep.subr.bf16.mxu1 %v11801_v38 }
 0x8e1   :  { %7889 = vmatprep.mubr.msk.f32.mxu0 %vm10052_vm0, %v11779_v22  ;;  %7959 = vmatprep.mubr.msk.f32.mxu1 %vm10052_vm0, %v11779_v22 }
 0x8e3   :  { %9519 = vmatpush3.bf16.msra.mxu0 %v11783_v50  ;;  %9567 = vmatpush3.bf16.msra.mxu1 %v11784_v60 }
 0x8e4   :  { %9520 = vmatprep.subr.bf16.mxu0 %v11801_v38  ;;  %9568 = vmatprep.subr.bf16.mxu1 %v11801_v38 }
 0x8e7   :  { %9522 = vmatpush3.bf16.msra.mxu0 %v11785_v12  ;;  %9570 = vmatpush3.bf16.msra.mxu1 %v11786_v59 }
 0x8e8   :  { %9523 = vmatprep.subr.bf16.mxu0 %v11801_v38  ;;  %9571 = vmatprep.subr.bf16.mxu1 %v11801_v38 }
 0x8eb   :  { %9525 = vmatpush3.bf16.msra.mxu0 %v11787_v41  ;;  %9573 = vmatpush3.bf16.msra.mxu1 %v11788_v13 }
 0x8ec   :  { %9526 = vmatprep.subr.bf16.mxu0 %v11801_v38  ;;  %9574 = vmatprep.subr.bf16.mxu1 %v11801_v38 }
 0x8ef   :  { %9528 = vmatpush3.bf16.msra.mxu0 %v11789_v34  ;;  %9576 = vmatpush3.bf16.msra.mxu1 %v11790_v44 }
 0x8f0   :  { %9529 = vmatprep.subr.bf16.mxu0 %v11801_v38  ;;  %9577 = vmatprep.subr.bf16.mxu1 %v11801_v38 }
 0x8f3   :  { %9531 = vmatpush3.bf16.msra.mxu0 %v11889_v14  ;;  %9579 = vmatpush3.bf16.msra.mxu1 %v11890_v45 }
 0x8f4   :  { %9532 = vmatprep.subr.bf16.mxu0 %v11801_v38  ;;  %9580 = vmatprep.subr.bf16.mxu1 %v11801_v38 }
 0x8f7   :  { %9534 = vmatpush3.bf16.msra.mxu0 %v11891_v1  ;;  %9582 = vmatpush3.bf16.msra.mxu1 %v11892_v26 }
 0x8f8   :  { %9535 = vmatprep.subr.bf16.mxu0 %v11801_v38  ;;  %9583 = vmatprep.subr.bf16.mxu1 %v11801_v38 }
 0x8fb   :  { %9537 = vmatpush3.bf16.msra.mxu0 %v11893_v6  ;;  %9585 = vmatpush3.bf16.msra.mxu1 %v11894_v15 }
 0x8fc   :  { %9586 = vmatprep.subr.bf16.mxu0 %v11801_v38  ;;  %9634 = vmatprep.subr.bf16.mxu1 %v11801_v38 }
 0x8fe   :  { %7890 = vmatmul.mubr.msk.f32.vlgmr.msra.gmra.mrb[26].mxu0 %vm3692_vm7, %v11778_v31  ;;  %7960 = vmatmul.mubr.msk.f32.vlgmr.msra.gmra.mrb[26].mxu1 %vm3692_vm7, %v11778_v31 }
 0x8ff   :  { %9588 = vmatpush3.bf16.msra.mxu0 %v11895_v10  ;;  %9636 = vmatpush3.bf16.msra.mxu1 %v11896_v32  ;;  %v11906_v10 = vld [vmem:[#allocation23_spill] sm:$0xff]  ;;  %v11907_v32 = vld [vmem:[#allocation24_spill] sm:$0xff] }
 0x900   :  { %9589 = vmatprep.subr.bf16.mxu0 %v11801_v38  ;;  %9637 = vmatprep.subr.bf16.mxu1 %v11801_v38 }
 0x901   :  { %7994 = vmatprep.mubr.msk.f32.mxu0 %vm10052_vm0, %v11779_v22  ;;  %8064 = vmatprep.mubr.msk.f32.mxu1 %vm10052_vm0, %v11779_v22 }
 0x903   :  { %9591 = vmatpush3.bf16.msra.mxu0 %v11897_v2  ;;  %9639 = vmatpush3.bf16.msra.mxu1 %v11898_v51  ;;  %v11908_v2 = vld [vmem:[#allocation25_spill] sm:$0xff]  ;;  %v11909_v51 = vld [vmem:[#allocation26_spill] sm:$0xff] }
 0x904   :  { %9592 = vmatprep.subr.bf16.mxu0 %v11801_v38  ;;  %9640 = vmatprep.subr.bf16.mxu1 %v11801_v38 }
 0x907   :  { %9594 = vmatpush3.bf16.msra.mxu0 %v11899_v58  ;;  %9642 = vmatpush3.bf16.msra.mxu1 %v11900_v55  ;;  %v11910_v58 = vld [vmem:[#allocation27_spill] sm:$0xff] }
 0x908   :  { %9595 = vmatprep.subr.bf16.mxu0 %v11801_v38  ;;  %9643 = vmatprep.subr.bf16.mxu1 %v11801_v38 }
 0x90b   :  { %9597 = vmatpush3.bf16.msra.mxu0 %v11901_v20  ;;  %9645 = vmatpush3.bf16.msra.mxu1 %v11902_v21 }
 0x90c   :  { %9598 = vmatprep.subr.bf16.mxu0 %v11801_v38  ;;  %9646 = vmatprep.subr.bf16.mxu1 %v11801_v38 }
 0x90f   :  { %9600 = vmatpush3.bf16.msra.mxu0 %v11903_v3  ;;  %9648 = vmatpush3.bf16.msra.mxu1 %v11904_v16 }
 0x910   :  { %9601 = vmatprep.subr.bf16.mxu0 %v11801_v38  ;;  %9649 = vmatprep.subr.bf16.mxu1 %v11801_v38 }
 0x913   :  { %9603 = vmatpush3.bf16.msra.mxu0 %v11905_v19  ;;  %9651 = vmatpush3.bf16.msra.mxu1 %v11906_v10 }
 0x914   :  { %9604 = vmatprep.subr.bf16.mxu0 %v11801_v38  ;;  %9652 = vmatprep.subr.bf16.mxu1 %v11801_v38 }
 0x917   :  { %9606 = vmatpush3.bf16.msra.mxu0 %v11907_v32  ;;  %9654 = vmatpush3.bf16.msra.mxu1 %v11908_v2 }
 0x918   :  { %9607 = vmatprep.subr.bf16.mxu0 %v11801_v38  ;;  %9655 = vmatprep.subr.bf16.mxu1 %v11801_v38 }
 0x91b   :  { %9609 = vmatpush3.bf16.msra.mxu0 %v11909_v51  ;;  %9657 = vmatpush3.bf16.msra.mxu1 %v11910_v58 }
 0x91c   :  { %9610 = vmatprep.subr.bf16.mxu0 %v11801_v38  ;;  %9658 = vmatprep.subr.bf16.mxu1 %v11801_v38 }
 0x991   :  { %v3831_v55 = vpop.f32.mrb[24].mxu0  ;;  %v3975_v20 = vpop.f32.mrb[24].mxu1 }
 0x992   :  { %v3835_v21 = vmul.f32 0.5, %v3831_v55  ;;  %v7751_v3 = vpop.f32.mrb[25].mxu0  ;;  %v7821_v16 = vpop.f32.mrb[25].mxu1 }
 0x994   :  { %9929 = vtanh.f32 %v3835_v21 }
 0x995   :  { %9931 = vtanh.f32 %v3975_v20 }
 0x99e   :  { %v9930_v19 = vpop.eup %9929 }
 0x99f   :  { %v3837_v10 = vmul.f32 0.5, %v9930_v19  ;;  %v9932_v2 = vpop.eup %9931 }
 0x9a1   :  { %v3838_v32 = vadd.f32 0.5, %v3837_v10 }
 0x9a3   :  { %v3980_v15 = vmul.f32 %v9932_v2, %v3838_v32 }
 0x9d1   :  { %v4117_v6 = vpop.f32.mrb[26].mxu0  ;;  %v4263_v51 = vpop.f32.mrb[26].mxu1 }
 0x9d2   :  { %v4121_v26 = vmul.f32 0.5, %v4117_v6  ;;  %v7891_v58 = vpop.f32.mrb[27].mxu0  ;;  %v7961_v1 = vpop.f32.mrb[27].mxu1  ;;  %v4267_v45 = vmul.f32 0.5, %v4263_v51 }
 0x9d4   :  { %9933 = vtanh.f32 %v4121_v26 }
 0x9d5   :  { %9935 = vtanh.f32 %v4267_v45 }
 0x9de   :  { %v9934_v14 = vpop.eup %9933 }
 0x9df   :  { %v4123_v44 = vmul.f32 0.5, %v9934_v14  ;;  %v9936_v20 = vpop.eup %9935 }
 0x9e0   :  { %v4269_v16 = vmul.f32 0.5, %v9936_v20 }
 0x9e1   :  { %v4124_v55 = vadd.f32 0.5, %v4123_v44 }
 0x9e2   :  { %v4270_v19 = vadd.f32 0.5, %v4269_v16 }
 0x9e3   :  { %v4125_v3 = vmul.f32 %v4124_v55, %v11345_v42 }
 0x9e5   :  { %v11519_v21 = vadd.f32 %v4125_v3, %v3980_v15 }
 0x9e7   :  { %9937 = vtanh.f32 %v11519_v21 }
 0x9f1   :  { %v9938_v10 = vpop.eup %9937 }
 0x9f2   :  { %v11522_v32 = vmul.f32 %v9938_v10, %v4270_v19 }
 0x9f4   :  { %7995 = vmatmul.mubr.f32.vlgmr.msra.gmra.mrb[28].mxu0 %v11522_v32  ;;  %8065 = vmatmul.mubr.f32.vlgmr.msra.gmra.mrb[28].mxu1 %v11522_v32 }
 0x9f5   :  { %9612 = vmatpush3.bf16.msra.mxu0 %v10195_v56  ;;  %9660 = vmatpush3.bf16.msra.mxu1 %v10199_v57  ;;  %v11558_v56 = vpop.permute.xlu1 %4274  ;;  %v11911_v57 = vld [vmem:[#allocation38_spill] sm:$0xff] }
 0x9f6   :  { %9613 = vmatprep.subr.bf16.mxu0 %v11801_v38  ;;  %9661 = vmatprep.subr.bf16.mxu1 %v11801_v38  ;;  %vm4276_vm8 = vcmp.eq.s32.totalorder %v11558_v56, %v10269_v4 }
 0x9f7   :  { %8029 = vmatprep.mubr.msk.f32.mxu0 %vm10052_vm0, %v11779_v22  ;;  %8099 = vmatprep.mubr.msk.f32.mxu1 %vm10052_vm0, %v11779_v22 }
 0x9f9   :  { %9615 = vmatpush3.bf16.msra.mxu0 %v10205_v62  ;;  %9663 = vmatpush3.bf16.msra.mxu1 %v10209_v63  ;;  %v11912_v62 = vld [vmem:[#allocation39_spill] sm:$0xff]  ;;  %v11913_v63 = vld [vmem:[#allocation40_spill] sm:$0xff] }
 0x9fa   :  { %9616 = vmatprep.subr.bf16.mxu0 %v11801_v38  ;;  %9664 = vmatprep.subr.bf16.mxu1 %v11801_v38 }
 0x9fd   :  { %9618 = vmatpush3.bf16.msra.mxu0 %v10217_v8  ;;  %9666 = vmatpush3.bf16.msra.mxu1 %v10221_v9  ;;  %v11914_v8 = vld [vmem:[#allocation41_spill] sm:$0xff]  ;;  %v11915_v9 = vld [vmem:[#allocation42_spill] sm:$0xff] }
 0x9fe   :  { %9619 = vmatprep.subr.bf16.mxu0 %v11801_v38  ;;  %9667 = vmatprep.subr.bf16.mxu1 %v11801_v38 }
 0xa01   :  { %9621 = vmatpush3.bf16.msra.mxu0 %v10225_v17  ;;  %9669 = vmatpush3.bf16.msra.mxu1 %v10229_v18  ;;  %v11916_v17 = vld [vmem:[#allocation43_spill] sm:$0xff]  ;;  %v11917_v18 = vld [vmem:[#allocation44_spill] sm:$0xff] }
 0xa02   :  { %9622 = vmatprep.subr.bf16.mxu0 %v11801_v38  ;;  %9670 = vmatprep.subr.bf16.mxu1 %v11801_v38 }
 0xa05   :  { %9624 = vmatpush3.bf16.msra.mxu0 %v10233_v25  ;;  %9672 = vmatpush3.bf16.msra.mxu1 %v10237_v28 }
 0xa06   :  { %9625 = vmatprep.subr.bf16.mxu0 %v11801_v38  ;;  %9673 = vmatprep.subr.bf16.mxu1 %v11801_v38 }
 0xa09   :  { %9627 = vmatpush3.bf16.msra.mxu0 %v10241_v35  ;;  %9675 = vmatpush3.bf16.msra.mxu1 %v10245_v36 }
 0xa0a   :  { %9628 = vmatprep.subr.bf16.mxu0 %v11801_v38  ;;  %9676 = vmatprep.subr.bf16.mxu1 %v11801_v38 }
 0xa0d   :  { %9630 = vmatpush3.bf16.msra.mxu0 %v10249_v43  ;;  %9678 = vmatpush3.bf16.msra.mxu1 %v10253_v46 }
 0xa0e   :  { %9631 = vmatprep.subr.bf16.mxu0 %v11801_v38  ;;  %9679 = vmatprep.subr.bf16.mxu1 %v11801_v38 }
 0xa11   :  { %9633 = vmatpush3.bf16.msra.mxu0 %v10257_v53  ;;  %9681 = vmatpush3.bf16.msra.mxu1 %v10261_v54 }
 0xa12   :  { %9682 = vmatprep.subr.bf16.mxu0 %v11801_v38  ;;  %9730 = vmatprep.subr.bf16.mxu1 %v11801_v38 }
 0xa14   :  { %8030 = vmatmul.mubr.msk.f32.vlgmr.msra.gmra.mrb[28].mxu0 %vm4276_vm8, %v11778_v31  ;;  %8100 = vmatmul.mubr.msk.f32.vlgmr.msra.gmra.mrb[28].mxu1 %vm4276_vm8, %v11778_v31 }
 0xa15   :  { %9684 = vmatpush3.bf16.msra.mxu0 %v10271_v5  ;;  %9732 = vmatpush3.bf16.msra.mxu1 %v10273_v7 }
 0xa16   :  { %9685 = vmatprep.subr.bf16.mxu0 %v11801_v38  ;;  %9733 = vmatprep.subr.bf16.mxu1 %v11801_v38 }
 0xa17   :  { %8134 = vmatprep.mubr.msk.f32.mxu0 %vm10052_vm0, %v11779_v22  ;;  %8204 = vmatprep.mubr.msk.f32.mxu1 %vm10052_vm0, %v11779_v22 }
 0xa19   :  { %9687 = vmatpush3.bf16.msra.mxu0 %v10289_v23  ;;  %9735 = vmatpush3.bf16.msra.mxu1 %v10291_v24 }
 0xa1a   :  { %9688 = vmatprep.subr.bf16.mxu0 %v11801_v38  ;;  %9736 = vmatprep.subr.bf16.mxu1 %v11801_v38 }
 0xa1d   :  { %9690 = vmatpush3.bf16.msra.mxu0 %v10301_v37  ;;  %9738 = vmatpush3.bf16.msra.mxu1 %v10303_v40 }
 0xa1e   :  { %9691 = vmatprep.subr.bf16.mxu0 %v11801_v38  ;;  %9739 = vmatprep.subr.bf16.mxu1 %v11801_v38 }
 0xa21   :  { %9693 = vmatpush3.bf16.msra.mxu0 %v10309_v49  ;;  %9741 = vmatpush3.bf16.msra.mxu1 %v10311_v52 }
 0xa22   :  { %9694 = vmatprep.subr.bf16.mxu0 %v11801_v38  ;;  %9742 = vmatprep.subr.bf16.mxu1 %v11801_v38 }
 0xa25   :  { %9696 = vmatpush3.bf16.msra.mxu0 %v10317_v61  ;;  %9744 = vmatpush3.bf16.msra.mxu1 %v10319_v0 }
 0xa26   :  { %9697 = vmatprep.subr.bf16.mxu0 %v11801_v38  ;;  %9745 = vmatprep.subr.bf16.mxu1 %v11801_v38 }
 0xa29   :  { %9699 = vmatpush3.bf16.msra.mxu0 %v10325_v29  ;;  %9747 = vmatpush3.bf16.msra.mxu1 %v10327_v30 }
 0xa2a   :  { %9700 = vmatprep.subr.bf16.mxu0 %v11801_v38  ;;  %9748 = vmatprep.subr.bf16.mxu1 %v11801_v38 }
 0xa2d   :  { %9702 = vmatpush3.bf16.msra.mxu0 %v10333_v47  ;;  %9750 = vmatpush3.bf16.msra.mxu1 %v10335_v48 }
 0xa2e   :  { %9703 = vmatprep.subr.bf16.mxu0 %v11801_v38  ;;  %9751 = vmatprep.subr.bf16.mxu1 %v11801_v38 }
 0xa31   :  { %9705 = vmatpush3.bf16.msra.mxu0 %v10341_v11  ;;  %9753 = vmatpush3.bf16.msra.mxu1 %v11780_v27 }
 0xa32   :  { %9706 = vmatprep.subr.bf16.mxu0 %v11801_v38  ;;  %9754 = vmatprep.subr.bf16.mxu1 %v11801_v38 }
 0xa34   :  { %8135 = vmatmul.mubr.f32.vlgmr.msra.gmra.mrb[30].mxu0 %v11522_v32  ;;  %8205 = vmatmul.mubr.f32.vlgmr.msra.gmra.mrb[30].mxu1 %v11522_v32 }
 0xa35   :  { %9708 = vmatpush3.bf16.msra.mxu0 %v11781_v33  ;;  %9756 = vmatpush3.bf16.msra.mxu1 %v11782_v39 }
 0xa36   :  { %9709 = vmatprep.subr.bf16.mxu0 %v11801_v38  ;;  %9757 = vmatprep.subr.bf16.mxu1 %v11801_v38 }
 0xa37   :  { %8169 = vmatprep.mubr.msk.f32.mxu0 %vm10052_vm0, %v11779_v22  ;;  %8239 = vmatprep.mubr.msk.f32.mxu1 %vm10052_vm0, %v11779_v22 }
 0xa39   :  { %9711 = vmatpush3.bf16.msra.mxu0 %v11783_v50  ;;  %9759 = vmatpush3.bf16.msra.mxu1 %v11784_v60 }
 0xa3a   :  { %9712 = vmatprep.subr.bf16.mxu0 %v11801_v38  ;;  %9760 = vmatprep.subr.bf16.mxu1 %v11801_v38 }
 0xa3d   :  { %9714 = vmatpush3.bf16.msra.mxu0 %v11785_v12  ;;  %9762 = vmatpush3.bf16.msra.mxu1 %v11786_v59 }
 0xa3e   :  { %9715 = vmatprep.subr.bf16.mxu0 %v11801_v38  ;;  %9763 = vmatprep.subr.bf16.mxu1 %v11801_v38 }
 0xa41   :  { %9717 = vmatpush3.bf16.msra.mxu0 %v11787_v41  ;;  %9765 = vmatpush3.bf16.msra.mxu1 %v11788_v13 }
 0xa42   :  { %9718 = vmatprep.subr.bf16.mxu0 %v11801_v38  ;;  %9766 = vmatprep.subr.bf16.mxu1 %v11801_v38 }
 0xa45   :  { %9720 = vmatpush3.bf16.msra.mxu0 %v11789_v34  ;;  %9768 = vmatpush3.bf16.msra.mxu1 %v11911_v57 }
 0xa46   :  { %9721 = vmatprep.subr.bf16.mxu0 %v11801_v38  ;;  %9769 = vmatprep.subr.bf16.mxu1 %v11801_v38 }
 0xa49   :  { %9723 = vmatpush3.bf16.msra.mxu0 %v11912_v62  ;;  %9771 = vmatpush3.bf16.msra.mxu1 %v11913_v63 }
 0xa4a   :  { %9724 = vmatprep.subr.bf16.mxu0 %v11801_v38  ;;  %9772 = vmatprep.subr.bf16.mxu1 %v11801_v38 }
 0xa4d   :  { %9726 = vmatpush3.bf16.msra.mxu0 %v11914_v8  ;;  %9774 = vmatpush3.bf16.msra.mxu1 %v11915_v9 }
 0xa4e   :  { %9727 = vmatprep.subr.bf16.mxu0 %v11801_v38  ;;  %9775 = vmatprep.subr.bf16.mxu1 %v11801_v38 }
 0xa51   :  { %9729 = vmatpush3.bf16.msra.mxu0 %v11916_v17  ;;  %9777 = vmatpush3.bf16.msra.mxu1 %v11917_v18 }
 0xa54   :  { %8170 = vmatmul.mubr.msk.f32.vlgmr.msra.gmra.mrb[30].mxu0 %vm4276_vm8, %v11778_v31  ;;  %8240 = vmatmul.mubr.msk.f32.vlgmr.msra.gmra.mrb[30].mxu1 %vm4276_vm8, %v11778_v31 }
 0xae7   :  { %v4415_v25 = vpop.f32.mrb[28].mxu0  ;;  %v4559_v28 = vpop.f32.mrb[28].mxu1 }
 0xae8   :  { %v4419_v35 = vmul.f32 0.5, %v4415_v25  ;;  %v8031_v36 = vpop.f32.mrb[29].mxu0  ;;  %v8101_v43 = vpop.f32.mrb[29].mxu1 }
 0xaea   :  { %9939 = vtanh.f32 %v4419_v35 }
 0xaeb   :  { %9941 = vtanh.f32 %v4559_v28 }
 0xaf4   :  { %v9940_v46 = vpop.eup %9939 }
 0xaf5   :  { %v4421_v53 = vmul.f32 0.5, %v9940_v46  ;;  %v9942_v5 = vpop.eup %9941 }
 0xaf7   :  { %v4422_v54 = vadd.f32 0.5, %v4421_v53 }
 0xaf9   :  { %v4564_v7 = vmul.f32 %v9942_v5, %v4422_v54 }
 0xb27   :  { %v4701_v23 = vpop.f32.mrb[30].mxu0  ;;  %v4847_v24 = vpop.f32.mrb[30].mxu1 }
 0xb28   :  { %v4705_v37 = vmul.f32 0.5, %v4701_v23  ;;  %v8171_v40 = vpop.f32.mrb[31].mxu0  ;;  %v8241_v49 = vpop.f32.mrb[31].mxu1  ;;  %v4851_v4 = vmul.f32 0.5, %v4847_v24 }
 0xb2a   :  { %9943 = vtanh.f32 %v4705_v37 }
 0xb2b   :  { %9945 = vtanh.f32 %v4851_v4 }
 0xb34   :  { %v9944_v52 = vpop.eup %9943 }
 0xb35   :  { %v4707_v61 = vmul.f32 0.5, %v9944_v52  ;;  %v9946_v47 = vpop.eup %9945 }
 0xb36   :  { %v4853_v48 = vmul.f32 0.5, %v9946_v47 }
 0xb37   :  { %v4708_v0 = vadd.f32 0.5, %v4707_v61 }
 0xb38   :  { %v4854_v11 = vadd.f32 0.5, %v4853_v48 }
 0xb39   :  { %v4709_v29 = vmul.f32 %v4708_v0, %v11519_v21 }
 0xb3b   :  { %v4710_v30 = vadd.f32 %v4709_v29, %v4564_v7 }
 0xb3d   :  { %9947 = vtanh.f32 %v4710_v30 }
 0xb47   :  { %v9948_v31 = vpop.eup %9947 }
 0xb48   :  { %v4856_v22 = vmul.f32 %v9948_v31, %v4854_v11 }
 0xb4a   :  { %4857 = vst [vmem:[#allocation8] sm:$0xff] %v4856_v22 }
 0xb4b   :  { %10028 = shalt.err (!%p10025_p0)
}
 0xb4c   :  { %s10029_s25 = scalar_lea.hbm %s11670_s3, 128 }
 0xb4d   :  { %p10030_p1 = scmp.ne.s32.totalorder %s11670_s3, %s10029_s25  ;;  %p10033_p2 = scmp.lt.u32.totalorder %s10029_s25, %s11670_s3 }
 0xb4f   :  { %p10035_p3 = pnand %p10033_p2, %p10030_p1 }
 0xb51   :  { %10038 = shalt.err (!%p10035_p3)
}
 0xb52   :  { %4867 = dma.vmem_to_hbm [thread:$0]  %s4865_s21, 128, %s11670_s3, [#allocation4]  }
 0xb53   :  { %10043 = dma.done.wait [#allocation4], 128  }
 0xb54   :  { %10044 = vsyncadd [#allocation4], 4294967168 }
 0xb55   :  { %4871 = vsyncpa [#allocation3], 1 }
 0xb56   :  { %4872 = vsyncpa [#allocation6], 1 }
 0xb57   :  { %4873 = vsyncpa [#allocation4], 1 }

</bundles_post_ra>
